<compile_context>
chip_gen: v7x
topology: tpu7x:2x2x1
jax: 0.10.0
libtpu: 0.0.40
codegen_flags: <defaults>
</compile_context>

<pallas_src>
import functools

import jax
import jax.numpy as jnp
from jax.experimental import pallas as pl
from jax.experimental.pallas import tpu as pltpu

VMEM_SPEC = pl.BlockSpec(memory_space=pltpu.MemorySpace.VMEM)
B_PAD = 8            # pad batch to one full sublane group
LOGITS_TILE = 5120   # multiple of 256; V=10000 pads to 2 tiles (10240)


# ----------------------------------------------------------------------------
# Kernel 1: fused bi-LSTM encoder + fc_hidden/fc_cell + attention-LSTM decoder.
# ----------------------------------------------------------------------------
def fused_enc_dec_kernel(emb_src_ref, emb_tgt_ref,
                         enc_wih_ref, enc_whh_ref, enc_b_ref,
                         fc_h_w_ref, fc_h_b_ref, fc_c_w_ref, fc_c_b_ref,
                         we_h_ref, we_e_ref, be_ref,
                         dec_w_ref, dec_wih_emb_ref, dec_b_ref,
                         hall_ref):
    S, B, E = emb_src_ref.shape
    Tm1 = emb_tgt_ref.shape[0]
    H = fc_h_b_ref.shape[1]
    f32, bf16 = jnp.float32, jnp.bfloat16

    # ---------------- Encoder ----------------
    # Hoisted input projection, both directions fused: (S*B, E) @ (E, 8H) + [b_f | b_b]
    x_flat = emb_src_ref[...].reshape(S * B, E)
    gin = (jnp.dot(x_flat, enc_wih_ref[...], preferred_element_type=f32)
           + enc_b_ref[...])                                              # (S*B, 8H)
    enc_whh = enc_whh_ref[...]                                            # (H, 8H) bf16

    def half_cell(gates, c):
        sg = jax.nn.sigmoid(gates)                    # one full-(B,4H) EUP pass
        g = jnp.tanh(gates[:, 2 * H:3 * H])
        c_new = sg[:, H:2 * H] * c + sg[:, 0:H] * g
        h_new = sg[:, 3 * H:4 * H] * jnp.tanh(c_new)
        return h_new, c_new

    h_f = jnp.zeros((B, H), f32); c_f = jnp.zeros((B, H), f32)
    h_b = jnp.zeros((B, H), f32); c_b = jnp.zeros((B, H), f32)
    hf_steps = [None] * S
    hb_steps = [None] * S

    # TODO(synk): on v7x the two directions could be split across the 2 TensorCores
    # (core-parallel grid); the fused single-call design targets 1-TC v5e/v6e.
    for t in range(S):   # fully unrolled, S static
        # one 256-lane-wide MXU push covers both directions' h @ W_hh
        h_stack = jnp.concatenate([h_f, h_b], axis=0).astype(bf16)        # (2B, H)
        prod = jnp.dot(h_stack, enc_whh, preferred_element_type=f32)      # (2B, 8H)
        gates_f = gin[t * B:(t + 1) * B, 0:4 * H] + prod[0:B, 0:4 * H]
        gates_b = (gin[(S - 1 - t) * B:(S - t) * B, 4 * H:8 * H]
                   + prod[B:2 * B, 4 * H:8 * H])
        h_f, c_f = half_cell(gates_f, c_f)
        h_b, c_b = half_cell(gates_b, c_b)
        hf_steps[t] = h_f
        hb_steps[S - 1 - t] = h_b

    # encoder states stay on-chip as per-position (B, 2H) values (no HBM round trip)
    enc_steps = [jnp.concatenate([hf_steps[t], hb_steps[t]], axis=1) for t in range(S)]

    # fc_hidden / fc_cell epilogue -> initial decoder state
    h = (jnp.dot(jnp.concatenate([h_f, h_b], axis=1), fc_h_w_ref[...],
                 preferred_element_type=f32) + fc_h_b_ref[...])           # (B, H)
    c = (jnp.dot(jnp.concatenate([c_f, c_b], axis=1), fc_c_w_ref[...],
                 preferred_element_type=f32) + fc_c_b_ref[...])           # (B, H)

    # ---------------- Decoder ----------------
    # hoisted, h-independent attention energies: e_static[b, s] = enc[b,s,:]·we_e + be
    we_e = we_e_ref[...]                                                  # (1, 2H)
    e_static = jnp.concatenate(
        [jnp.sum(enc_steps[t] * we_e, axis=1, keepdims=True) for t in range(S)],
        axis=1) + be_ref[0, 0]                                            # (B, S)
    # hoisted embedding contribution to the LSTM gates (+ pre-summed bias)
    emb_flat = emb_tgt_ref[...].reshape(Tm1 * B, E)
    g_static = (jnp.dot(emb_flat, dec_wih_emb_ref[...], preferred_element_type=f32)
                + dec_b_ref[...])                                         # (Tm1*B, 4H)

    dec_w = dec_w_ref[...]                                                # (3H, 4H) bf16
    we_h = we_h_ref[...]                                                  # (1, H)

    for t in range(Tm1):   # fully unrolled, T-1 static
        # attention score of h on the VPU/XLU (no 1-lane-wide MXU matmul)
        e_h = jnp.sum(h * we_h, axis=1, keepdims=True)                    # (B, 1)
        energy = jnp.maximum(e_static + e_h, 0.0)                         # (B, S) relu
        m = jnp.max(energy, axis=1, keepdims=True)
        p = jnp.exp(energy - m)
        attn = p * pl.reciprocal(jnp.sum(p, axis=1, keepdims=True), approx=True)

        # context = attention-weighted sum of encoder states (VPU FMAs)
        context = attn[:, 0:1] * enc_steps[0]
        for s in range(1, S):
            context = context + attn[:, s:s + 1] * enc_steps[s]           # (B, 2H)

        # single MXU push:  [context | h] @ [W_ih_ctx ; W_hh]
        rnn_in = jnp.concatenate([context, h], axis=1).astype(bf16)       # (B, 3H)
        gates = (jnp.dot(rnn_in, dec_w, preferred_element_type=f32)
                 + g_static[t * B:(t + 1) * B, :])                        # (B, 4H)

        sg = jax.nn.sigmoid(gates)
        g = jnp.tanh(gates[:, 2 * H:3 * H])
        c = sg[:, H:2 * H] * c + sg[:, 0:H] * g
        h = sg[:, 3 * H:4 * H] * jnp.tanh(c)
        hall_ref[t] = h.astype(hall_ref.dtype)                            # bf16 store


def run_fused(emb_src, emb_tgt, p):
    Tm1, bpad, _ = emb_tgt.shape
    H = p["fc_h_b"].shape[1]
    return pl.pallas_call(
        fused_enc_dec_kernel,
        out_shape=jax.ShapeDtypeStruct((Tm1, bpad, H), jnp.bfloat16),
        in_specs=[VMEM_SPEC] * 15,
        out_specs=VMEM_SPEC,
    )(emb_src, emb_tgt,
      p["enc_wih_cat"], p["enc_whh_cat"], p["enc_b_cat"],
      p["fc_h_w"], p["fc_h_b"], p["fc_c_w"], p["fc_c_b"],
      p["en_we_h_row"], p["en_we_e_row"], p["en_be"],
      p["dec_w_cat"], p["dec_wih_emb"], p["dec_blstm"])


# ----------------------------------------------------------------------------
# Kernel 2: vocab projection writing the final (T, B_pad, V_pad) buffer directly.
#           grid = (V_tiles, T); t == 0 rows are zero-filled in-kernel (pl.when).
# ----------------------------------------------------------------------------
def logits_kernel(h_ref, w_ref, b_ref, o_ref):
    t = pl.program_id(1)

    @pl.when(t == 0)
    def _():
        o_ref[...] = jnp.zeros_like(o_ref)

    @pl.when(t > 0)
    def _():
        o_ref[0] = (jnp.dot(h_ref[0], w_ref[...], preferred_element_type=jnp.float32)
                    + b_ref[...])


def run_logits(h_all, wfc_pad, bfc_pad, T):
    Tm1, bpad, H = h_all.shape
    Vpad = wfc_pad.shape[1]
    tv = LOGITS_TILE
    return pl.pallas_call(
        logits_kernel,
        out_shape=jax.ShapeDtypeStruct((T, bpad, Vpad), jnp.float32),
        grid=(Vpad // tv, T),     # V outer -> weight tile DMA'd once per V tile
        in_specs=[
            pl.BlockSpec((1, bpad, H), lambda j, t: (jnp.maximum(t - 1, 0), 0, 0)),
            pl.BlockSpec((H, tv), lambda j, t: (0, j)),
            pl.BlockSpec((1, tv), lambda j, t: (0, j)),
        ],
        out_specs=pl.BlockSpec((1, bpad, tv), lambda j, t: (t, 0, j)),
        compiler_params=pltpu.CompilerParams(
            dimension_semantics=("parallel", "parallel")),
    )(h_all, wfc_pad, bfc_pad)


# ----------------------------------------------------------------------------
# S2S forward (wrapper glue: embedding gathers + batch padding + final un-pad slice)
# ----------------------------------------------------------------------------
@functools.partial(jax.jit, static_argnames=("out_vocab",))
def s2s_forward(params, sursa, target, out_vocab):
    S, B = sursa.shape
    T = target.shape[0]
    bpad = max(B_PAD, ((B + 7) // 8) * 8)

    # TODO(synk): embedding gathers stay in plain JAX (jnp.take); both tables would fit
    # VMEM and could be folded in-kernel with scalar-prefetched indices.
    emb_src = jnp.take(params["enc_emb"], sursa, axis=0)                 # (S, B, E)
    emb_src = jnp.pad(emb_src, ((0, 0), (0, bpad - B), (0, 0)))
    # teacher_force_ratio = 1 -> decoder inputs are target[0 : T-1]
    emb_tgt = jnp.take(params["dec_emb"], target[:-1], axis=0)           # (T-1, B, E)
    emb_tgt = jnp.pad(emb_tgt, ((0, 0), (0, bpad - B), (0, 0)))

    h_all = run_fused(emb_src, emb_tgt, params)                          # (T-1, bp, H) bf16

    logits_full = run_logits(h_all, params["dec_wfc_pad"], params["dec_bfc_pad"], T)
    # outputs[0] is already zeros (written in-kernel); just un-pad batch and vocab.
    return logits_full[:, :B, :out_vocab]                                # (T, B, V)


# ----------------------------------------------------------------------------
# Deterministic parameter init (fused / transposed layouts) + driver
# ----------------------------------------------------------------------------
def make_params(key, src_vocab, emb, hidden, tgt_vocab):
    ks = iter(jax.random.split(key, 32))
    n = lambda shape: (jax.random.normal(next(ks), shape, jnp.float32) * 0.1)
    H, E = hidden, emb

    wih_f, whh_f, b_f = n((E, 4 * H)), n((H, 4 * H)), n((1, 4 * H))
    wih_b, whh_b, b_b = n((E, 4 * H)), n((H, 4 * H)), n((1, 4 * H))
    wih_ctx, wih_emb = n((2 * H, 4 * H)), n((E, 4 * H))
    whh_d, blstm = n((H, 4 * H)), n((1, 4 * H))

    wfc = n((H, tgt_vocab))
    bfc = n((1, tgt_vocab))
    vpad = ((tgt_vocab + LOGITS_TILE - 1) // LOGITS_TILE) * LOGITS_TILE
    wfc_pad = jnp.zeros((H, vpad), jnp.float32).at[:, :tgt_vocab].set(wfc)
    bfc_pad = jnp.zeros((1, vpad), jnp.float32).at[:, :tgt_vocab].set(bfc)

    return {
        # Encoder (bi-LSTM): input weights fused over directions, hidden weights bf16
        "enc_emb":     n((src_vocab, E)),
        "enc_wih_cat": jnp.concatenate([wih_f, wih_b], axis=1),                     # (E, 8H)
        "enc_whh_cat": jnp.concatenate([whh_f, whh_b], axis=1).astype(jnp.bfloat16),# (H, 8H)
        "enc_b_cat":   jnp.concatenate([b_f, b_b], axis=1),                         # (1, 8H)
        "fc_h_w": n((2 * H, H)), "fc_h_b": n((1, H)),
        "fc_c_w": n((2 * H, H)), "fc_c_b": n((1, H)),
        # Decoder: attention energy split (h part / enc part), LSTM weights fused & bf16
        "dec_emb":     n((tgt_vocab, E)),
        "en_we_h_row": n((1, H)), "en_we_e_row": n((1, 2 * H)), "en_be": n((1, 1)),
        "dec_w_cat":   jnp.concatenate([wih_ctx, whh_d], axis=0).astype(jnp.bfloat16),  # (3H, 4H)
        "dec_wih_emb": wih_emb, "dec_blstm": blstm,
        # Vocab projection: V padded to a multiple of LOGITS_TILE, weights bf16
        "dec_wfc_pad": wfc_pad.astype(jnp.bfloat16),
        "dec_bfc_pad": bfc_pad,
    }


if __name__ == "__main__":
    SRC_LEN, TGT_LEN, BATCH = 8, 6, 2
    EMB, HIDDEN = 32, 32
    SRC_VOCAB = 100
    TGT_VOCAB = 10000           # hardcoded target_vocab_size in the PyTorch forward

    key = jax.random.PRNGKey(0)
    kp, ks, kt = jax.random.split(key, 3)
    params = make_params(kp, SRC_VOCAB, EMB, HIDDEN, TGT_VOCAB)

    sursa = jax.random.randint(ks, (SRC_LEN, BATCH), 0, SRC_VOCAB, dtype=jnp.int32)
    target = jax.random.randint(kt, (TGT_LEN, BATCH), 0, TGT_VOCAB, dtype=jnp.int32)

    out = s2s_forward(params, sursa, target, out_vocab=TGT_VOCAB)
    jax.block_until_ready(out)

    assert out.shape == (TGT_LEN, BATCH, TGT_VOCAB)
    assert bool(jnp.all(jnp.isfinite(out)))
    assert bool(jnp.all(out[0] == 0.0))     # outputs[0] stays zeros, like the reference
    print("KERNEL_OK")
</pallas_src>

<mosaic_0001>
module attributes {stable_mosaic.version = 11 : i64} {
  func.func @logits_kernel(%arg0: i32, %arg1: i32, %arg2: memref<1x8x32xbf16, #tpu.memory_space<vmem>>, %arg3: memref<32x5120xbf16, #tpu.memory_space<vmem>>, %arg4: memref<1x5120xf32, #tpu.memory_space<vmem>>, %arg5: memref<1x8x5120xf32, #tpu.memory_space<vmem>>) attributes {dimension_semantics = [#tpu.dimension_semantics<parallel>, #tpu.dimension_semantics<parallel>], iteration_bounds = array<i64: 2, 6>, scalar_prefetch = 0 : i64, scratch_operands = 0 : i64, tpu.core_type = #tpu.core_type<tc>, window_params = [{transform_indices = @transform_0, window_bounds = array<i64: 1, 8, 32>}, {transform_indices = @transform_1, window_bounds = array<i64: 32, 5120>}, {transform_indices = @transform_2, window_bounds = array<i64: 1, 5120>}, {transform_indices = @transform_3, window_bounds = array<i64: 1, 8, 5120>}]} {
    %c0_i32 = arith.constant 0 : i32
    %0 = arith.cmpi eq, %arg1, %c0_i32 : i32
    %1 = arith.extui %0 : i1 to i32
    %c0_i32_0 = arith.constant 0 : i32
    %2 = arith.cmpi ne, %1, %c0_i32_0 : i32
    scf.if %2 {
      %cst = arith.constant 0.000000e+00 : f32
      %6 = vector.broadcast %cst : f32 to vector<1x8x5120xf32>
      %c0 = arith.constant 0 : index
      %c0_3 = arith.constant 0 : index
      %c0_4 = arith.constant 0 : index
      %7 = vector.load %arg5[%c0, %c0_3, %c0_4] : memref<1x8x5120xf32, #tpu.memory_space<vmem>>, vector<1x8x5120xf32>
      tpu.vector_store %arg5[%c0, %c0_3, %c0_4], %6 {strides = array<i32>} : memref<1x8x5120xf32, #tpu.memory_space<vmem>>, vector<1x8x5120xf32>,
    } else {
    }
    %c0_i32_1 = arith.constant 0 : i32
    %3 = arith.cmpi sgt, %arg1, %c0_i32_1 : i32
    %4 = arith.extui %3 : i1 to i32
    %c0_i32_2 = arith.constant 0 : i32
    %5 = arith.cmpi ne, %4, %c0_i32_2 : i32
    scf.if %5 {
      %c0 = arith.constant 0 : index
      %c0_3 = arith.constant 0 : index
      %c0_4 = arith.constant 0 : index
      %6 = vector.load %arg2[%c0, %c0_3, %c0_4] : memref<1x8x32xbf16, #tpu.memory_space<vmem>>, vector<1x8x32xbf16>
      %7 = vector.shape_cast %6 : vector<1x8x32xbf16> to vector<8x32xbf16>
      %c0_5 = arith.constant 0 : index
      %c0_6 = arith.constant 0 : index
      %8 = vector.load %arg3[%c0_5, %c0_6] : memref<32x5120xbf16, #tpu.memory_space<vmem>>, vector<32x5120xbf16>
      %cst = arith.constant dense<0.000000e+00> : vector<8x5120xf32>
      %9 = tpu.matmul %7, %8, %cst {dimension_numbers = #tpu.dot_dimension_numbers<[1], [0], [0], [1], [0, 0, 1, 1], [], []>} : vector<8x32xbf16>, vector<32x5120xbf16>, vector<8x5120xf32> -> vector<8x5120xf32>
      %c0_7 = arith.constant 0 : index
      %c0_8 = arith.constant 0 : index
      %10 = vector.load %arg4[%c0_7, %c0_8] : memref<1x5120xf32, #tpu.memory_space<vmem>>, vector<1x5120xf32>
      %11 = vector.broadcast %10 : vector<1x5120xf32> to vector<8x5120xf32>
      %12 = arith.addf %9, %11 : vector<8x5120xf32>
      %c0_9 = arith.constant 0 : index
      %c0_10 = arith.constant 0 : index
      %c0_11 = arith.constant 0 : index
      %13 = vector.load %arg5[%c0_9, %c0_10, %c0_11] : memref<1x8x5120xf32, #tpu.memory_space<vmem>>, vector<1x8x5120xf32>
      %14 = vector.shape_cast %13 : vector<1x8x5120xf32> to vector<8x5120xf32>
      %15 = vector.shape_cast %12 : vector<8x5120xf32> to vector<1x8x5120xf32>
      tpu.vector_store %arg5[%c0_9, %c0_10, %c0_11], %15 {strides = array<i32>} : memref<1x8x5120xf32, #tpu.memory_space<vmem>>, vector<1x8x5120xf32>,
    } else {
    }
    return
  }
  func.func @transform_0(%arg0: i32, %arg1: i32) -> (i32, i32, i32) {
    %c1_i32 = arith.constant 1 : i32
    %0 = arith.subi %arg1, %c1_i32 : i32
    %c0_i32 = arith.constant 0 : i32
    %1 = arith.maxsi %0, %c0_i32 : i32
    %c0_i32_0 = arith.constant 0 : i32
    %c0_i32_1 = arith.constant 0 : i32
    %c0_i32_2 = arith.constant 0 : i32
    return %1, %c0_i32_0, %c0_i32_1 : i32, i32, i32
  }
  func.func @transform_1(%arg0: i32, %arg1: i32) -> (i32, i32) {
    %c0_i32 = arith.constant 0 : i32
    %c0_i32_0 = arith.constant 0 : i32
    return %c0_i32, %arg0 : i32, i32
  }
  func.func @transform_2(%arg0: i32, %arg1: i32) -> (i32, i32) {
    %c0_i32 = arith.constant 0 : i32
    %c0_i32_0 = arith.constant 0 : i32
    return %c0_i32, %arg0 : i32, i32
  }
  func.func @transform_3(%arg0: i32, %arg1: i32) -> (i32, i32, i32) {
    %c0_i32 = arith.constant 0 : i32
    %c0_i32_0 = arith.constant 0 : i32
    return %arg1, %c0_i32, %arg0 : i32, i32, i32
  }
}

module attributes {stable_mosaic.version = 11 : i64} {
  func.func @fused_enc_dec_kernel(%arg0: memref<8x8x32xf32, #tpu.memory_space<vmem>>, %arg1: memref<5x8x32xf32, #tpu.memory_space<vmem>>, %arg2: memref<32x256xf32, #tpu.memory_space<vmem>>, %arg3: memref<32x256xbf16, #tpu.memory_space<vmem>>, %arg4: memref<1x256xf32, #tpu.memory_space<vmem>>, %arg5: memref<64x32xf32, #tpu.memory_space<vmem>>, %arg6: memref<1x32xf32, #tpu.memory_space<vmem>>, %arg7: memref<64x32xf32, #tpu.memory_space<vmem>>, %arg8: memref<1x32xf32, #tpu.memory_space<vmem>>, %arg9: memref<1x32xf32, #tpu.memory_space<vmem>>, %arg10: memref<1x64xf32, #tpu.memory_space<vmem>>, %arg11: memref<1x1xf32, #tpu.memory_space<vmem>>, %arg12: memref<96x128xbf16, #tpu.memory_space<vmem>>, %arg13: memref<32x128xf32, #tpu.memory_space<vmem>>, %arg14: memref<1x128xf32, #tpu.memory_space<vmem>>, %arg15: memref<5x8x32xbf16, #tpu.memory_space<vmem>>) attributes {dimension_semantics = [], scalar_prefetch = 0 : i64, scratch_operands = 0 : i64, tpu.core_type = #tpu.core_type<tc>} {
    %c0 = arith.constant 0 : index
    %c0_0 = arith.constant 0 : index
    %c0_1 = arith.constant 0 : index
    %0 = vector.load %arg0[%c0, %c0_0, %c0_1] : memref<8x8x32xf32, #tpu.memory_space<vmem>>, vector<8x8x32xf32>
    %1 = vector.shape_cast %0 : vector<8x8x32xf32> to vector<64x32xf32>
    %c0_2 = arith.constant 0 : index
    %c0_3 = arith.constant 0 : index
    %2 = vector.load %arg2[%c0_2, %c0_3] : memref<32x256xf32, #tpu.memory_space<vmem>>, vector<32x256xf32>
    %cst = arith.constant dense<0.000000e+00> : vector<64x256xf32>
    %3 = tpu.matmul %1, %2, %cst {dimension_numbers = #tpu.dot_dimension_numbers<[1], [0], [0], [1], [0, 0, 1, 1], [], []>} : vector<64x32xf32>, vector<32x256xf32>, vector<64x256xf32> -> vector<64x256xf32>
    %c0_4 = arith.constant 0 : index
    %c0_5 = arith.constant 0 : index
    %4 = vector.load %arg4[%c0_4, %c0_5] : memref<1x256xf32, #tpu.memory_space<vmem>>, vector<1x256xf32>
    %5 = vector.broadcast %4 : vector<1x256xf32> to vector<64x256xf32>
    %6 = arith.addf %3, %5 : vector<64x256xf32>
    %c0_6 = arith.constant 0 : index
    %c0_7 = arith.constant 0 : index
    %7 = vector.load %arg3[%c0_6, %c0_7] : memref<32x256xbf16, #tpu.memory_space<vmem>>, vector<32x256xbf16>
    %cst_8 = arith.constant 0.000000e+00 : f32
    %8 = vector.broadcast %cst_8 : f32 to vector<8x32xf32>
    %cst_9 = arith.constant 0.000000e+00 : f32
    %9 = vector.broadcast %cst_9 : f32 to vector<8x32xf32>
    %cst_10 = arith.constant 0.000000e+00 : f32
    %10 = vector.broadcast %cst_10 : f32 to vector<8x32xf32>
    %cst_11 = arith.constant 0.000000e+00 : f32
    %11 = vector.broadcast %cst_11 : f32 to vector<8x32xf32>
    %12 = tpu.concatenate %8, %10 in 0 : vector<8x32xf32>, vector<8x32xf32> -> vector<16x32xf32>
    %13 = arith.truncf %12 : vector<16x32xf32> to vector<16x32xbf16>
    %cst_12 = arith.constant dense<0.000000e+00> : vector<16x256xf32>
    %14 = tpu.matmul %13, %7, %cst_12 {dimension_numbers = #tpu.dot_dimension_numbers<[1], [0], [0], [1], [0, 0, 1, 1], [], []>} : vector<16x32xbf16>, vector<32x256xbf16>, vector<16x256xf32> -> vector<16x256xf32>
    %15 = vector.extract_strided_slice %6 {offsets = [0, 0], sizes = [8, 128], strides = [1, 1]} : vector<64x256xf32> to vector<8x128xf32>
    %16 = vector.extract_strided_slice %14 {offsets = [0, 0], sizes = [8, 128], strides = [1, 1]} : vector<16x256xf32> to vector<8x128xf32>
    %17 = arith.addf %15, %16 : vector<8x128xf32>
    %18 = vector.extract_strided_slice %6 {offsets = [56, 128], sizes = [8, 128], strides = [1, 1]} : vector<64x256xf32> to vector<8x128xf32>
    %19 = vector.extract_strided_slice %14 {offsets = [8, 128], sizes = [8, 128], strides = [1, 1]} : vector<16x256xf32> to vector<8x128xf32>
    %20 = arith.addf %18, %19 : vector<8x128xf32>
    %21 = arith.negf %17 : vector<8x128xf32>
    %22 = math.exp %21 : vector<8x128xf32>
    %cst_13 = arith.constant 1.000000e+00 : f32
    %23 = vector.broadcast %cst_13 : f32 to vector<8x128xf32>
    %24 = arith.addf %23, %22 : vector<8x128xf32>
    %25 = arith.divf %23, %24 : vector<8x128xf32>
    %26 = vector.extract_strided_slice %17 {offsets = [0, 64], sizes = [8, 32], strides = [1, 1]} : vector<8x128xf32> to vector<8x32xf32>
    %27 = math.tanh %26 : vector<8x32xf32>
    %28 = vector.extract_strided_slice %25 {offsets = [0, 32], sizes = [8, 32], strides = [1, 1]} : vector<8x128xf32> to vector<8x32xf32>
    %29 = arith.mulf %28, %9 : vector<8x32xf32>
    %30 = vector.extract_strided_slice %25 {offsets = [0, 0], sizes = [8, 32], strides = [1, 1]} : vector<8x128xf32> to vector<8x32xf32>
    %31 = arith.mulf %30, %27 : vector<8x32xf32>
    %32 = arith.addf %29, %31 : vector<8x32xf32>
    %33 = vector.extract_strided_slice %25 {offsets = [0, 96], sizes = [8, 32], strides = [1, 1]} : vector<8x128xf32> to vector<8x32xf32>
    %34 = math.tanh %32 : vector<8x32xf32>
    %35 = arith.mulf %33, %34 : vector<8x32xf32>
    %36 = arith.negf %20 : vector<8x128xf32>
    %37 = math.exp %36 : vector<8x128xf32>
    %cst_14 = arith.constant 1.000000e+00 : f32
    %38 = vector.broadcast %cst_14 : f32 to vector<8x128xf32>
    %39 = arith.addf %38, %37 : vector<8x128xf32>
    %40 = arith.divf %38, %39 : vector<8x128xf32>
    %41 = vector.extract_strided_slice %20 {offsets = [0, 64], sizes = [8, 32], strides = [1, 1]} : vector<8x128xf32> to vector<8x32xf32>
    %42 = math.tanh %41 : vector<8x32xf32>
    %43 = vector.extract_strided_slice %40 {offsets = [0, 32], sizes = [8, 32], strides = [1, 1]} : vector<8x128xf32> to vector<8x32xf32>
    %44 = arith.mulf %43, %11 : vector<8x32xf32>
    %45 = vector.extract_strided_slice %40 {offsets = [0, 0], sizes = [8, 32], strides = [1, 1]} : vector<8x128xf32> to vector<8x32xf32>
    %46 = arith.mulf %45, %42 : vector<8x32xf32>
    %47 = arith.addf %44, %46 : vector<8x32xf32>
    %48 = vector.extract_strided_slice %40 {offsets = [0, 96], sizes = [8, 32], strides = [1, 1]} : vector<8x128xf32> to vector<8x32xf32>
    %49 = math.tanh %47 : vector<8x32xf32>
    %50 = arith.mulf %48, %49 : vector<8x32xf32>
    %51 = tpu.concatenate %35, %50 in 0 : vector<8x32xf32>, vector<8x32xf32> -> vector<16x32xf32>
    %52 = arith.truncf %51 : vector<16x32xf32> to vector<16x32xbf16>
    %cst_15 = arith.constant dense<0.000000e+00> : vector<16x256xf32>
    %53 = tpu.matmul %52, %7, %cst_15 {dimension_numbers = #tpu.dot_dimension_numbers<[1], [0], [0], [1], [0, 0, 1, 1], [], []>} : vector<16x32xbf16>, vector<32x256xbf16>, vector<16x256xf32> -> vector<16x256xf32>
    %54 = vector.extract_strided_slice %6 {offsets = [8, 0], sizes = [8, 128], strides = [1, 1]} : vector<64x256xf32> to vector<8x128xf32>
    %55 = vector.extract_strided_slice %53 {offsets = [0, 0], sizes = [8, 128], strides = [1, 1]} : vector<16x256xf32> to vector<8x128xf32>
    %56 = arith.addf %54, %55 : vector<8x128xf32>
    %57 = vector.extract_strided_slice %6 {offsets = [48, 128], sizes = [8, 128], strides = [1, 1]} : vector<64x256xf32> to vector<8x128xf32>
    %58 = vector.extract_strided_slice %53 {offsets = [8, 128], sizes = [8, 128], strides = [1, 1]} : vector<16x256xf32> to vector<8x128xf32>
    %59 = arith.addf %57, %58 : vector<8x128xf32>
    %60 = arith.negf %56 : vector<8x128xf32>
    %61 = math.exp %60 : vector<8x128xf32>
    %cst_16 = arith.constant 1.000000e+00 : f32
    %62 = vector.broadcast %cst_16 : f32 to vector<8x128xf32>
    %63 = arith.addf %62, %61 : vector<8x128xf32>
    %64 = arith.divf %62, %63 : vector<8x128xf32>
    %65 = vector.extract_strided_slice %56 {offsets = [0, 64], sizes = [8, 32], strides = [1, 1]} : vector<8x128xf32> to vector<8x32xf32>
    %66 = math.tanh %65 : vector<8x32xf32>
    %67 = vector.extract_strided_slice %64 {offsets = [0, 32], sizes = [8, 32], strides = [1, 1]} : vector<8x128xf32> to vector<8x32xf32>
    %68 = arith.mulf %67, %32 : vector<8x32xf32>
    %69 = vector.extract_strided_slice %64 {offsets = [0, 0], sizes = [8, 32], strides = [1, 1]} : vector<8x128xf32> to vector<8x32xf32>
    %70 = arith.mulf %69, %66 : vector<8x32xf32>
    %71 = arith.addf %68, %70 : vector<8x32xf32>
    %72 = vector.extract_strided_slice %64 {offsets = [0, 96], sizes = [8, 32], strides = [1, 1]} : vector<8x128xf32> to vector<8x32xf32>
    %73 = math.tanh %71 : vector<8x32xf32>
    %74 = arith.mulf %72, %73 : vector<8x32xf32>
    %75 = arith.negf %59 : vector<8x128xf32>
    %76 = math.exp %75 : vector<8x128xf32>
    %cst_17 = arith.constant 1.000000e+00 : f32
    %77 = vector.broadcast %cst_17 : f32 to vector<8x128xf32>
    %78 = arith.addf %77, %76 : vector<8x128xf32>
    %79 = arith.divf %77, %78 : vector<8x128xf32>
    %80 = vector.extract_strided_slice %59 {offsets = [0, 64], sizes = [8, 32], strides = [1, 1]} : vector<8x128xf32> to vector<8x32xf32>
    %81 = math.tanh %80 : vector<8x32xf32>
    %82 = vector.extract_strided_slice %79 {offsets = [0, 32], sizes = [8, 32], strides = [1, 1]} : vector<8x128xf32> to vector<8x32xf32>
    %83 = arith.mulf %82, %47 : vector<8x32xf32>
    %84 = vector.extract_strided_slice %79 {offsets = [0, 0], sizes = [8, 32], strides = [1, 1]} : vector<8x128xf32> to vector<8x32xf32>
    %85 = arith.mulf %84, %81 : vector<8x32xf32>
    %86 = arith.addf %83, %85 : vector<8x32xf32>
    %87 = vector.extract_strided_slice %79 {offsets = [0, 96], sizes = [8, 32], strides = [1, 1]} : vector<8x128xf32> to vector<8x32xf32>
    %88 = math.tanh %86 : vector<8x32xf32>
    %89 = arith.mulf %87, %88 : vector<8x32xf32>
    %90 = tpu.concatenate %74, %89 in 0 : vector<8x32xf32>, vector<8x32xf32> -> vector<16x32xf32>
    %91 = arith.truncf %90 : vector<16x32xf32> to vector<16x32xbf16>
    %cst_18 = arith.constant dense<0.000000e+00> : vector<16x256xf32>
    %92 = tpu.matmul %91, %7, %cst_18 {dimension_numbers = #tpu.dot_dimension_numbers<[1], [0], [0], [1], [0, 0, 1, 1], [], []>} : vector<16x32xbf16>, vector<32x256xbf16>, vector<16x256xf32> -> vector<16x256xf32>
    %93 = vector.extract_strided_slice %6 {offsets = [16, 0], sizes = [8, 128], strides = [1, 1]} : vector<64x256xf32> to vector<8x128xf32>
    %94 = vector.extract_strided_slice %92 {offsets = [0, 0], sizes = [8, 128], strides = [1, 1]} : vector<16x256xf32> to vector<8x128xf32>
    %95 = arith.addf %93, %94 : vector<8x128xf32>
    %96 = vector.extract_strided_slice %6 {offsets = [40, 128], sizes = [8, 128], strides = [1, 1]} : vector<64x256xf32> to vector<8x128xf32>
    %97 = vector.extract_strided_slice %92 {offsets = [8, 128], sizes = [8, 128], strides = [1, 1]} : vector<16x256xf32> to vector<8x128xf32>
    %98 = arith.addf %96, %97 : vector<8x128xf32>
    %99 = arith.negf %95 : vector<8x128xf32>
    %100 = math.exp %99 : vector<8x128xf32>
    %cst_19 = arith.constant 1.000000e+00 : f32
    %101 = vector.broadcast %cst_19 : f32 to vector<8x128xf32>
    %102 = arith.addf %101, %100 : vector<8x128xf32>
    %103 = arith.divf %101, %102 : vector<8x128xf32>
    %104 = vector.extract_strided_slice %95 {offsets = [0, 64], sizes = [8, 32], strides = [1, 1]} : vector<8x128xf32> to vector<8x32xf32>
    %105 = math.tanh %104 : vector<8x32xf32>
    %106 = vector.extract_strided_slice %103 {offsets = [0, 32], sizes = [8, 32], strides = [1, 1]} : vector<8x128xf32> to vector<8x32xf32>
    %107 = arith.mulf %106, %71 : vector<8x32xf32>
    %108 = vector.extract_strided_slice %103 {offsets = [0, 0], sizes = [8, 32], strides = [1, 1]} : vector<8x128xf32> to vector<8x32xf32>
    %109 = arith.mulf %108, %105 : vector<8x32xf32>
    %110 = arith.addf %107, %109 : vector<8x32xf32>
    %111 = vector.extract_strided_slice %103 {offsets = [0, 96], sizes = [8, 32], strides = [1, 1]} : vector<8x128xf32> to vector<8x32xf32>
    %112 = math.tanh %110 : vector<8x32xf32>
    %113 = arith.mulf %111, %112 : vector<8x32xf32>
    %114 = arith.negf %98 : vector<8x128xf32>
    %115 = math.exp %114 : vector<8x128xf32>
    %cst_20 = arith.constant 1.000000e+00 : f32
    %116 = vector.broadcast %cst_20 : f32 to vector<8x128xf32>
    %117 = arith.addf %116, %115 : vector<8x128xf32>
    %118 = arith.divf %116, %117 : vector<8x128xf32>
    %119 = vector.extract_strided_slice %98 {offsets = [0, 64], sizes = [8, 32], strides = [1, 1]} : vector<8x128xf32> to vector<8x32xf32>
    %120 = math.tanh %119 : vector<8x32xf32>
    %121 = vector.extract_strided_slice %118 {offsets = [0, 32], sizes = [8, 32], strides = [1, 1]} : vector<8x128xf32> to vector<8x32xf32>
    %122 = arith.mulf %121, %86 : vector<8x32xf32>
    %123 = vector.extract_strided_slice %118 {offsets = [0, 0], sizes = [8, 32], strides = [1, 1]} : vector<8x128xf32> to vector<8x32xf32>
    %124 = arith.mulf %123, %120 : vector<8x32xf32>
    %125 = arith.addf %122, %124 : vector<8x32xf32>
    %126 = vector.extract_strided_slice %118 {offsets = [0, 96], sizes = [8, 32], strides = [1, 1]} : vector<8x128xf32> to vector<8x32xf32>
    %127 = math.tanh %125 : vector<8x32xf32>
    %128 = arith.mulf %126, %127 : vector<8x32xf32>
    %129 = tpu.concatenate %113, %128 in 0 : vector<8x32xf32>, vector<8x32xf32> -> vector<16x32xf32>
    %130 = arith.truncf %129 : vector<16x32xf32> to vector<16x32xbf16>
    %cst_21 = arith.constant dense<0.000000e+00> : vector<16x256xf32>
    %131 = tpu.matmul %130, %7, %cst_21 {dimension_numbers = #tpu.dot_dimension_numbers<[1], [0], [0], [1], [0, 0, 1, 1], [], []>} : vector<16x32xbf16>, vector<32x256xbf16>, vector<16x256xf32> -> vector<16x256xf32>
    %132 = vector.extract_strided_slice %6 {offsets = [24, 0], sizes = [8, 128], strides = [1, 1]} : vector<64x256xf32> to vector<8x128xf32>
    %133 = vector.extract_strided_slice %131 {offsets = [0, 0], sizes = [8, 128], strides = [1, 1]} : vector<16x256xf32> to vector<8x128xf32>
    %134 = arith.addf %132, %133 : vector<8x128xf32>
    %135 = vector.extract_strided_slice %6 {offsets = [32, 128], sizes = [8, 128], strides = [1, 1]} : vector<64x256xf32> to vector<8x128xf32>
    %136 = vector.extract_strided_slice %131 {offsets = [8, 128], sizes = [8, 128], strides = [1, 1]} : vector<16x256xf32> to vector<8x128xf32>
    %137 = arith.addf %135, %136 : vector<8x128xf32>
    %138 = arith.negf %134 : vector<8x128xf32>
    %139 = math.exp %138 : vector<8x128xf32>
    %cst_22 = arith.constant 1.000000e+00 : f32
    %140 = vector.broadcast %cst_22 : f32 to vector<8x128xf32>
    %141 = arith.addf %140, %139 : vector<8x128xf32>
    %142 = arith.divf %140, %141 : vector<8x128xf32>
    %143 = vector.extract_strided_slice %134 {offsets = [0, 64], sizes = [8, 32], strides = [1, 1]} : vector<8x128xf32> to vector<8x32xf32>
    %144 = math.tanh %143 : vector<8x32xf32>
    %145 = vector.extract_strided_slice %142 {offsets = [0, 32], sizes = [8, 32], strides = [1, 1]} : vector<8x128xf32> to vector<8x32xf32>
    %146 = arith.mulf %145, %110 : vector<8x32xf32>
    %147 = vector.extract_strided_slice %142 {offsets = [0, 0], sizes = [8, 32], strides = [1, 1]} : vector<8x128xf32> to vector<8x32xf32>
    %148 = arith.mulf %147, %144 : vector<8x32xf32>
    %149 = arith.addf %146, %148 : vector<8x32xf32>
    %150 = vector.extract_strided_slice %142 {offsets = [0, 96], sizes = [8, 32], strides = [1, 1]} : vector<8x128xf32> to vector<8x32xf32>
    %151 = math.tanh %149 : vector<8x32xf32>
    %152 = arith.mulf %150, %151 : vector<8x32xf32>
    %153 = arith.negf %137 : vector<8x128xf32>
    %154 = math.exp %153 : vector<8x128xf32>
    %cst_23 = arith.constant 1.000000e+00 : f32
    %155 = vector.broadcast %cst_23 : f32 to vector<8x128xf32>
    %156 = arith.addf %155, %154 : vector<8x128xf32>
    %157 = arith.divf %155, %156 : vector<8x128xf32>
    %158 = vector.extract_strided_slice %137 {offsets = [0, 64], sizes = [8, 32], strides = [1, 1]} : vector<8x128xf32> to vector<8x32xf32>
    %159 = math.tanh %158 : vector<8x32xf32>
    %160 = vector.extract_strided_slice %157 {offsets = [0, 32], sizes = [8, 32], strides = [1, 1]} : vector<8x128xf32> to vector<8x32xf32>
    %161 = arith.mulf %160, %125 : vector<8x32xf32>
    %162 = vector.extract_strided_slice %157 {offsets = [0, 0], sizes = [8, 32], strides = [1, 1]} : vector<8x128xf32> to vector<8x32xf32>
    %163 = arith.mulf %162, %159 : vector<8x32xf32>
    %164 = arith.addf %161, %163 : vector<8x32xf32>
    %165 = vector.extract_strided_slice %157 {offsets = [0, 96], sizes = [8, 32], strides = [1, 1]} : vector<8x128xf32> to vector<8x32xf32>
    %166 = math.tanh %164 : vector<8x32xf32>
    %167 = arith.mulf %165, %166 : vector<8x32xf32>
    %168 = tpu.concatenate %152, %167 in 0 : vector<8x32xf32>, vector<8x32xf32> -> vector<16x32xf32>
    %169 = arith.truncf %168 : vector<16x32xf32> to vector<16x32xbf16>
    %cst_24 = arith.constant dense<0.000000e+00> : vector<16x256xf32>
    %170 = tpu.matmul %169, %7, %cst_24 {dimension_numbers = #tpu.dot_dimension_numbers<[1], [0], [0], [1], [0, 0, 1, 1], [], []>} : vector<16x32xbf16>, vector<32x256xbf16>, vector<16x256xf32> -> vector<16x256xf32>
    %171 = vector.extract_strided_slice %6 {offsets = [32, 0], sizes = [8, 128], strides = [1, 1]} : vector<64x256xf32> to vector<8x128xf32>
    %172 = vector.extract_strided_slice %170 {offsets = [0, 0], sizes = [8, 128], strides = [1, 1]} : vector<16x256xf32> to vector<8x128xf32>
    %173 = arith.addf %171, %172 : vector<8x128xf32>
    %174 = vector.extract_strided_slice %6 {offsets = [24, 128], sizes = [8, 128], strides = [1, 1]} : vector<64x256xf32> to vector<8x128xf32>
    %175 = vector.extract_strided_slice %170 {offsets = [8, 128], sizes = [8, 128], strides = [1, 1]} : vector<16x256xf32> to vector<8x128xf32>
    %176 = arith.addf %174, %175 : vector<8x128xf32>
    %177 = arith.negf %173 : vector<8x128xf32>
    %178 = math.exp %177 : vector<8x128xf32>
    %cst_25 = arith.constant 1.000000e+00 : f32
    %179 = vector.broadcast %cst_25 : f32 to vector<8x128xf32>
    %180 = arith.addf %179, %178 : vector<8x128xf32>
    %181 = arith.divf %179, %180 : vector<8x128xf32>
    %182 = vector.extract_strided_slice %173 {offsets = [0, 64], sizes = [8, 32], strides = [1, 1]} : vector<8x128xf32> to vector<8x32xf32>
    %183 = math.tanh %182 : vector<8x32xf32>
    %184 = vector.extract_strided_slice %181 {offsets = [0, 32], sizes = [8, 32], strides = [1, 1]} : vector<8x128xf32> to vector<8x32xf32>
    %185 = arith.mulf %184, %149 : vector<8x32xf32>
    %186 = vector.extract_strided_slice %181 {offsets = [0, 0], sizes = [8, 32], strides = [1, 1]} : vector<8x128xf32> to vector<8x32xf32>
    %187 = arith.mulf %186, %183 : vector<8x32xf32>
    %188 = arith.addf %185, %187 : vector<8x32xf32>
    %189 = vector.extract_strided_slice %181 {offsets = [0, 96], sizes = [8, 32], strides = [1, 1]} : vector<8x128xf32> to vector<8x32xf32>
    %190 = math.tanh %188 : vector<8x32xf32>
    %191 = arith.mulf %189, %190 : vector<8x32xf32>
    %192 = arith.negf %176 : vector<8x128xf32>
    %193 = math.exp %192 : vector<8x128xf32>
    %cst_26 = arith.constant 1.000000e+00 : f32
    %194 = vector.broadcast %cst_26 : f32 to vector<8x128xf32>
    %195 = arith.addf %194, %193 : vector<8x128xf32>
    %196 = arith.divf %194, %195 : vector<8x128xf32>
    %197 = vector.extract_strided_slice %176 {offsets = [0, 64], sizes = [8, 32], strides = [1, 1]} : vector<8x128xf32> to vector<8x32xf32>
    %198 = math.tanh %197 : vector<8x32xf32>
    %199 = vector.extract_strided_slice %196 {offsets = [0, 32], sizes = [8, 32], strides = [1, 1]} : vector<8x128xf32> to vector<8x32xf32>
    %200 = arith.mulf %199, %164 : vector<8x32xf32>
    %201 = vector.extract_strided_slice %196 {offsets = [0, 0], sizes = [8, 32], strides = [1, 1]} : vector<8x128xf32> to vector<8x32xf32>
    %202 = arith.mulf %201, %198 : vector<8x32xf32>
    %203 = arith.addf %200, %202 : vector<8x32xf32>
    %204 = vector.extract_strided_slice %196 {offsets = [0, 96], sizes = [8, 32], strides = [1, 1]} : vector<8x128xf32> to vector<8x32xf32>
    %205 = math.tanh %203 : vector<8x32xf32>
    %206 = arith.mulf %204, %205 : vector<8x32xf32>
    %207 = tpu.concatenate %191, %206 in 0 : vector<8x32xf32>, vector<8x32xf32> -> vector<16x32xf32>
    %208 = arith.truncf %207 : vector<16x32xf32> to vector<16x32xbf16>
    %cst_27 = arith.constant dense<0.000000e+00> : vector<16x256xf32>
    %209 = tpu.matmul %208, %7, %cst_27 {dimension_numbers = #tpu.dot_dimension_numbers<[1], [0], [0], [1], [0, 0, 1, 1], [], []>} : vector<16x32xbf16>, vector<32x256xbf16>, vector<16x256xf32> -> vector<16x256xf32>
    %210 = vector.extract_strided_slice %6 {offsets = [40, 0], sizes = [8, 128], strides = [1, 1]} : vector<64x256xf32> to vector<8x128xf32>
    %211 = vector.extract_strided_slice %209 {offsets = [0, 0], sizes = [8, 128], strides = [1, 1]} : vector<16x256xf32> to vector<8x128xf32>
    %212 = arith.addf %210, %211 : vector<8x128xf32>
    %213 = vector.extract_strided_slice %6 {offsets = [16, 128], sizes = [8, 128], strides = [1, 1]} : vector<64x256xf32> to vector<8x128xf32>
    %214 = vector.extract_strided_slice %209 {offsets = [8, 128], sizes = [8, 128], strides = [1, 1]} : vector<16x256xf32> to vector<8x128xf32>
    %215 = arith.addf %213, %214 : vector<8x128xf32>
    %216 = arith.negf %212 : vector<8x128xf32>
    %217 = math.exp %216 : vector<8x128xf32>
    %cst_28 = arith.constant 1.000000e+00 : f32
    %218 = vector.broadcast %cst_28 : f32 to vector<8x128xf32>
    %219 = arith.addf %218, %217 : vector<8x128xf32>
    %220 = arith.divf %218, %219 : vector<8x128xf32>
    %221 = vector.extract_strided_slice %212 {offsets = [0, 64], sizes = [8, 32], strides = [1, 1]} : vector<8x128xf32> to vector<8x32xf32>
    %222 = math.tanh %221 : vector<8x32xf32>
    %223 = vector.extract_strided_slice %220 {offsets = [0, 32], sizes = [8, 32], strides = [1, 1]} : vector<8x128xf32> to vector<8x32xf32>
    %224 = arith.mulf %223, %188 : vector<8x32xf32>
    %225 = vector.extract_strided_slice %220 {offsets = [0, 0], sizes = [8, 32], strides = [1, 1]} : vector<8x128xf32> to vector<8x32xf32>
    %226 = arith.mulf %225, %222 : vector<8x32xf32>
    %227 = arith.addf %224, %226 : vector<8x32xf32>
    %228 = vector.extract_strided_slice %220 {offsets = [0, 96], sizes = [8, 32], strides = [1, 1]} : vector<8x128xf32> to vector<8x32xf32>
    %229 = math.tanh %227 : vector<8x32xf32>
    %230 = arith.mulf %228, %229 : vector<8x32xf32>
    %231 = arith.negf %215 : vector<8x128xf32>
    %232 = math.exp %231 : vector<8x128xf32>
    %cst_29 = arith.constant 1.000000e+00 : f32
    %233 = vector.broadcast %cst_29 : f32 to vector<8x128xf32>
    %234 = arith.addf %233, %232 : vector<8x128xf32>
    %235 = arith.divf %233, %234 : vector<8x128xf32>
    %236 = vector.extract_strided_slice %215 {offsets = [0, 64], sizes = [8, 32], strides = [1, 1]} : vector<8x128xf32> to vector<8x32xf32>
    %237 = math.tanh %236 : vector<8x32xf32>
    %238 = vector.extract_strided_slice %235 {offsets = [0, 32], sizes = [8, 32], strides = [1, 1]} : vector<8x128xf32> to vector<8x32xf32>
    %239 = arith.mulf %238, %203 : vector<8x32xf32>
    %240 = vector.extract_strided_slice %235 {offsets = [0, 0], sizes = [8, 32], strides = [1, 1]} : vector<8x128xf32> to vector<8x32xf32>
    %241 = arith.mulf %240, %237 : vector<8x32xf32>
    %242 = arith.addf %239, %241 : vector<8x32xf32>
    %243 = vector.extract_strided_slice %235 {offsets = [0, 96], sizes = [8, 32], strides = [1, 1]} : vector<8x128xf32> to vector<8x32xf32>
    %244 = math.tanh %242 : vector<8x32xf32>
    %245 = arith.mulf %243, %244 : vector<8x32xf32>
    %246 = tpu.concatenate %230, %245 in 0 : vector<8x32xf32>, vector<8x32xf32> -> vector<16x32xf32>
    %247 = arith.truncf %246 : vector<16x32xf32> to vector<16x32xbf16>
    %cst_30 = arith.constant dense<0.000000e+00> : vector<16x256xf32>
    %248 = tpu.matmul %247, %7, %cst_30 {dimension_numbers = #tpu.dot_dimension_numbers<[1], [0], [0], [1], [0, 0, 1, 1], [], []>} : vector<16x32xbf16>, vector<32x256xbf16>, vector<16x256xf32> -> vector<16x256xf32>
    %249 = vector.extract_strided_slice %6 {offsets = [48, 0], sizes = [8, 128], strides = [1, 1]} : vector<64x256xf32> to vector<8x128xf32>
    %250 = vector.extract_strided_slice %248 {offsets = [0, 0], sizes = [8, 128], strides = [1, 1]} : vector<16x256xf32> to vector<8x128xf32>
    %251 = arith.addf %249, %250 : vector<8x128xf32>
    %252 = vector.extract_strided_slice %6 {offsets = [8, 128], sizes = [8, 128], strides = [1, 1]} : vector<64x256xf32> to vector<8x128xf32>
    %253 = vector.extract_strided_slice %248 {offsets = [8, 128], sizes = [8, 128], strides = [1, 1]} : vector<16x256xf32> to vector<8x128xf32>
    %254 = arith.addf %252, %253 : vector<8x128xf32>
    %255 = arith.negf %251 : vector<8x128xf32>
    %256 = math.exp %255 : vector<8x128xf32>
    %cst_31 = arith.constant 1.000000e+00 : f32
    %257 = vector.broadcast %cst_31 : f32 to vector<8x128xf32>
    %258 = arith.addf %257, %256 : vector<8x128xf32>
    %259 = arith.divf %257, %258 : vector<8x128xf32>
    %260 = vector.extract_strided_slice %251 {offsets = [0, 64], sizes = [8, 32], strides = [1, 1]} : vector<8x128xf32> to vector<8x32xf32>
    %261 = math.tanh %260 : vector<8x32xf32>
    %262 = vector.extract_strided_slice %259 {offsets = [0, 32], sizes = [8, 32], strides = [1, 1]} : vector<8x128xf32> to vector<8x32xf32>
    %263 = arith.mulf %262, %227 : vector<8x32xf32>
    %264 = vector.extract_strided_slice %259 {offsets = [0, 0], sizes = [8, 32], strides = [1, 1]} : vector<8x128xf32> to vector<8x32xf32>
    %265 = arith.mulf %264, %261 : vector<8x32xf32>
    %266 = arith.addf %263, %265 : vector<8x32xf32>
    %267 = vector.extract_strided_slice %259 {offsets = [0, 96], sizes = [8, 32], strides = [1, 1]} : vector<8x128xf32> to vector<8x32xf32>
    %268 = math.tanh %266 : vector<8x32xf32>
    %269 = arith.mulf %267, %268 : vector<8x32xf32>
    %270 = arith.negf %254 : vector<8x128xf32>
    %271 = math.exp %270 : vector<8x128xf32>
    %cst_32 = arith.constant 1.000000e+00 : f32
    %272 = vector.broadcast %cst_32 : f32 to vector<8x128xf32>
    %273 = arith.addf %272, %271 : vector<8x128xf32>
    %274 = arith.divf %272, %273 : vector<8x128xf32>
    %275 = vector.extract_strided_slice %254 {offsets = [0, 64], sizes = [8, 32], strides = [1, 1]} : vector<8x128xf32> to vector<8x32xf32>
    %276 = math.tanh %275 : vector<8x32xf32>
    %277 = vector.extract_strided_slice %274 {offsets = [0, 32], sizes = [8, 32], strides = [1, 1]} : vector<8x128xf32> to vector<8x32xf32>
    %278 = arith.mulf %277, %242 : vector<8x32xf32>
    %279 = vector.extract_strided_slice %274 {offsets = [0, 0], sizes = [8, 32], strides = [1, 1]} : vector<8x128xf32> to vector<8x32xf32>
    %280 = arith.mulf %279, %276 : vector<8x32xf32>
    %281 = arith.addf %278, %280 : vector<8x32xf32>
    %282 = vector.extract_strided_slice %274 {offsets = [0, 96], sizes = [8, 32], strides = [1, 1]} : vector<8x128xf32> to vector<8x32xf32>
    %283 = math.tanh %281 : vector<8x32xf32>
    %284 = arith.mulf %282, %283 : vector<8x32xf32>
    %285 = tpu.concatenate %269, %284 in 0 : vector<8x32xf32>, vector<8x32xf32> -> vector<16x32xf32>
    %286 = arith.truncf %285 : vector<16x32xf32> to vector<16x32xbf16>
    %cst_33 = arith.constant dense<0.000000e+00> : vector<16x256xf32>
    %287 = tpu.matmul %286, %7, %cst_33 {dimension_numbers = #tpu.dot_dimension_numbers<[1], [0], [0], [1], [0, 0, 1, 1], [], []>} : vector<16x32xbf16>, vector<32x256xbf16>, vector<16x256xf32> -> vector<16x256xf32>
    %288 = vector.extract_strided_slice %6 {offsets = [56, 0], sizes = [8, 128], strides = [1, 1]} : vector<64x256xf32> to vector<8x128xf32>
    %289 = vector.extract_strided_slice %287 {offsets = [0, 0], sizes = [8, 128], strides = [1, 1]} : vector<16x256xf32> to vector<8x128xf32>
    %290 = arith.addf %288, %289 : vector<8x128xf32>
    %291 = vector.extract_strided_slice %6 {offsets = [0, 128], sizes = [8, 128], strides = [1, 1]} : vector<64x256xf32> to vector<8x128xf32>
    %292 = vector.extract_strided_slice %287 {offsets = [8, 128], sizes = [8, 128], strides = [1, 1]} : vector<16x256xf32> to vector<8x128xf32>
    %293 = arith.addf %291, %292 : vector<8x128xf32>
    %294 = arith.negf %290 : vector<8x128xf32>
    %295 = math.exp %294 : vector<8x128xf32>
    %cst_34 = arith.constant 1.000000e+00 : f32
    %296 = vector.broadcast %cst_34 : f32 to vector<8x128xf32>
    %297 = arith.addf %296, %295 : vector<8x128xf32>
    %298 = arith.divf %296, %297 : vector<8x128xf32>
    %299 = vector.extract_strided_slice %290 {offsets = [0, 64], sizes = [8, 32], strides = [1, 1]} : vector<8x128xf32> to vector<8x32xf32>
    %300 = math.tanh %299 : vector<8x32xf32>
    %301 = vector.extract_strided_slice %298 {offsets = [0, 32], sizes = [8, 32], strides = [1, 1]} : vector<8x128xf32> to vector<8x32xf32>
    %302 = arith.mulf %301, %266 : vector<8x32xf32>
    %303 = vector.extract_strided_slice %298 {offsets = [0, 0], sizes = [8, 32], strides = [1, 1]} : vector<8x128xf32> to vector<8x32xf32>
    %304 = arith.mulf %303, %300 : vector<8x32xf32>
    %305 = arith.addf %302, %304 : vector<8x32xf32>
    %306 = vector.extract_strided_slice %298 {offsets = [0, 96], sizes = [8, 32], strides = [1, 1]} : vector<8x128xf32> to vector<8x32xf32>
    %307 = math.tanh %305 : vector<8x32xf32>
    %308 = arith.mulf %306, %307 : vector<8x32xf32>
    %309 = arith.negf %293 : vector<8x128xf32>
    %310 = math.exp %309 : vector<8x128xf32>
    %cst_35 = arith.constant 1.000000e+00 : f32
    %311 = vector.broadcast %cst_35 : f32 to vector<8x128xf32>
    %312 = arith.addf %311, %310 : vector<8x128xf32>
    %313 = arith.divf %311, %312 : vector<8x128xf32>
    %314 = vector.extract_strided_slice %293 {offsets = [0, 64], sizes = [8, 32], strides = [1, 1]} : vector<8x128xf32> to vector<8x32xf32>
    %315 = math.tanh %314 : vector<8x32xf32>
    %316 = vector.extract_strided_slice %313 {offsets = [0, 32], sizes = [8, 32], strides = [1, 1]} : vector<8x128xf32> to vector<8x32xf32>
    %317 = arith.mulf %316, %281 : vector<8x32xf32>
    %318 = vector.extract_strided_slice %313 {offsets = [0, 0], sizes = [8, 32], strides = [1, 1]} : vector<8x128xf32> to vector<8x32xf32>
    %319 = arith.mulf %318, %315 : vector<8x32xf32>
    %320 = arith.addf %317, %319 : vector<8x32xf32>
    %321 = vector.extract_strided_slice %313 {offsets = [0, 96], sizes = [8, 32], strides = [1, 1]} : vector<8x128xf32> to vector<8x32xf32>
    %322 = math.tanh %320 : vector<8x32xf32>
    %323 = arith.mulf %321, %322 : vector<8x32xf32>
    %324 = tpu.concatenate %35, %323 in 1 : vector<8x32xf32>, vector<8x32xf32> -> vector<8x64xf32>
    %325 = tpu.concatenate %74, %284 in 1 : vector<8x32xf32>, vector<8x32xf32> -> vector<8x64xf32>
    %326 = tpu.concatenate %113, %245 in 1 : vector<8x32xf32>, vector<8x32xf32> -> vector<8x64xf32>
    %327 = tpu.concatenate %152, %206 in 1 : vector<8x32xf32>, vector<8x32xf32> -> vector<8x64xf32>
    %328 = tpu.concatenate %191, %167 in 1 : vector<8x32xf32>, vector<8x32xf32> -> vector<8x64xf32>
    %329 = tpu.concatenate %230, %128 in 1 : vector<8x32xf32>, vector<8x32xf32> -> vector<8x64xf32>
    %330 = tpu.concatenate %269, %89 in 1 : vector<8x32xf32>, vector<8x32xf32> -> vector<8x64xf32>
    %331 = tpu.concatenate %308, %50 in 1 : vector<8x32xf32>, vector<8x32xf32> -> vector<8x64xf32>
    %332 = tpu.concatenate %308, %323 in 1 : vector<8x32xf32>, vector<8x32xf32> -> vector<8x64xf32>
    %c0_36 = arith.constant 0 : index
    %c0_37 = arith.constant 0 : index
    %333 = vector.load %arg5[%c0_36, %c0_37] : memref<64x32xf32, #tpu.memory_space<vmem>>, vector<64x32xf32>
    %cst_38 = arith.constant dense<0.000000e+00> : vector<8x32xf32>
    %334 = tpu.matmul %332, %333, %cst_38 {dimension_numbers = #tpu.dot_dimension_numbers<[1], [0], [0], [1], [0, 0, 1, 1], [], []>} : vector<8x64xf32>, vector<64x32xf32>, vector<8x32xf32> -> vector<8x32xf32>
    %c0_39 = arith.constant 0 : index
    %c0_40 = arith.constant 0 : index
    %335 = vector.load %arg6[%c0_39, %c0_40] : memref<1x32xf32, #tpu.memory_space<vmem>>, vector<1x32xf32>
    %336 = vector.broadcast %335 : vector<1x32xf32> to vector<8x32xf32>
    %337 = arith.addf %334, %336 : vector<8x32xf32>
    %338 = tpu.concatenate %305, %320 in 1 : vector<8x32xf32>, vector<8x32xf32> -> vector<8x64xf32>
    %c0_41 = arith.constant 0 : index
    %c0_42 = arith.constant 0 : index
    %339 = vector.load %arg7[%c0_41, %c0_42] : memref<64x32xf32, #tpu.memory_space<vmem>>, vector<64x32xf32>
    %cst_43 = arith.constant dense<0.000000e+00> : vector<8x32xf32>
    %340 = tpu.matmul %338, %339, %cst_43 {dimension_numbers = #tpu.dot_dimension_numbers<[1], [0], [0], [1], [0, 0, 1, 1], [], []>} : vector<8x64xf32>, vector<64x32xf32>, vector<8x32xf32> -> vector<8x32xf32>
    %c0_44 = arith.constant 0 : index
    %c0_45 = arith.constant 0 : index
    %341 = vector.load %arg8[%c0_44, %c0_45] : memref<1x32xf32, #tpu.memory_space<vmem>>, vector<1x32xf32>
    %342 = vector.broadcast %341 : vector<1x32xf32> to vector<8x32xf32>
    %343 = arith.addf %340, %342 : vector<8x32xf32>
    %c0_46 = arith.constant 0 : index
    %c0_47 = arith.constant 0 : index
    %344 = vector.load %arg10[%c0_46, %c0_47] : memref<1x64xf32, #tpu.memory_space<vmem>>, vector<1x64xf32>
    %345 = vector.broadcast %344 : vector<1x64xf32> to vector<8x64xf32>
    %346 = arith.mulf %324, %345 : vector<8x64xf32>
    %cst_48 = arith.constant dense<0.000000e+00> : vector<8xf32>
    %347 = vector.multi_reduction <add>, %346, %cst_48 [1] : vector<8x64xf32> to vector<8xf32>
    %348 = vector.shape_cast %347 : vector<8xf32> to vector<8x1xf32>
    %349 = vector.broadcast %344 : vector<1x64xf32> to vector<8x64xf32>
    %350 = arith.mulf %325, %349 : vector<8x64xf32>
    %cst_49 = arith.constant dense<0.000000e+00> : vector<8xf32>
    %351 = vector.multi_reduction <add>, %350, %cst_49 [1] : vector<8x64xf32> to vector<8xf32>
    %352 = vector.shape_cast %351 : vector<8xf32> to vector<8x1xf32>
    %353 = vector.broadcast %344 : vector<1x64xf32> to vector<8x64xf32>
    %354 = arith.mulf %326, %353 : vector<8x64xf32>
    %cst_50 = arith.constant dense<0.000000e+00> : vector<8xf32>
    %355 = vector.multi_reduction <add>, %354, %cst_50 [1] : vector<8x64xf32> to vector<8xf32>
    %356 = vector.shape_cast %355 : vector<8xf32> to vector<8x1xf32>
    %357 = vector.broadcast %344 : vector<1x64xf32> to vector<8x64xf32>
    %358 = arith.mulf %327, %357 : vector<8x64xf32>
    %cst_51 = arith.constant dense<0.000000e+00> : vector<8xf32>
    %359 = vector.multi_reduction <add>, %358, %cst_51 [1] : vector<8x64xf32> to vector<8xf32>
    %360 = vector.shape_cast %359 : vector<8xf32> to vector<8x1xf32>
    %361 = vector.broadcast %344 : vector<1x64xf32> to vector<8x64xf32>
    %362 = arith.mulf %328, %361 : vector<8x64xf32>
    %cst_52 = arith.constant dense<0.000000e+00> : vector<8xf32>
    %363 = vector.multi_reduction <add>, %362, %cst_52 [1] : vector<8x64xf32> to vector<8xf32>
    %364 = vector.shape_cast %363 : vector<8xf32> to vector<8x1xf32>
    %365 = vector.broadcast %344 : vector<1x64xf32> to vector<8x64xf32>
    %366 = arith.mulf %329, %365 : vector<8x64xf32>
    %cst_53 = arith.constant dense<0.000000e+00> : vector<8xf32>
    %367 = vector.multi_reduction <add>, %366, %cst_53 [1] : vector<8x64xf32> to vector<8xf32>
    %368 = vector.shape_cast %367 : vector<8xf32> to vector<8x1xf32>
    %369 = vector.broadcast %344 : vector<1x64xf32> to vector<8x64xf32>
    %370 = arith.mulf %330, %369 : vector<8x64xf32>
    %cst_54 = arith.constant dense<0.000000e+00> : vector<8xf32>
    %371 = vector.multi_reduction <add>, %370, %cst_54 [1] : vector<8x64xf32> to vector<8xf32>
    %372 = vector.shape_cast %371 : vector<8xf32> to vector<8x1xf32>
    %373 = vector.broadcast %344 : vector<1x64xf32> to vector<8x64xf32>
    %374 = arith.mulf %331, %373 : vector<8x64xf32>
    %cst_55 = arith.constant dense<0.000000e+00> : vector<8xf32>
    %375 = vector.multi_reduction <add>, %374, %cst_55 [1] : vector<8x64xf32> to vector<8xf32>
    %376 = vector.shape_cast %375 : vector<8xf32> to vector<8x1xf32>
    %377 = tpu.concatenate %348, %352, %356, %360, %364, %368, %372, %376 in 1 : vector<8x1xf32>, vector<8x1xf32>, vector<8x1xf32>, vector<8x1xf32>, vector<8x1xf32>, vector<8x1xf32>, vector<8x1xf32>, vector<8x1xf32> -> vector<8x8xf32>
    %c0_56 = arith.constant 0 : index
    %c0_57 = arith.constant 0 : index
    %378 = vector.load %arg11[%c0_56, %c0_57] : memref<1x1xf32, #tpu.memory_space<vmem>>, vector<1x1xf32>
    %379 = vector.extract %378[0, 0] : f32 from vector<1x1xf32>
    %380 = vector.broadcast %379 : f32 to vector<8x8xf32>
    %381 = arith.addf %377, %380 : vector<8x8xf32>
    %c0_58 = arith.constant 0 : index
    %c0_59 = arith.constant 0 : index
    %c0_60 = arith.constant 0 : index
    %382 = vector.load %arg1[%c0_58, %c0_59, %c0_60] : memref<5x8x32xf32, #tpu.memory_space<vmem>>, vector<5x8x32xf32>
    %383 = vector.shape_cast %382 : vector<5x8x32xf32> to vector<40x32xf32>
    %c0_61 = arith.constant 0 : index
    %c0_62 = arith.constant 0 : index
    %384 = vector.load %arg13[%c0_61, %c0_62] : memref<32x128xf32, #tpu.memory_space<vmem>>, vector<32x128xf32>
    %cst_63 = arith.constant dense<0.000000e+00> : vector<40x128xf32>
    %385 = tpu.matmul %383, %384, %cst_63 {dimension_numbers = #tpu.dot_dimension_numbers<[1], [0], [0], [1], [0, 0, 1, 1], [], []>} : vector<40x32xf32>, vector<32x128xf32>, vector<40x128xf32> -> vector<40x128xf32>
    %c0_64 = arith.constant 0 : index
    %c0_65 = arith.constant 0 : index
    %386 = vector.load %arg14[%c0_64, %c0_65] : memref<1x128xf32, #tpu.memory_space<vmem>>, vector<1x128xf32>
    %387 = vector.broadcast %386 : vector<1x128xf32> to vector<40x128xf32>
    %388 = arith.addf %385, %387 : vector<40x128xf32>
    %c0_66 = arith.constant 0 : index
    %c0_67 = arith.constant 0 : index
    %389 = vector.load %arg12[%c0_66, %c0_67] : memref<96x128xbf16, #tpu.memory_space<vmem>>, vector<96x128xbf16>
    %c0_68 = arith.constant 0 : index
    %c0_69 = arith.constant 0 : index
    %390 = vector.load %arg9[%c0_68, %c0_69] : memref<1x32xf32, #tpu.memory_space<vmem>>, vector<1x32xf32>
    %391 = vector.broadcast %390 : vector<1x32xf32> to vector<8x32xf32>
    %392 = arith.mulf %337, %391 : vector<8x32xf32>
    %cst_70 = arith.constant dense<0.000000e+00> : vector<8xf32>
    %393 = vector.multi_reduction <add>, %392, %cst_70 [1] : vector<8x32xf32> to vector<8xf32>
    %394 = vector.shape_cast %393 : vector<8xf32> to vector<8x1xf32>
    %395 = vector.broadcast %394 : vector<8x1xf32> to vector<8x8xf32>
    %396 = arith.addf %381, %395 : vector<8x8xf32>
    %cst_71 = arith.constant 0.000000e+00 : f32
    %397 = vector.broadcast %cst_71 : f32 to vector<8x8xf32>
    %398 = arith.maximumf %396, %397 : vector<8x8xf32>
    %cst_72 = arith.constant dense<0xFF800000> : vector<8xf32>
    %399 = vector.multi_reduction <maximumf>, %398, %cst_72 [1] : vector<8x8xf32> to vector<8xf32>
    %400 = vector.shape_cast %399 : vector<8xf32> to vector<8x1xf32>
    %401 = vector.broadcast %400 : vector<8x1xf32> to vector<8x8xf32>
    %402 = arith.subf %398, %401 : vector<8x8xf32>
    %403 = math.exp %402 : vector<8x8xf32>
    %cst_73 = arith.constant dense<0.000000e+00> : vector<8xf32>
    %404 = vector.multi_reduction <add>, %403, %cst_73 [1] : vector<8x8xf32> to vector<8xf32>
    %405 = vector.shape_cast %404 : vector<8xf32> to vector<8x1xf32>
    %406 = tpu.reciprocal %405 {approx = true} : vector<8x1xf32> -> vector<8x1xf32>
    %407 = vector.broadcast %406 : vector<8x1xf32> to vector<8x8xf32>
    %408 = arith.mulf %403, %407 : vector<8x8xf32>
    %409 = vector.extract_strided_slice %408 {offsets = [0, 0], sizes = [8, 1], strides = [1, 1]} : vector<8x8xf32> to vector<8x1xf32>
    %410 = vector.broadcast %409 : vector<8x1xf32> to vector<8x64xf32>
    %411 = arith.mulf %410, %324 : vector<8x64xf32>
    %412 = vector.extract_strided_slice %408 {offsets = [0, 1], sizes = [8, 1], strides = [1, 1]} : vector<8x8xf32> to vector<8x1xf32>
    %413 = vector.broadcast %412 : vector<8x1xf32> to vector<8x64xf32>
    %414 = arith.mulf %413, %325 : vector<8x64xf32>
    %415 = arith.addf %411, %414 : vector<8x64xf32>
    %416 = vector.extract_strided_slice %408 {offsets = [0, 2], sizes = [8, 1], strides = [1, 1]} : vector<8x8xf32> to vector<8x1xf32>
    %417 = vector.broadcast %416 : vector<8x1xf32> to vector<8x64xf32>
    %418 = arith.mulf %417, %326 : vector<8x64xf32>
    %419 = arith.addf %415, %418 : vector<8x64xf32>
    %420 = vector.extract_strided_slice %408 {offsets = [0, 3], sizes = [8, 1], strides = [1, 1]} : vector<8x8xf32> to vector<8x1xf32>
    %421 = vector.broadcast %420 : vector<8x1xf32> to vector<8x64xf32>
    %422 = arith.mulf %421, %327 : vector<8x64xf32>
    %423 = arith.addf %419, %422 : vector<8x64xf32>
    %424 = vector.extract_strided_slice %408 {offsets = [0, 4], sizes = [8, 1], strides = [1, 1]} : vector<8x8xf32> to vector<8x1xf32>
    %425 = vector.broadcast %424 : vector<8x1xf32> to vector<8x64xf32>
    %426 = arith.mulf %425, %328 : vector<8x64xf32>
    %427 = arith.addf %423, %426 : vector<8x64xf32>
    %428 = vector.extract_strided_slice %408 {offsets = [0, 5], sizes = [8, 1], strides = [1, 1]} : vector<8x8xf32> to vector<8x1xf32>
    %429 = vector.broadcast %428 : vector<8x1xf32> to vector<8x64xf32>
    %430 = arith.mulf %429, %329 : vector<8x64xf32>
    %431 = arith.addf %427, %430 : vector<8x64xf32>
    %432 = vector.extract_strided_slice %408 {offsets = [0, 6], sizes = [8, 1], strides = [1, 1]} : vector<8x8xf32> to vector<8x1xf32>
    %433 = vector.broadcast %432 : vector<8x1xf32> to vector<8x64xf32>
    %434 = arith.mulf %433, %330 : vector<8x64xf32>
    %435 = arith.addf %431, %434 : vector<8x64xf32>
    %436 = vector.extract_strided_slice %408 {offsets = [0, 7], sizes = [8, 1], strides = [1, 1]} : vector<8x8xf32> to vector<8x1xf32>
    %437 = vector.broadcast %436 : vector<8x1xf32> to vector<8x64xf32>
    %438 = arith.mulf %437, %331 : vector<8x64xf32>
    %439 = arith.addf %435, %438 : vector<8x64xf32>
    %440 = tpu.concatenate %439, %337 in 1 : vector<8x64xf32>, vector<8x32xf32> -> vector<8x96xf32>
    %441 = arith.truncf %440 : vector<8x96xf32> to vector<8x96xbf16>
    %cst_74 = arith.constant dense<0.000000e+00> : vector<8x128xf32>
    %442 = tpu.matmul %441, %389, %cst_74 {dimension_numbers = #tpu.dot_dimension_numbers<[1], [0], [0], [1], [0, 0, 1, 1], [], []>} : vector<8x96xbf16>, vector<96x128xbf16>, vector<8x128xf32> -> vector<8x128xf32>
    %443 = vector.extract_strided_slice %388 {offsets = [0, 0], sizes = [8, 128], strides = [1, 1]} : vector<40x128xf32> to vector<8x128xf32>
    %444 = arith.addf %442, %443 : vector<8x128xf32>
    %445 = arith.negf %444 : vector<8x128xf32>
    %446 = math.exp %445 : vector<8x128xf32>
    %cst_75 = arith.constant 1.000000e+00 : f32
    %447 = vector.broadcast %cst_75 : f32 to vector<8x128xf32>
    %448 = arith.addf %447, %446 : vector<8x128xf32>
    %449 = arith.divf %447, %448 : vector<8x128xf32>
    %450 = vector.extract_strided_slice %444 {offsets = [0, 64], sizes = [8, 32], strides = [1, 1]} : vector<8x128xf32> to vector<8x32xf32>
    %451 = math.tanh %450 : vector<8x32xf32>
    %452 = vector.extract_strided_slice %449 {offsets = [0, 32], sizes = [8, 32], strides = [1, 1]} : vector<8x128xf32> to vector<8x32xf32>
    %453 = arith.mulf %452, %343 : vector<8x32xf32>
    %454 = vector.extract_strided_slice %449 {offsets = [0, 0], sizes = [8, 32], strides = [1, 1]} : vector<8x128xf32> to vector<8x32xf32>
    %455 = arith.mulf %454, %451 : vector<8x32xf32>
    %456 = arith.addf %453, %455 : vector<8x32xf32>
    %457 = vector.extract_strided_slice %449 {offsets = [0, 96], sizes = [8, 32], strides = [1, 1]} : vector<8x128xf32> to vector<8x32xf32>
    %458 = math.tanh %456 : vector<8x32xf32>
    %459 = arith.mulf %457, %458 : vector<8x32xf32>
    %460 = arith.truncf %459 : vector<8x32xf32> to vector<8x32xbf16>
    %c0_76 = arith.constant 0 : index
    %c0_77 = arith.constant 0 : index
    %c0_78 = arith.constant 0 : index
    %461 = vector.load %arg15[%c0_76, %c0_77, %c0_78] : memref<5x8x32xbf16, #tpu.memory_space<vmem>>, vector<1x8x32xbf16>
    %462 = vector.shape_cast %461 : vector<1x8x32xbf16> to vector<8x32xbf16>
    %463 = vector.shape_cast %460 : vector<8x32xbf16> to vector<1x8x32xbf16>
    tpu.vector_store %arg15[%c0_76, %c0_77, %c0_78], %463 {strides = array<i32>} : memref<5x8x32xbf16, #tpu.memory_space<vmem>>, vector<1x8x32xbf16>,
    %464 = vector.broadcast %390 : vector<1x32xf32> to vector<8x32xf32>
    %465 = arith.mulf %459, %464 : vector<8x32xf32>
    %cst_79 = arith.constant dense<0.000000e+00> : vector<8xf32>
    %466 = vector.multi_reduction <add>, %465, %cst_79 [1] : vector<8x32xf32> to vector<8xf32>
    %467 = vector.shape_cast %466 : vector<8xf32> to vector<8x1xf32>
    %468 = vector.broadcast %467 : vector<8x1xf32> to vector<8x8xf32>
    %469 = arith.addf %381, %468 : vector<8x8xf32>
    %cst_80 = arith.constant 0.000000e+00 : f32
    %470 = vector.broadcast %cst_80 : f32 to vector<8x8xf32>
    %471 = arith.maximumf %469, %470 : vector<8x8xf32>
    %cst_81 = arith.constant dense<0xFF800000> : vector<8xf32>
    %472 = vector.multi_reduction <maximumf>, %471, %cst_81 [1] : vector<8x8xf32> to vector<8xf32>
    %473 = vector.shape_cast %472 : vector<8xf32> to vector<8x1xf32>
    %474 = vector.broadcast %473 : vector<8x1xf32> to vector<8x8xf32>
    %475 = arith.subf %471, %474 : vector<8x8xf32>
    %476 = math.exp %475 : vector<8x8xf32>
    %cst_82 = arith.constant dense<0.000000e+00> : vector<8xf32>
    %477 = vector.multi_reduction <add>, %476, %cst_82 [1] : vector<8x8xf32> to vector<8xf32>
    %478 = vector.shape_cast %477 : vector<8xf32> to vector<8x1xf32>
    %479 = tpu.reciprocal %478 {approx = true} : vector<8x1xf32> -> vector<8x1xf32>
    %480 = vector.broadcast %479 : vector<8x1xf32> to vector<8x8xf32>
    %481 = arith.mulf %476, %480 : vector<8x8xf32>
    %482 = vector.extract_strided_slice %481 {offsets = [0, 0], sizes = [8, 1], strides = [1, 1]} : vector<8x8xf32> to vector<8x1xf32>
    %483 = vector.broadcast %482 : vector<8x1xf32> to vector<8x64xf32>
    %484 = arith.mulf %483, %324 : vector<8x64xf32>
    %485 = vector.extract_strided_slice %481 {offsets = [0, 1], sizes = [8, 1], strides = [1, 1]} : vector<8x8xf32> to vector<8x1xf32>
    %486 = vector.broadcast %485 : vector<8x1xf32> to vector<8x64xf32>
    %487 = arith.mulf %486, %325 : vector<8x64xf32>
    %488 = arith.addf %484, %487 : vector<8x64xf32>
    %489 = vector.extract_strided_slice %481 {offsets = [0, 2], sizes = [8, 1], strides = [1, 1]} : vector<8x8xf32> to vector<8x1xf32>
    %490 = vector.broadcast %489 : vector<8x1xf32> to vector<8x64xf32>
    %491 = arith.mulf %490, %326 : vector<8x64xf32>
    %492 = arith.addf %488, %491 : vector<8x64xf32>
    %493 = vector.extract_strided_slice %481 {offsets = [0, 3], sizes = [8, 1], strides = [1, 1]} : vector<8x8xf32> to vector<8x1xf32>
    %494 = vector.broadcast %493 : vector<8x1xf32> to vector<8x64xf32>
    %495 = arith.mulf %494, %327 : vector<8x64xf32>
    %496 = arith.addf %492, %495 : vector<8x64xf32>
    %497 = vector.extract_strided_slice %481 {offsets = [0, 4], sizes = [8, 1], strides = [1, 1]} : vector<8x8xf32> to vector<8x1xf32>
    %498 = vector.broadcast %497 : vector<8x1xf32> to vector<8x64xf32>
    %499 = arith.mulf %498, %328 : vector<8x64xf32>
    %500 = arith.addf %496, %499 : vector<8x64xf32>
    %501 = vector.extract_strided_slice %481 {offsets = [0, 5], sizes = [8, 1], strides = [1, 1]} : vector<8x8xf32> to vector<8x1xf32>
    %502 = vector.broadcast %501 : vector<8x1xf32> to vector<8x64xf32>
    %503 = arith.mulf %502, %329 : vector<8x64xf32>
    %504 = arith.addf %500, %503 : vector<8x64xf32>
    %505 = vector.extract_strided_slice %481 {offsets = [0, 6], sizes = [8, 1], strides = [1, 1]} : vector<8x8xf32> to vector<8x1xf32>
    %506 = vector.broadcast %505 : vector<8x1xf32> to vector<8x64xf32>
    %507 = arith.mulf %506, %330 : vector<8x64xf32>
    %508 = arith.addf %504, %507 : vector<8x64xf32>
    %509 = vector.extract_strided_slice %481 {offsets = [0, 7], sizes = [8, 1], strides = [1, 1]} : vector<8x8xf32> to vector<8x1xf32>
    %510 = vector.broadcast %509 : vector<8x1xf32> to vector<8x64xf32>
    %511 = arith.mulf %510, %331 : vector<8x64xf32>
    %512 = arith.addf %508, %511 : vector<8x64xf32>
    %513 = tpu.concatenate %512, %459 in 1 : vector<8x64xf32>, vector<8x32xf32> -> vector<8x96xf32>
    %514 = arith.truncf %513 : vector<8x96xf32> to vector<8x96xbf16>
    %cst_83 = arith.constant dense<0.000000e+00> : vector<8x128xf32>
    %515 = tpu.matmul %514, %389, %cst_83 {dimension_numbers = #tpu.dot_dimension_numbers<[1], [0], [0], [1], [0, 0, 1, 1], [], []>} : vector<8x96xbf16>, vector<96x128xbf16>, vector<8x128xf32> -> vector<8x128xf32>
    %516 = vector.extract_strided_slice %388 {offsets = [8, 0], sizes = [8, 128], strides = [1, 1]} : vector<40x128xf32> to vector<8x128xf32>
    %517 = arith.addf %515, %516 : vector<8x128xf32>
    %518 = arith.negf %517 : vector<8x128xf32>
    %519 = math.exp %518 : vector<8x128xf32>
    %cst_84 = arith.constant 1.000000e+00 : f32
    %520 = vector.broadcast %cst_84 : f32 to vector<8x128xf32>
    %521 = arith.addf %520, %519 : vector<8x128xf32>
    %522 = arith.divf %520, %521 : vector<8x128xf32>
    %523 = vector.extract_strided_slice %517 {offsets = [0, 64], sizes = [8, 32], strides = [1, 1]} : vector<8x128xf32> to vector<8x32xf32>
    %524 = math.tanh %523 : vector<8x32xf32>
    %525 = vector.extract_strided_slice %522 {offsets = [0, 32], sizes = [8, 32], strides = [1, 1]} : vector<8x128xf32> to vector<8x32xf32>
    %526 = arith.mulf %525, %456 : vector<8x32xf32>
    %527 = vector.extract_strided_slice %522 {offsets = [0, 0], sizes = [8, 32], strides = [1, 1]} : vector<8x128xf32> to vector<8x32xf32>
    %528 = arith.mulf %527, %524 : vector<8x32xf32>
    %529 = arith.addf %526, %528 : vector<8x32xf32>
    %530 = vector.extract_strided_slice %522 {offsets = [0, 96], sizes = [8, 32], strides = [1, 1]} : vector<8x128xf32> to vector<8x32xf32>
    %531 = math.tanh %529 : vector<8x32xf32>
    %532 = arith.mulf %530, %531 : vector<8x32xf32>
    %533 = arith.truncf %532 : vector<8x32xf32> to vector<8x32xbf16>
    %c1 = arith.constant 1 : index
    %c0_85 = arith.constant 0 : index
    %c0_86 = arith.constant 0 : index
    %534 = vector.load %arg15[%c1, %c0_85, %c0_86] : memref<5x8x32xbf16, #tpu.memory_space<vmem>>, vector<1x8x32xbf16>
    %535 = vector.shape_cast %534 : vector<1x8x32xbf16> to vector<8x32xbf16>
    %536 = vector.shape_cast %533 : vector<8x32xbf16> to vector<1x8x32xbf16>
    tpu.vector_store %arg15[%c1, %c0_85, %c0_86], %536 {strides = array<i32>} : memref<5x8x32xbf16, #tpu.memory_space<vmem>>, vector<1x8x32xbf16>,
    %537 = vector.broadcast %390 : vector<1x32xf32> to vector<8x32xf32>
    %538 = arith.mulf %532, %537 : vector<8x32xf32>
    %cst_87 = arith.constant dense<0.000000e+00> : vector<8xf32>
    %539 = vector.multi_reduction <add>, %538, %cst_87 [1] : vector<8x32xf32> to vector<8xf32>
    %540 = vector.shape_cast %539 : vector<8xf32> to vector<8x1xf32>
    %541 = vector.broadcast %540 : vector<8x1xf32> to vector<8x8xf32>
    %542 = arith.addf %381, %541 : vector<8x8xf32>
    %cst_88 = arith.constant 0.000000e+00 : f32
    %543 = vector.broadcast %cst_88 : f32 to vector<8x8xf32>
    %544 = arith.maximumf %542, %543 : vector<8x8xf32>
    %cst_89 = arith.constant dense<0xFF800000> : vector<8xf32>
    %545 = vector.multi_reduction <maximumf>, %544, %cst_89 [1] : vector<8x8xf32> to vector<8xf32>
    %546 = vector.shape_cast %545 : vector<8xf32> to vector<8x1xf32>
    %547 = vector.broadcast %546 : vector<8x1xf32> to vector<8x8xf32>
    %548 = arith.subf %544, %547 : vector<8x8xf32>
    %549 = math.exp %548 : vector<8x8xf32>
    %cst_90 = arith.constant dense<0.000000e+00> : vector<8xf32>
    %550 = vector.multi_reduction <add>, %549, %cst_90 [1] : vector<8x8xf32> to vector<8xf32>
    %551 = vector.shape_cast %550 : vector<8xf32> to vector<8x1xf32>
    %552 = tpu.reciprocal %551 {approx = true} : vector<8x1xf32> -> vector<8x1xf32>
    %553 = vector.broadcast %552 : vector<8x1xf32> to vector<8x8xf32>
    %554 = arith.mulf %549, %553 : vector<8x8xf32>
    %555 = vector.extract_strided_slice %554 {offsets = [0, 0], sizes = [8, 1], strides = [1, 1]} : vector<8x8xf32> to vector<8x1xf32>
    %556 = vector.broadcast %555 : vector<8x1xf32> to vector<8x64xf32>
    %557 = arith.mulf %556, %324 : vector<8x64xf32>
    %558 = vector.extract_strided_slice %554 {offsets = [0, 1], sizes = [8, 1], strides = [1, 1]} : vector<8x8xf32> to vector<8x1xf32>
    %559 = vector.broadcast %558 : vector<8x1xf32> to vector<8x64xf32>
    %560 = arith.mulf %559, %325 : vector<8x64xf32>
    %561 = arith.addf %557, %560 : vector<8x64xf32>
    %562 = vector.extract_strided_slice %554 {offsets = [0, 2], sizes = [8, 1], strides = [1, 1]} : vector<8x8xf32> to vector<8x1xf32>
    %563 = vector.broadcast %562 : vector<8x1xf32> to vector<8x64xf32>
    %564 = arith.mulf %563, %326 : vector<8x64xf32>
    %565 = arith.addf %561, %564 : vector<8x64xf32>
    %566 = vector.extract_strided_slice %554 {offsets = [0, 3], sizes = [8, 1], strides = [1, 1]} : vector<8x8xf32> to vector<8x1xf32>
    %567 = vector.broadcast %566 : vector<8x1xf32> to vector<8x64xf32>
    %568 = arith.mulf %567, %327 : vector<8x64xf32>
    %569 = arith.addf %565, %568 : vector<8x64xf32>
    %570 = vector.extract_strided_slice %554 {offsets = [0, 4], sizes = [8, 1], strides = [1, 1]} : vector<8x8xf32> to vector<8x1xf32>
    %571 = vector.broadcast %570 : vector<8x1xf32> to vector<8x64xf32>
    %572 = arith.mulf %571, %328 : vector<8x64xf32>
    %573 = arith.addf %569, %572 : vector<8x64xf32>
    %574 = vector.extract_strided_slice %554 {offsets = [0, 5], sizes = [8, 1], strides = [1, 1]} : vector<8x8xf32> to vector<8x1xf32>
    %575 = vector.broadcast %574 : vector<8x1xf32> to vector<8x64xf32>
    %576 = arith.mulf %575, %329 : vector<8x64xf32>
    %577 = arith.addf %573, %576 : vector<8x64xf32>
    %578 = vector.extract_strided_slice %554 {offsets = [0, 6], sizes = [8, 1], strides = [1, 1]} : vector<8x8xf32> to vector<8x1xf32>
    %579 = vector.broadcast %578 : vector<8x1xf32> to vector<8x64xf32>
    %580 = arith.mulf %579, %330 : vector<8x64xf32>
    %581 = arith.addf %577, %580 : vector<8x64xf32>
    %582 = vector.extract_strided_slice %554 {offsets = [0, 7], sizes = [8, 1], strides = [1, 1]} : vector<8x8xf32> to vector<8x1xf32>
    %583 = vector.broadcast %582 : vector<8x1xf32> to vector<8x64xf32>
    %584 = arith.mulf %583, %331 : vector<8x64xf32>
    %585 = arith.addf %581, %584 : vector<8x64xf32>
    %586 = tpu.concatenate %585, %532 in 1 : vector<8x64xf32>, vector<8x32xf32> -> vector<8x96xf32>
    %587 = arith.truncf %586 : vector<8x96xf32> to vector<8x96xbf16>
    %cst_91 = arith.constant dense<0.000000e+00> : vector<8x128xf32>
    %588 = tpu.matmul %587, %389, %cst_91 {dimension_numbers = #tpu.dot_dimension_numbers<[1], [0], [0], [1], [0, 0, 1, 1], [], []>} : vector<8x96xbf16>, vector<96x128xbf16>, vector<8x128xf32> -> vector<8x128xf32>
    %589 = vector.extract_strided_slice %388 {offsets = [16, 0], sizes = [8, 128], strides = [1, 1]} : vector<40x128xf32> to vector<8x128xf32>
    %590 = arith.addf %588, %589 : vector<8x128xf32>
    %591 = arith.negf %590 : vector<8x128xf32>
    %592 = math.exp %591 : vector<8x128xf32>
    %cst_92 = arith.constant 1.000000e+00 : f32
    %593 = vector.broadcast %cst_92 : f32 to vector<8x128xf32>
    %594 = arith.addf %593, %592 : vector<8x128xf32>
    %595 = arith.divf %593, %594 : vector<8x128xf32>
    %596 = vector.extract_strided_slice %590 {offsets = [0, 64], sizes = [8, 32], strides = [1, 1]} : vector<8x128xf32> to vector<8x32xf32>
    %597 = math.tanh %596 : vector<8x32xf32>
    %598 = vector.extract_strided_slice %595 {offsets = [0, 32], sizes = [8, 32], strides = [1, 1]} : vector<8x128xf32> to vector<8x32xf32>
    %599 = arith.mulf %598, %529 : vector<8x32xf32>
    %600 = vector.extract_strided_slice %595 {offsets = [0, 0], sizes = [8, 32], strides = [1, 1]} : vector<8x128xf32> to vector<8x32xf32>
    %601 = arith.mulf %600, %597 : vector<8x32xf32>
    %602 = arith.addf %599, %601 : vector<8x32xf32>
    %603 = vector.extract_strided_slice %595 {offsets = [0, 96], sizes = [8, 32], strides = [1, 1]} : vector<8x128xf32> to vector<8x32xf32>
    %604 = math.tanh %602 : vector<8x32xf32>
    %605 = arith.mulf %603, %604 : vector<8x32xf32>
    %606 = arith.truncf %605 : vector<8x32xf32> to vector<8x32xbf16>
    %c2 = arith.constant 2 : index
    %c0_93 = arith.constant 0 : index
    %c0_94 = arith.constant 0 : index
    %607 = vector.load %arg15[%c2, %c0_93, %c0_94] : memref<5x8x32xbf16, #tpu.memory_space<vmem>>, vector<1x8x32xbf16>
    %608 = vector.shape_cast %607 : vector<1x8x32xbf16> to vector<8x32xbf16>
    %609 = vector.shape_cast %606 : vector<8x32xbf16> to vector<1x8x32xbf16>
    tpu.vector_store %arg15[%c2, %c0_93, %c0_94], %609 {strides = array<i32>} : memref<5x8x32xbf16, #tpu.memory_space<vmem>>, vector<1x8x32xbf16>,
    %610 = vector.broadcast %390 : vector<1x32xf32> to vector<8x32xf32>
    %611 = arith.mulf %605, %610 : vector<8x32xf32>
    %cst_95 = arith.constant dense<0.000000e+00> : vector<8xf32>
    %612 = vector.multi_reduction <add>, %611, %cst_95 [1] : vector<8x32xf32> to vector<8xf32>
    %613 = vector.shape_cast %612 : vector<8xf32> to vector<8x1xf32>
    %614 = vector.broadcast %613 : vector<8x1xf32> to vector<8x8xf32>
    %615 = arith.addf %381, %614 : vector<8x8xf32>
    %cst_96 = arith.constant 0.000000e+00 : f32
    %616 = vector.broadcast %cst_96 : f32 to vector<8x8xf32>
    %617 = arith.maximumf %615, %616 : vector<8x8xf32>
    %cst_97 = arith.constant dense<0xFF800000> : vector<8xf32>
    %618 = vector.multi_reduction <maximumf>, %617, %cst_97 [1] : vector<8x8xf32> to vector<8xf32>
    %619 = vector.shape_cast %618 : vector<8xf32> to vector<8x1xf32>
    %620 = vector.broadcast %619 : vector<8x1xf32> to vector<8x8xf32>
    %621 = arith.subf %617, %620 : vector<8x8xf32>
    %622 = math.exp %621 : vector<8x8xf32>
    %cst_98 = arith.constant dense<0.000000e+00> : vector<8xf32>
    %623 = vector.multi_reduction <add>, %622, %cst_98 [1] : vector<8x8xf32> to vector<8xf32>
    %624 = vector.shape_cast %623 : vector<8xf32> to vector<8x1xf32>
    %625 = tpu.reciprocal %624 {approx = true} : vector<8x1xf32> -> vector<8x1xf32>
    %626 = vector.broadcast %625 : vector<8x1xf32> to vector<8x8xf32>
    %627 = arith.mulf %622, %626 : vector<8x8xf32>
    %628 = vector.extract_strided_slice %627 {offsets = [0, 0], sizes = [8, 1], strides = [1, 1]} : vector<8x8xf32> to vector<8x1xf32>
    %629 = vector.broadcast %628 : vector<8x1xf32> to vector<8x64xf32>
    %630 = arith.mulf %629, %324 : vector<8x64xf32>
    %631 = vector.extract_strided_slice %627 {offsets = [0, 1], sizes = [8, 1], strides = [1, 1]} : vector<8x8xf32> to vector<8x1xf32>
    %632 = vector.broadcast %631 : vector<8x1xf32> to vector<8x64xf32>
    %633 = arith.mulf %632, %325 : vector<8x64xf32>
    %634 = arith.addf %630, %633 : vector<8x64xf32>
    %635 = vector.extract_strided_slice %627 {offsets = [0, 2], sizes = [8, 1], strides = [1, 1]} : vector<8x8xf32> to vector<8x1xf32>
    %636 = vector.broadcast %635 : vector<8x1xf32> to vector<8x64xf32>
    %637 = arith.mulf %636, %326 : vector<8x64xf32>
    %638 = arith.addf %634, %637 : vector<8x64xf32>
    %639 = vector.extract_strided_slice %627 {offsets = [0, 3], sizes = [8, 1], strides = [1, 1]} : vector<8x8xf32> to vector<8x1xf32>
    %640 = vector.broadcast %639 : vector<8x1xf32> to vector<8x64xf32>
    %641 = arith.mulf %640, %327 : vector<8x64xf32>
    %642 = arith.addf %638, %641 : vector<8x64xf32>
    %643 = vector.extract_strided_slice %627 {offsets = [0, 4], sizes = [8, 1], strides = [1, 1]} : vector<8x8xf32> to vector<8x1xf32>
    %644 = vector.broadcast %643 : vector<8x1xf32> to vector<8x64xf32>
    %645 = arith.mulf %644, %328 : vector<8x64xf32>
    %646 = arith.addf %642, %645 : vector<8x64xf32>
    %647 = vector.extract_strided_slice %627 {offsets = [0, 5], sizes = [8, 1], strides = [1, 1]} : vector<8x8xf32> to vector<8x1xf32>
    %648 = vector.broadcast %647 : vector<8x1xf32> to vector<8x64xf32>
    %649 = arith.mulf %648, %329 : vector<8x64xf32>
    %650 = arith.addf %646, %649 : vector<8x64xf32>
    %651 = vector.extract_strided_slice %627 {offsets = [0, 6], sizes = [8, 1], strides = [1, 1]} : vector<8x8xf32> to vector<8x1xf32>
    %652 = vector.broadcast %651 : vector<8x1xf32> to vector<8x64xf32>
    %653 = arith.mulf %652, %330 : vector<8x64xf32>
    %654 = arith.addf %650, %653 : vector<8x64xf32>
    %655 = vector.extract_strided_slice %627 {offsets = [0, 7], sizes = [8, 1], strides = [1, 1]} : vector<8x8xf32> to vector<8x1xf32>
    %656 = vector.broadcast %655 : vector<8x1xf32> to vector<8x64xf32>
    %657 = arith.mulf %656, %331 : vector<8x64xf32>
    %658 = arith.addf %654, %657 : vector<8x64xf32>
    %659 = tpu.concatenate %658, %605 in 1 : vector<8x64xf32>, vector<8x32xf32> -> vector<8x96xf32>
    %660 = arith.truncf %659 : vector<8x96xf32> to vector<8x96xbf16>
    %cst_99 = arith.constant dense<0.000000e+00> : vector<8x128xf32>
    %661 = tpu.matmul %660, %389, %cst_99 {dimension_numbers = #tpu.dot_dimension_numbers<[1], [0], [0], [1], [0, 0, 1, 1], [], []>} : vector<8x96xbf16>, vector<96x128xbf16>, vector<8x128xf32> -> vector<8x128xf32>
    %662 = vector.extract_strided_slice %388 {offsets = [24, 0], sizes = [8, 128], strides = [1, 1]} : vector<40x128xf32> to vector<8x128xf32>
    %663 = arith.addf %661, %662 : vector<8x128xf32>
    %664 = arith.negf %663 : vector<8x128xf32>
    %665 = math.exp %664 : vector<8x128xf32>
    %cst_100 = arith.constant 1.000000e+00 : f32
    %666 = vector.broadcast %cst_100 : f32 to vector<8x128xf32>
    %667 = arith.addf %666, %665 : vector<8x128xf32>
    %668 = arith.divf %666, %667 : vector<8x128xf32>
    %669 = vector.extract_strided_slice %663 {offsets = [0, 64], sizes = [8, 32], strides = [1, 1]} : vector<8x128xf32> to vector<8x32xf32>
    %670 = math.tanh %669 : vector<8x32xf32>
    %671 = vector.extract_strided_slice %668 {offsets = [0, 32], sizes = [8, 32], strides = [1, 1]} : vector<8x128xf32> to vector<8x32xf32>
    %672 = arith.mulf %671, %602 : vector<8x32xf32>
    %673 = vector.extract_strided_slice %668 {offsets = [0, 0], sizes = [8, 32], strides = [1, 1]} : vector<8x128xf32> to vector<8x32xf32>
    %674 = arith.mulf %673, %670 : vector<8x32xf32>
    %675 = arith.addf %672, %674 : vector<8x32xf32>
    %676 = vector.extract_strided_slice %668 {offsets = [0, 96], sizes = [8, 32], strides = [1, 1]} : vector<8x128xf32> to vector<8x32xf32>
    %677 = math.tanh %675 : vector<8x32xf32>
    %678 = arith.mulf %676, %677 : vector<8x32xf32>
    %679 = arith.truncf %678 : vector<8x32xf32> to vector<8x32xbf16>
    %c3 = arith.constant 3 : index
    %c0_101 = arith.constant 0 : index
    %c0_102 = arith.constant 0 : index
    %680 = vector.load %arg15[%c3, %c0_101, %c0_102] : memref<5x8x32xbf16, #tpu.memory_space<vmem>>, vector<1x8x32xbf16>
    %681 = vector.shape_cast %680 : vector<1x8x32xbf16> to vector<8x32xbf16>
    %682 = vector.shape_cast %679 : vector<8x32xbf16> to vector<1x8x32xbf16>
    tpu.vector_store %arg15[%c3, %c0_101, %c0_102], %682 {strides = array<i32>} : memref<5x8x32xbf16, #tpu.memory_space<vmem>>, vector<1x8x32xbf16>,
    %683 = vector.broadcast %390 : vector<1x32xf32> to vector<8x32xf32>
    %684 = arith.mulf %678, %683 : vector<8x32xf32>
    %cst_103 = arith.constant dense<0.000000e+00> : vector<8xf32>
    %685 = vector.multi_reduction <add>, %684, %cst_103 [1] : vector<8x32xf32> to vector<8xf32>
    %686 = vector.shape_cast %685 : vector<8xf32> to vector<8x1xf32>
    %687 = vector.broadcast %686 : vector<8x1xf32> to vector<8x8xf32>
    %688 = arith.addf %381, %687 : vector<8x8xf32>
    %cst_104 = arith.constant 0.000000e+00 : f32
    %689 = vector.broadcast %cst_104 : f32 to vector<8x8xf32>
    %690 = arith.maximumf %688, %689 : vector<8x8xf32>
    %cst_105 = arith.constant dense<0xFF800000> : vector<8xf32>
    %691 = vector.multi_reduction <maximumf>, %690, %cst_105 [1] : vector<8x8xf32> to vector<8xf32>
    %692 = vector.shape_cast %691 : vector<8xf32> to vector<8x1xf32>
    %693 = vector.broadcast %692 : vector<8x1xf32> to vector<8x8xf32>
    %694 = arith.subf %690, %693 : vector<8x8xf32>
    %695 = math.exp %694 : vector<8x8xf32>
    %cst_106 = arith.constant dense<0.000000e+00> : vector<8xf32>
    %696 = vector.multi_reduction <add>, %695, %cst_106 [1] : vector<8x8xf32> to vector<8xf32>
    %697 = vector.shape_cast %696 : vector<8xf32> to vector<8x1xf32>
    %698 = tpu.reciprocal %697 {approx = true} : vector<8x1xf32> -> vector<8x1xf32>
    %699 = vector.broadcast %698 : vector<8x1xf32> to vector<8x8xf32>
    %700 = arith.mulf %695, %699 : vector<8x8xf32>
    %701 = vector.extract_strided_slice %700 {offsets = [0, 0], sizes = [8, 1], strides = [1, 1]} : vector<8x8xf32> to vector<8x1xf32>
    %702 = vector.broadcast %701 : vector<8x1xf32> to vector<8x64xf32>
    %703 = arith.mulf %702, %324 : vector<8x64xf32>
    %704 = vector.extract_strided_slice %700 {offsets = [0, 1], sizes = [8, 1], strides = [1, 1]} : vector<8x8xf32> to vector<8x1xf32>
    %705 = vector.broadcast %704 : vector<8x1xf32> to vector<8x64xf32>
    %706 = arith.mulf %705, %325 : vector<8x64xf32>
    %707 = arith.addf %703, %706 : vector<8x64xf32>
    %708 = vector.extract_strided_slice %700 {offsets = [0, 2], sizes = [8, 1], strides = [1, 1]} : vector<8x8xf32> to vector<8x1xf32>
    %709 = vector.broadcast %708 : vector<8x1xf32> to vector<8x64xf32>
    %710 = arith.mulf %709, %326 : vector<8x64xf32>
    %711 = arith.addf %707, %710 : vector<8x64xf32>
    %712 = vector.extract_strided_slice %700 {offsets = [0, 3], sizes = [8, 1], strides = [1, 1]} : vector<8x8xf32> to vector<8x1xf32>
    %713 = vector.broadcast %712 : vector<8x1xf32> to vector<8x64xf32>
    %714 = arith.mulf %713, %327 : vector<8x64xf32>
    %715 = arith.addf %711, %714 : vector<8x64xf32>
    %716 = vector.extract_strided_slice %700 {offsets = [0, 4], sizes = [8, 1], strides = [1, 1]} : vector<8x8xf32> to vector<8x1xf32>
    %717 = vector.broadcast %716 : vector<8x1xf32> to vector<8x64xf32>
    %718 = arith.mulf %717, %328 : vector<8x64xf32>
    %719 = arith.addf %715, %718 : vector<8x64xf32>
    %720 = vector.extract_strided_slice %700 {offsets = [0, 5], sizes = [8, 1], strides = [1, 1]} : vector<8x8xf32> to vector<8x1xf32>
    %721 = vector.broadcast %720 : vector<8x1xf32> to vector<8x64xf32>
    %722 = arith.mulf %721, %329 : vector<8x64xf32>
    %723 = arith.addf %719, %722 : vector<8x64xf32>
    %724 = vector.extract_strided_slice %700 {offsets = [0, 6], sizes = [8, 1], strides = [1, 1]} : vector<8x8xf32> to vector<8x1xf32>
    %725 = vector.broadcast %724 : vector<8x1xf32> to vector<8x64xf32>
    %726 = arith.mulf %725, %330 : vector<8x64xf32>
    %727 = arith.addf %723, %726 : vector<8x64xf32>
    %728 = vector.extract_strided_slice %700 {offsets = [0, 7], sizes = [8, 1], strides = [1, 1]} : vector<8x8xf32> to vector<8x1xf32>
    %729 = vector.broadcast %728 : vector<8x1xf32> to vector<8x64xf32>
    %730 = arith.mulf %729, %331 : vector<8x64xf32>
    %731 = arith.addf %727, %730 : vector<8x64xf32>
    %732 = tpu.concatenate %731, %678 in 1 : vector<8x64xf32>, vector<8x32xf32> -> vector<8x96xf32>
    %733 = arith.truncf %732 : vector<8x96xf32> to vector<8x96xbf16>
    %cst_107 = arith.constant dense<0.000000e+00> : vector<8x128xf32>
    %734 = tpu.matmul %733, %389, %cst_107 {dimension_numbers = #tpu.dot_dimension_numbers<[1], [0], [0], [1], [0, 0, 1, 1], [], []>} : vector<8x96xbf16>, vector<96x128xbf16>, vector<8x128xf32> -> vector<8x128xf32>
    %735 = vector.extract_strided_slice %388 {offsets = [32, 0], sizes = [8, 128], strides = [1, 1]} : vector<40x128xf32> to vector<8x128xf32>
    %736 = arith.addf %734, %735 : vector<8x128xf32>
    %737 = arith.negf %736 : vector<8x128xf32>
    %738 = math.exp %737 : vector<8x128xf32>
    %cst_108 = arith.constant 1.000000e+00 : f32
    %739 = vector.broadcast %cst_108 : f32 to vector<8x128xf32>
    %740 = arith.addf %739, %738 : vector<8x128xf32>
    %741 = arith.divf %739, %740 : vector<8x128xf32>
    %742 = vector.extract_strided_slice %736 {offsets = [0, 64], sizes = [8, 32], strides = [1, 1]} : vector<8x128xf32> to vector<8x32xf32>
    %743 = math.tanh %742 : vector<8x32xf32>
    %744 = vector.extract_strided_slice %741 {offsets = [0, 32], sizes = [8, 32], strides = [1, 1]} : vector<8x128xf32> to vector<8x32xf32>
    %745 = arith.mulf %744, %675 : vector<8x32xf32>
    %746 = vector.extract_strided_slice %741 {offsets = [0, 0], sizes = [8, 32], strides = [1, 1]} : vector<8x128xf32> to vector<8x32xf32>
    %747 = arith.mulf %746, %743 : vector<8x32xf32>
    %748 = arith.addf %745, %747 : vector<8x32xf32>
    %749 = vector.extract_strided_slice %741 {offsets = [0, 96], sizes = [8, 32], strides = [1, 1]} : vector<8x128xf32> to vector<8x32xf32>
    %750 = math.tanh %748 : vector<8x32xf32>
    %751 = arith.mulf %749, %750 : vector<8x32xf32>
    %752 = arith.truncf %751 : vector<8x32xf32> to vector<8x32xbf16>
    %c4 = arith.constant 4 : index
    %c0_109 = arith.constant 0 : index
    %c0_110 = arith.constant 0 : index
    %753 = vector.load %arg15[%c4, %c0_109, %c0_110] : memref<5x8x32xbf16, #tpu.memory_space<vmem>>, vector<1x8x32xbf16>
    %754 = vector.shape_cast %753 : vector<1x8x32xbf16> to vector<8x32xbf16>
    %755 = vector.shape_cast %752 : vector<8x32xbf16> to vector<1x8x32xbf16>
    tpu.vector_store %arg15[%c4, %c0_109, %c0_110], %755 {strides = array<i32>} : memref<5x8x32xbf16, #tpu.memory_space<vmem>>, vector<1x8x32xbf16>,
    return
  }
}

</mosaic_0001>

<bundles_post_ra>
// kernel: s2s_forward.3
= control target key start
LH: loop header
LB: loop body
LE: loop exit
PB: predicated region body
PF: predicated region fallthrough
CT: control target
= control target key end

     0   :  { %s2407_s12 = smov 0   ;;  %s2409_s13 = smov 0   ;;  %s2959_s0 = inlined_call_operand.vmem [shape: bf16[5,8,32], index: 0, kind: input, shape index: {}]   ;;  %s2960_s1 = inlined_call_operand.vmem [shape: bf16[32,10240], index: 1, kind: input, shape index: {}]   ;;  %s2961_s2 = inlined_call_operand.vmem [shape: f32[1,10240], index: 2, kind: input, shape index: {}]   ;;  %s2962_s3 = inlined_call_operand.vmem [shape: f32[6,8,10240], index: 3, kind: output, shape index: {}]  }
   0x1   :  { %s2411_s14 = smov 0   ;;  %s2413_s15 = smov 0  }
   0x2   :  { %s2415_s16 = smov 0   ;;  %s2417_s17 = smov 0  }
   0x3   :  { %s2419_s18 = smov 0  }
   0x4 LB: > { %s22_s19 = sadd.s32 1, %s2375_s16  ;;  %s25_s20 = sadd.s32 1, %s2379_s17  ;;  %s2383_s18 = sphi %s2419_s18, %s13_s18   ;;  %s2379_s17 = sphi %s2417_s17, %s2968_s17   ;;  %s2375_s16 = sphi %s2415_s16, %s2967_s16   ;;  %s2371_s15 = sphi %s2413_s15, %s2966_s15   ;;  %s2367_s14 = sphi %s2411_s14, %s2965_s14   ;;  %s2363_s13 = sphi %s2409_s13, %s2964_s13   ;;  %s2359_s12 = sphi %s2407_s12, %s2963_s12  }
   0x5   : > { %p23_p0 = scmp.ge.s32.totalorder %s22_s19, 6  ;;  %p71_p1 = scmp.ne.s32.totalorder %s2363_s13, %s2359_s12 }
   0x6   : > { %p72_p2 = scmp.eq.s32.totalorder %s2383_s18, 0  ;;  %s64_s22 = sadd.s32 1, %s2363_s13 }
   0x7   : > { %s2970_s19 = smov (%p23_p0, %s22_s19), 0  ;;  %s2972_s20 = smov (!%p23_p0, %s25_s20), %s2379_s17 }
   0x8   : > { %p73_p3 = por %p72_p2, %p71_p1  ;;  %p27_p4 = scmp.ge.s32.totalorder %s2972_s20, 2 }
   0x9   : > { %p2150_p6 = scmp.ge.s32.totalorder %s2383_s18, 12 }
   0xa   : > { %s2974_s20 = smov (%p27_p4, %s2972_s20), 0 }
   0xb   : > { %s61_s21 = ssub.s32 %s2379_s17, %s2974_s20  ;;  %151 = sbr.rel (%p2150_p6) target bundleno = 63 (0x3f), region = 16 }
   0xc   : > { %p62_p5 = scmp.eq.s32.totalorder %s61_s21, 0 }
   0xe   : > { %s2456_s23 = scalar_select %p62_p5, %s2363_s13, %s64_s22  }
  0x12   : > { %167 = sbr.rel (!%p73_p3) target bundleno = 63 (0x3f), region = 24  ;;  %s169_s24 = sand.u32 (%p73_p3), 1, %s2363_s13  }
  0x13   : > { %s2265_s25 = smul.u32 (%p73_p3), 160, %s2379_s17 }
  0x14   : > { %s2268_s26 = smul.u32 (%p73_p3), 640, %s169_s24 }
  0x15   : > { %s2464_s29 = scalar_lea.vmem (%p73_p3), %s2960_s1, %s2265_s25 }
  0x16   : > { %v187_v0 = vld [vmem:[%s2464_s29] sm:$0xff] (%p73_p3)  ;;  %v189_v1 = vld [vmem:[%s2464_s29 + $0x8] sm:$0xff] (%p73_p3)  ;;  %v191_v2 = vld [vmem:[%s2464_s29 + $0x10] sm:$0xff] (%p73_p3)  ;;  %s2469_s30 = scalar_lea.vmem (%p73_p3), [#allocation2], %s2268_s26 }
  0x17   : > { %188 = vst [vmem:[%s2469_s30] sm:$0xff] (%p73_p3), %v187_v0  ;;  %190 = vst [vmem:[%s2469_s30 + $0x8] sm:$0xff] (%p73_p3), %v189_v1  ;;  %v193_v3 = vld [vmem:[%s2464_s29 + $0x18] sm:$0xff] (%p73_p3)  ;;  %v195_v4 = vld [vmem:[%s2464_s29 + $0x20] sm:$0xff] (%p73_p3) }
  0x18   : > { %192 = vst [vmem:[%s2469_s30 + $0x10] sm:$0xff] (%p73_p3), %v191_v2  ;;  %v197_v5 = vld [vmem:[%s2464_s29 + $0x28] sm:$0xff] (%p73_p3)  ;;  %194 = vst [vmem:[%s2469_s30 + $0x18] sm:$0xff] (%p73_p3), %v193_v3  ;;  %v199_v6 = vld [vmem:[%s2464_s29 + $0x30] sm:$0xff] (%p73_p3) }
  0x19   : > { %196 = vst [vmem:[%s2469_s30 + $0x20] sm:$0xff] %v195_v4  ;;  %198 = vst [vmem:[%s2469_s30 + $0x28] sm:$0xff] %v197_v5  ;;  %v201_v7 = vld [vmem:[%s2464_s29 + $0x38] sm:$0xff]  ;;  %v203_v8 = vld [vmem:[%s2464_s29 + $0x40] sm:$0xff] }
  0x1a   : > { %200 = vst [vmem:[%s2469_s30 + $0x30] sm:$0xff] %v199_v6  ;;  %202 = vst [vmem:[%s2469_s30 + $0x38] sm:$0xff] %v201_v7  ;;  %v205_v9 = vld [vmem:[%s2464_s29 + $0x48] sm:$0xff]  ;;  %v207_v10 = vld [vmem:[%s2464_s29 + $0x50] sm:$0xff] }
  0x1b   : > { %204 = vst [vmem:[%s2469_s30 + $0x40] sm:$0xff] %v203_v8  ;;  %v209_v11 = vld [vmem:[%s2464_s29 + $0x58] sm:$0xff]  ;;  %206 = vst [vmem:[%s2469_s30 + $0x48] sm:$0xff] %v205_v9  ;;  %v211_v12 = vld [vmem:[%s2464_s29 + $0x60] sm:$0xff] }
  0x1c   : > { %208 = vst [vmem:[%s2469_s30 + $0x50] sm:$0xff] %v207_v10  ;;  %210 = vst [vmem:[%s2469_s30 + $0x58] sm:$0xff] %v209_v11  ;;  %v213_v13 = vld [vmem:[%s2464_s29 + $0x68] sm:$0xff]  ;;  %v215_v14 = vld [vmem:[%s2464_s29 + $0x70] sm:$0xff] }
  0x1d   : > { %212 = vst [vmem:[%s2469_s30 + $0x60] sm:$0xff] %v211_v12  ;;  %214 = vst [vmem:[%s2469_s30 + $0x68] sm:$0xff] %v213_v13  ;;  %v217_v15 = vld [vmem:[%s2464_s29 + $0x78] sm:$0xff]  ;;  %v219_v16 = vld [vmem:[%s2464_s29 + $0x80] sm:$0xff] }
  0x1e   : > { %216 = vst [vmem:[%s2469_s30 + $0x70] sm:$0xff] %v215_v14  ;;  %v221_v17 = vld [vmem:[%s2464_s29 + $0x88] sm:$0xff]  ;;  %218 = vst [vmem:[%s2469_s30 + $0x78] sm:$0xff] %v217_v15  ;;  %v223_v18 = vld [vmem:[%s2464_s29 + $0x90] sm:$0xff] }
  0x1f   : > { %220 = vst [vmem:[%s2469_s30 + $0x80] sm:$0xff] %v219_v16  ;;  %222 = vst [vmem:[%s2469_s30 + $0x88] sm:$0xff] %v221_v17  ;;  %v225_v19 = vld [vmem:[%s2464_s29 + $0x98] sm:$0xff]  ;;  %v227_v20 = vld [vmem:[%s2464_s29 + $0x140] sm:$0xff] }
  0x20   : > { %224 = vst [vmem:[%s2469_s30 + $0x90] sm:$0xff] %v223_v18  ;;  %226 = vst [vmem:[%s2469_s30 + $0x98] sm:$0xff] %v225_v19  ;;  %v229_v21 = vld [vmem:[%s2464_s29 + $0x148] sm:$0xff]  ;;  %v231_v22 = vld [vmem:[%s2464_s29 + $0x150] sm:$0xff] }
  0x21   : > { %228 = vst [vmem:[%s2469_s30 + $0xa0] sm:$0xff] %v227_v20  ;;  %v233_v23 = vld [vmem:[%s2464_s29 + $0x158] sm:$0xff]  ;;  %230 = vst [vmem:[%s2469_s30 + $0xa8] sm:$0xff] %v229_v21  ;;  %v235_v24 = vld [vmem:[%s2464_s29 + $0x160] sm:$0xff] }
  0x22   : > { %232 = vst [vmem:[%s2469_s30 + $0xb0] sm:$0xff] %v231_v22  ;;  %234 = vst [vmem:[%s2469_s30 + $0xb8] sm:$0xff] %v233_v23  ;;  %v237_v25 = vld [vmem:[%s2464_s29 + $0x168] sm:$0xff]  ;;  %v239_v26 = vld [vmem:[%s2464_s29 + $0x170] sm:$0xff] }
  0x23   : > { %236 = vst [vmem:[%s2469_s30 + $0xc0] sm:$0xff] %v235_v24  ;;  %238 = vst [vmem:[%s2469_s30 + $0xc8] sm:$0xff] %v237_v25  ;;  %v241_v27 = vld [vmem:[%s2464_s29 + $0x178] sm:$0xff]  ;;  %v243_v28 = vld [vmem:[%s2464_s29 + $0x180] sm:$0xff] }
  0x24   : > { %240 = vst [vmem:[%s2469_s30 + $0xd0] sm:$0xff] %v239_v26  ;;  %v245_v29 = vld [vmem:[%s2464_s29 + $0x188] sm:$0xff]  ;;  %242 = vst [vmem:[%s2469_s30 + $0xd8] sm:$0xff] %v241_v27  ;;  %v247_v30 = vld [vmem:[%s2464_s29 + $0x190] sm:$0xff] }
  0x25   : > { %244 = vst [vmem:[%s2469_s30 + $0xe0] sm:$0xff] %v243_v28  ;;  %246 = vst [vmem:[%s2469_s30 + $0xe8] sm:$0xff] %v245_v29  ;;  %v249_v31 = vld [vmem:[%s2464_s29 + $0x198] sm:$0xff]  ;;  %v251_v32 = vld [vmem:[%s2464_s29 + $0x1a0] sm:$0xff] }
  0x26   : > { %248 = vst [vmem:[%s2469_s30 + $0xf0] sm:$0xff] %v247_v30  ;;  %250 = vst [vmem:[%s2469_s30 + $0xf8] sm:$0xff] %v249_v31  ;;  %v253_v33 = vld [vmem:[%s2464_s29 + $0x1a8] sm:$0xff]  ;;  %v255_v34 = vld [vmem:[%s2464_s29 + $0x1b0] sm:$0xff] }
  0x27   : > { %252 = vst [vmem:[%s2469_s30 + $0x100] sm:$0xff] %v251_v32  ;;  %v257_v35 = vld [vmem:[%s2464_s29 + $0x1b8] sm:$0xff]  ;;  %254 = vst [vmem:[%s2469_s30 + $0x108] sm:$0xff] %v253_v33  ;;  %v259_v36 = vld [vmem:[%s2464_s29 + $0x1c0] sm:$0xff] }
  0x28   : > { %256 = vst [vmem:[%s2469_s30 + $0x110] sm:$0xff] %v255_v34  ;;  %258 = vst [vmem:[%s2469_s30 + $0x118] sm:$0xff] %v257_v35  ;;  %v261_v37 = vld [vmem:[%s2464_s29 + $0x1c8] sm:$0xff]  ;;  %v263_v38 = vld [vmem:[%s2464_s29 + $0x1d0] sm:$0xff] }
  0x29   : > { %260 = vst [vmem:[%s2469_s30 + $0x120] sm:$0xff] %v259_v36  ;;  %262 = vst [vmem:[%s2469_s30 + $0x128] sm:$0xff] %v261_v37  ;;  %v265_v39 = vld [vmem:[%s2464_s29 + $0x1d8] sm:$0xff]  ;;  %v267_v40 = vld [vmem:[%s2464_s29 + $0x280] sm:$0xff] }
  0x2a   : > { %264 = vst [vmem:[%s2469_s30 + $0x130] sm:$0xff] %v263_v38  ;;  %v269_v41 = vld [vmem:[%s2464_s29 + $0x288] sm:$0xff]  ;;  %266 = vst [vmem:[%s2469_s30 + $0x138] sm:$0xff] %v265_v39  ;;  %v271_v42 = vld [vmem:[%s2464_s29 + $0x290] sm:$0xff] }
  0x2b   : > { %268 = vst [vmem:[%s2469_s30 + $0x140] sm:$0xff] %v267_v40  ;;  %270 = vst [vmem:[%s2469_s30 + $0x148] sm:$0xff] %v269_v41  ;;  %v273_v43 = vld [vmem:[%s2464_s29 + $0x298] sm:$0xff]  ;;  %v275_v44 = vld [vmem:[%s2464_s29 + $0x2a0] sm:$0xff] }
  0x2c   : > { %272 = vst [vmem:[%s2469_s30 + $0x150] sm:$0xff] %v271_v42  ;;  %274 = vst [vmem:[%s2469_s30 + $0x158] sm:$0xff] %v273_v43  ;;  %v277_v45 = vld [vmem:[%s2464_s29 + $0x2a8] sm:$0xff]  ;;  %v279_v46 = vld [vmem:[%s2464_s29 + $0x2b0] sm:$0xff] }
  0x2d   : > { %276 = vst [vmem:[%s2469_s30 + $0x160] sm:$0xff] %v275_v44  ;;  %v281_v47 = vld [vmem:[%s2464_s29 + $0x2b8] sm:$0xff]  ;;  %278 = vst [vmem:[%s2469_s30 + $0x168] sm:$0xff] %v277_v45  ;;  %v283_v48 = vld [vmem:[%s2464_s29 + $0x2c0] sm:$0xff] }
  0x2e   : > { %280 = vst [vmem:[%s2469_s30 + $0x170] sm:$0xff] %v279_v46  ;;  %282 = vst [vmem:[%s2469_s30 + $0x178] sm:$0xff] %v281_v47  ;;  %v285_v49 = vld [vmem:[%s2464_s29 + $0x2c8] sm:$0xff]  ;;  %v287_v50 = vld [vmem:[%s2464_s29 + $0x2d0] sm:$0xff] }
  0x2f   : > { %284 = vst [vmem:[%s2469_s30 + $0x180] sm:$0xff] %v283_v48  ;;  %286 = vst [vmem:[%s2469_s30 + $0x188] sm:$0xff] %v285_v49  ;;  %v289_v51 = vld [vmem:[%s2464_s29 + $0x2d8] sm:$0xff]  ;;  %v291_v52 = vld [vmem:[%s2464_s29 + $0x2e0] sm:$0xff] }
  0x30   : > { %288 = vst [vmem:[%s2469_s30 + $0x190] sm:$0xff] %v287_v50  ;;  %v293_v53 = vld [vmem:[%s2464_s29 + $0x2e8] sm:$0xff]  ;;  %290 = vst [vmem:[%s2469_s30 + $0x198] sm:$0xff] %v289_v51  ;;  %v295_v54 = vld [vmem:[%s2464_s29 + $0x2f0] sm:$0xff] }
  0x31   : > { %292 = vst [vmem:[%s2469_s30 + $0x1a0] sm:$0xff] %v291_v52  ;;  %294 = vst [vmem:[%s2469_s30 + $0x1a8] sm:$0xff] %v293_v53  ;;  %v297_v55 = vld [vmem:[%s2464_s29 + $0x2f8] sm:$0xff]  ;;  %v299_v56 = vld [vmem:[%s2464_s29 + $0x300] sm:$0xff] }
  0x32   : > { %296 = vst [vmem:[%s2469_s30 + $0x1b0] sm:$0xff] %v295_v54  ;;  %298 = vst [vmem:[%s2469_s30 + $0x1b8] sm:$0xff] %v297_v55  ;;  %v301_v57 = vld [vmem:[%s2464_s29 + $0x308] sm:$0xff]  ;;  %v303_v58 = vld [vmem:[%s2464_s29 + $0x310] sm:$0xff] }
  0x33   : > { %300 = vst [vmem:[%s2469_s30 + $0x1c0] sm:$0xff] %v299_v56  ;;  %v305_v59 = vld [vmem:[%s2464_s29 + $0x318] sm:$0xff]  ;;  %302 = vst [vmem:[%s2469_s30 + $0x1c8] sm:$0xff] %v301_v57  ;;  %v307_v60 = vld [vmem:[%s2464_s29 + $0x3c0] sm:$0xff] }
  0x34   : > { %304 = vst [vmem:[%s2469_s30 + $0x1d0] sm:$0xff] %v303_v58  ;;  %306 = vst [vmem:[%s2469_s30 + $0x1d8] sm:$0xff] %v305_v59  ;;  %v309_v61 = vld [vmem:[%s2464_s29 + $0x3c8] sm:$0xff]  ;;  %v311_v62 = vld [vmem:[%s2464_s29 + $0x3d0] sm:$0xff] }
  0x35   : > { %308 = vst [vmem:[%s2469_s30 + $0x1e0] sm:$0xff] %v307_v60  ;;  %310 = vst [vmem:[%s2469_s30 + $0x1e8] sm:$0xff] %v309_v61  ;;  %v313_v63 = vld [vmem:[%s2464_s29 + $0x3d8] sm:$0xff]  ;;  %v315_v0 = vld [vmem:[%s2464_s29 + $0x3e0] sm:$0xff] }
  0x36   : > { %312 = vst [vmem:[%s2469_s30 + $0x1f0] sm:$0xff] %v311_v62  ;;  %v317_v1 = vld [vmem:[%s2464_s29 + $0x3e8] sm:$0xff]  ;;  %314 = vst [vmem:[%s2469_s30 + $0x1f8] sm:$0xff] %v313_v63  ;;  %v319_v2 = vld [vmem:[%s2464_s29 + $0x3f0] sm:$0xff] }
  0x37   : > { %316 = vst [vmem:[%s2469_s30 + $0x200] sm:$0xff] %v315_v0  ;;  %318 = vst [vmem:[%s2469_s30 + $0x208] sm:$0xff] %v317_v1  ;;  %v321_v3 = vld [vmem:[%s2464_s29 + $0x3f8] sm:$0xff]  ;;  %v323_v4 = vld [vmem:[%s2464_s29 + $0x400] sm:$0xff] }
  0x38   : > { %320 = vst [vmem:[%s2469_s30 + $0x210] sm:$0xff] %v319_v2  ;;  %322 = vst [vmem:[%s2469_s30 + $0x218] sm:$0xff] %v321_v3  ;;  %v325_v5 = vld [vmem:[%s2464_s29 + $0x408] sm:$0xff]  ;;  %v327_v6 = vld [vmem:[%s2464_s29 + $0x410] sm:$0xff] }
  0x39   : > { %324 = vst [vmem:[%s2469_s30 + $0x220] sm:$0xff] %v323_v4  ;;  %v329_v7 = vld [vmem:[%s2464_s29 + $0x418] sm:$0xff]  ;;  %326 = vst [vmem:[%s2469_s30 + $0x228] sm:$0xff] %v325_v5  ;;  %v331_v8 = vld [vmem:[%s2464_s29 + $0x420] sm:$0xff] }
  0x3a   : > { %328 = vst [vmem:[%s2469_s30 + $0x230] sm:$0xff] %v327_v6  ;;  %330 = vst [vmem:[%s2469_s30 + $0x238] sm:$0xff] %v329_v7  ;;  %v333_v9 = vld [vmem:[%s2464_s29 + $0x428] sm:$0xff]  ;;  %v335_v10 = vld [vmem:[%s2464_s29 + $0x430] sm:$0xff] }
  0x3b   : > { %332 = vst [vmem:[%s2469_s30 + $0x240] sm:$0xff] %v331_v8  ;;  %334 = vst [vmem:[%s2469_s30 + $0x248] sm:$0xff] %v333_v9  ;;  %v337_v11 = vld [vmem:[%s2464_s29 + $0x438] sm:$0xff]  ;;  %v339_v12 = vld [vmem:[%s2464_s29 + $0x440] sm:$0xff] }
  0x3c   : > { %336 = vst [vmem:[%s2469_s30 + $0x250] sm:$0xff] %v335_v10  ;;  %v341_v13 = vld [vmem:[%s2464_s29 + $0x448] sm:$0xff]  ;;  %338 = vst [vmem:[%s2469_s30 + $0x258] sm:$0xff] %v337_v11  ;;  %v343_v14 = vld [vmem:[%s2464_s29 + $0x450] sm:$0xff] }
  0x3d   : > { %340 = vst [vmem:[%s2469_s30 + $0x260] sm:$0xff] %v339_v12  ;;  %342 = vst [vmem:[%s2469_s30 + $0x268] sm:$0xff] %v341_v13  ;;  %v345_v15 = vld [vmem:[%s2464_s29 + $0x458] sm:$0xff] }
  0x3e   : > { %344 = vst [vmem:[%s2469_s30 + $0x270] sm:$0xff] %v343_v14  ;;  %346 = vst [vmem:[%s2469_s30 + $0x278] sm:$0xff] %v345_v15 }
  0x3f PF: > { %p2152_p7 = scmp.ge.s32.totalorder %s2383_s18, 1  ;;  %p359_p8 = scmp.lt.s32.totalorder %s2383_s18, 13 }
  0x41   : > { %p360_p9 = pnand %p2152_p7, %p359_p8 }
  0x42   : > { %s366_s4 = sand.u32 (!%p360_p9), 1, %s2359_s12   ;;  %s2153_s5 = sadd.s32 (!%p360_p9), 4294967295, %s2367_s14 }
  0x43   : > { %363 = sbr.rel (%p360_p9) target bundleno = 406 (0x196), region = 51  ;;  %p405_p10 = scmp.gt.s32.totalorder (!%p360_p9), %s2153_s5, 0 }
  0x44   : > { %s2269_s6 = smul.u32 (!%p360_p9), 640, %s366_s4  ;;  %p2154_p11 = scmp.lt.s32.totalorder (!%p360_p9), %s2153_s5, 4 }
  0x45   : > { %s415_s7 = smul.u32 (!%p360_p9), 40, %s2371_s15  ;;  %p421_p13 = scmp.lt.s32.totalorder (!%p360_p9), %s2367_s14, 5 }
  0x46   : > { %s2650_s30 = scalar_lea.vmem (!%p360_p9), [#allocation2], %s2269_s6  ;;  %p2161_p0 = scmp.ne.s32.totalorder (!%p360_p9), %s2367_s14, 0 }
  0x47   : > { %p416_p12 = scmp.lt.s32.totalorder (!%p360_p9), %s415_s7, 79 }
  0x4a   : > { %s2976_s5 = smov (!%p405_p10, %s2153_s5), 0  ;;  %s2980_s7 = smov (!%p416_p12, %s415_s7), 79 }
  0x4b   : > { %s2978_s5 = smov (!%p2154_p11, %s2976_s5), 4  ;;  %s2642_s12 = scalar_lea.vmem %s2961_s2, %s2980_s7  ;;  %v2385_v16 = vmov (!%p2161_p0), 0.0  }
  0x4c   : > { %s2159_s8 = sshll.u32 %s2978_s5, 2 }
  0x4d   : > { %s2637_s11 = scalar_lea.vmem %s2959_s0, %s2159_s8 }
  0x4e   : > { %s422_s24 = scalar_select %p421_p13, %s2367_s14, 5 }
  0x4f   : > { %434 = sbr.rel (%p2161_p0) target bundleno = 105 (0x69), region = 59 }
  0x50   : > { %s2270_s25 = smul.u32 80, %s422_s24 }
  0x52   : > { %s426_s26 = sadd.s32 %s2270_s25, %s2980_s7 }
  0x53   : > { %s2160_s15 = sshll.u32 %s426_s26, 3 }
  0x54   : > { %s2648_s29 = scalar_lea.vmem %s2962_s3, %s2160_s15 }
  0x55   : > { %435 = vst [vmem:[%s2648_s29] sm:$0xff] (!%p2161_p0), %v2385_v16  ;;  %436 = vst [vmem:[%s2648_s29 + $0x8] sm:$0xff] (!%p2161_p0), %v2385_v16 }
  0x56   : > { %437 = vst [vmem:[%s2648_s29 + $0x10] sm:$0xff] %v2385_v16  ;;  %438 = vst [vmem:[%s2648_s29 + $0x18] sm:$0xff] %v2385_v16 }
  0x57   : > { %439 = vst [vmem:[%s2648_s29 + $0x20] sm:$0xff] %v2385_v16  ;;  %440 = vst [vmem:[%s2648_s29 + $0x28] sm:$0xff] %v2385_v16 }
  0x58   : > { %441 = vst [vmem:[%s2648_s29 + $0x30] sm:$0xff] %v2385_v16  ;;  %442 = vst [vmem:[%s2648_s29 + $0x38] sm:$0xff] %v2385_v16 }
  0x59   : > { %443 = vst [vmem:[%s2648_s29 + $0x40] sm:$0xff] %v2385_v16  ;;  %444 = vst [vmem:[%s2648_s29 + $0x48] sm:$0xff] %v2385_v16 }
  0x5a   : > { %445 = vst [vmem:[%s2648_s29 + $0x50] sm:$0xff] %v2385_v16  ;;  %446 = vst [vmem:[%s2648_s29 + $0x58] sm:$0xff] %v2385_v16 }
  0x5b   : > { %447 = vst [vmem:[%s2648_s29 + $0x60] sm:$0xff] %v2385_v16  ;;  %448 = vst [vmem:[%s2648_s29 + $0x68] sm:$0xff] %v2385_v16 }
  0x5c   : > { %449 = vst [vmem:[%s2648_s29 + $0x70] sm:$0xff] %v2385_v16  ;;  %450 = vst [vmem:[%s2648_s29 + $0x78] sm:$0xff] %v2385_v16 }
  0x5d   : > { %451 = vst [vmem:[%s2648_s29 + $0x80] sm:$0xff] %v2385_v16  ;;  %452 = vst [vmem:[%s2648_s29 + $0x88] sm:$0xff] %v2385_v16 }
  0x5e   : > { %453 = vst [vmem:[%s2648_s29 + $0x90] sm:$0xff] %v2385_v16  ;;  %454 = vst [vmem:[%s2648_s29 + $0x98] sm:$0xff] %v2385_v16 }
  0x5f   : > { %455 = vst [vmem:[%s2648_s29 + $0xa0] sm:$0xff] %v2385_v16  ;;  %456 = vst [vmem:[%s2648_s29 + $0xa8] sm:$0xff] %v2385_v16 }
  0x60   : > { %457 = vst [vmem:[%s2648_s29 + $0xb0] sm:$0xff] %v2385_v16  ;;  %458 = vst [vmem:[%s2648_s29 + $0xb8] sm:$0xff] %v2385_v16 }
  0x61   : > { %459 = vst [vmem:[%s2648_s29 + $0xc0] sm:$0xff] %v2385_v16  ;;  %460 = vst [vmem:[%s2648_s29 + $0xc8] sm:$0xff] %v2385_v16 }
  0x62   : > { %461 = vst [vmem:[%s2648_s29 + $0xd0] sm:$0xff] %v2385_v16  ;;  %462 = vst [vmem:[%s2648_s29 + $0xd8] sm:$0xff] %v2385_v16 }
  0x63   : > { %463 = vst [vmem:[%s2648_s29 + $0xe0] sm:$0xff] %v2385_v16  ;;  %464 = vst [vmem:[%s2648_s29 + $0xe8] sm:$0xff] %v2385_v16 }
  0x64   : > { %465 = vst [vmem:[%s2648_s29 + $0xf0] sm:$0xff] %v2385_v16  ;;  %466 = vst [vmem:[%s2648_s29 + $0xf8] sm:$0xff] %v2385_v16 }
  0x65   : > { %467 = vst [vmem:[%s2648_s29 + $0x100] sm:$0xff] %v2385_v16  ;;  %468 = vst [vmem:[%s2648_s29 + $0x108] sm:$0xff] %v2385_v16 }
  0x66   : > { %469 = vst [vmem:[%s2648_s29 + $0x110] sm:$0xff] %v2385_v16  ;;  %470 = vst [vmem:[%s2648_s29 + $0x118] sm:$0xff] %v2385_v16 }
  0x67   : > { %471 = vst [vmem:[%s2648_s29 + $0x120] sm:$0xff] %v2385_v16  ;;  %472 = vst [vmem:[%s2648_s29 + $0x128] sm:$0xff] %v2385_v16 }
  0x68   : > { %473 = vst [vmem:[%s2648_s29 + $0x130] sm:$0xff] %v2385_v16  ;;  %474 = vst [vmem:[%s2648_s29 + $0x138] sm:$0xff] %v2385_v16 }
  0x69 PF: > { %p2162_p1 = scmp.le.s32.totalorder %s2367_s14, 0 }
  0x6a   : > { %v480_v17 = vld [vmem:[%s2650_s30] sm:$0xff] (!%p2162_p1)  ;;  %v481_v19 = vld [vmem:[%s2650_s30 + $0x8] sm:$0xff] (!%p2162_p1)  ;;  %v2386_v25 = vmov (!%p2162_p1), 0   ;;  %v482_v32 = vld [vmem:[%s2650_s30 + $0x10] sm:$0xff] (!%p2162_p1)  ;;  %vm1170_vm0 = vcmask (!%p2162_p1), 261120  }
  0x6b   : > { %478 = sbr.rel (%p2162_p1) target bundleno = 406 (0x196), region = 63  ;;  %v500_v18 = vld [vmem:[%s2650_s30 + $0xa0] sm:$0xff] (!%p2162_p1)  ;;  %v501_v21 = vld [vmem:[%s2650_s30 + $0xa8] sm:$0xff] (!%p2162_p1)  ;;  %1206 = vmatprep.mubr.bf16.mxu0 (!%p2162_p1), %v2386_v25  ;;  %1247 = vmatprep.mubr.bf16.mxu1 (!%p2162_p1), %v2386_v25  ;;  %v502_v33 = vld [vmem:[%s2650_s30 + $0xb0] sm:$0xff] (!%p2162_p1) }
  0x6c   : > { %v2164_v20 = vcombine.high (!%p2162_p1), %v480_v17, %v500_v18  ;;  %v2163_v22 = vcombine.low (!%p2162_p1), %v480_v17, %v500_v18  ;;  %v520_v23 = vld [vmem:[%s2650_s30 + $0x140] sm:$0xff] (!%p2162_p1)  ;;  %v2166_v26 = vcombine.high (!%p2162_p1), %v481_v19, %v501_v21  ;;  %v2165_v27 = vcombine.low (!%p2162_p1), %v481_v19, %v501_v21  ;;  %v521_v29 = vld [vmem:[%s2650_s30 + $0x148] sm:$0xff] (!%p2162_p1)  ;;  %v483_v34 = vld [vmem:[%s2650_s30 + $0x18] sm:$0xff] (!%p2162_p1) }
  0x6d   : > { %v540_v24 = vld [vmem:[%s2650_s30 + $0x1e0] sm:$0xff] (!%p2162_p1)  ;;  %v541_v30 = vld [vmem:[%s2650_s30 + $0x1e8] sm:$0xff] (!%p2162_p1)  ;;  %v503_v36 = vld [vmem:[%s2650_s30 + $0xb8] sm:$0xff] (!%p2162_p1)  ;;  %v2168_v38 = vcombine.high (!%p2162_p1), %v482_v32, %v502_v33  ;;  %v2167_v45 = vcombine.low (!%p2162_p1), %v482_v32, %v502_v33 }
  0x6e   : > { %v2204_v28 = vcombine.high (!%p2162_p1), %v520_v23, %v540_v24  ;;  %1174 = vmatprep.subr.bf16.mxu0 (!%p2162_p1), %v2164_v20  ;;  %v2206_v31 = vcombine.high (!%p2162_p1), %v521_v29, %v541_v30  ;;  %1215 = vmatprep.subr.bf16.mxu1 (!%p2162_p1), %v2166_v26  ;;  %v2203_v35 = vcombine.low (!%p2162_p1), %v520_v23, %v540_v24  ;;  %v522_v40 = vld [vmem:[%s2650_s30 + $0x150] sm:$0xff] (!%p2162_p1)  ;;  %v523_v42 = vld [vmem:[%s2650_s30 + $0x158] sm:$0xff] (!%p2162_p1)  ;;  %v2713_v44 = vld [vmem:[%s2637_s11] sm:$0xf] (!%p2162_p1) }
  0x6f   : > { %1175 = vmatpush1.bf16.msra.mxu0 (!%p2162_p1), %v2163_v22  ;;  %1216 = vmatpush1.bf16.msra.mxu1 (!%p2162_p1), %v2165_v27  ;;  %v2205_v37 = vcombine.low (!%p2162_p1), %v521_v29, %v541_v30  ;;  %v2170_v39 = vcombine.high (!%p2162_p1), %v483_v34, %v503_v36  ;;  %v542_v41 = vld [vmem:[%s2650_s30 + $0x1f0] sm:$0xff] (!%p2162_p1)  ;;  %v543_v43 = vld [vmem:[%s2650_s30 + $0x1f8] sm:$0xff] (!%p2162_p1)  ;;  %v2169_v46 = vcombine.low (!%p2162_p1), %v483_v34, %v503_v36  ;;  %v484_v49 = vld [vmem:[%s2650_s30 + $0x20] sm:$0xff] (!%p2162_p1) }
  0x70   : > { %1176 = vmatprep.subr.bf16.mxu0 (!%p2162_p1), %v2204_v28  ;;  %1217 = vmatprep.subr.bf16.mxu1 (!%p2162_p1), %v2206_v31  ;;  %v2208_v47 = vcombine.high (!%p2162_p1), %v522_v40, %v542_v41  ;;  %v2210_v48 = vcombine.high (!%p2162_p1), %v523_v42, %v543_v43  ;;  %v504_v50 = vld [vmem:[%s2650_s30 + $0xc0] sm:$0xff] (!%p2162_p1)  ;;  %v485_v51 = vld [vmem:[%s2650_s30 + $0x28] sm:$0xff] (!%p2162_p1)  ;;  %v2207_v53 = vcombine.low (!%p2162_p1), %v522_v40, %v542_v41  ;;  %v486_v1 = vld [vmem:[%s2650_s30 + $0x30] sm:$0xff] (!%p2162_p1) }
  0x71   : > { %v505_v52 = vld [vmem:[%s2650_s30 + $0xc8] sm:$0xff] (!%p2162_p1)  ;;  %v2209_v54 = vcombine.low (!%p2162_p1), %v523_v42, %v543_v43  ;;  %v2172_v55 = vcombine.high (!%p2162_p1), %v484_v49, %v504_v50  ;;  %v524_v57 = vld [vmem:[%s2650_s30 + $0x160] sm:$0xff] (!%p2162_p1)  ;;  %v2171_v61 = vcombine.low (!%p2162_p1), %v484_v49, %v504_v50  ;;  %v506_v2 = vld [vmem:[%s2650_s30 + $0xd0] sm:$0xff] (!%p2162_p1) }
  0x72   : > { %v2174_v56 = vcombine.high %v485_v51, %v505_v52  ;;  %v544_v58 = vld [vmem:[%s2650_s30 + $0x200] sm:$0xff]  ;;  %v525_v59 = vld [vmem:[%s2650_s30 + $0x168] sm:$0xff]  ;;  %v2173_v62 = vcombine.low %v485_v51, %v505_v52  ;;  %v487_v3 = vld [vmem:[%s2650_s30 + $0x38] sm:$0xff]  ;;  %v2176_v7 = vcombine.high %v486_v1, %v506_v2  ;;  %v2175_v13 = vcombine.low %v486_v1, %v506_v2 }
  0x73   : > { %1177 = vmatpush1.bf16.msra.mxu0 %v2203_v35  ;;  %1218 = vmatpush1.bf16.msra.mxu1 %v2205_v37  ;;  %v545_v60 = vld [vmem:[%s2650_s30 + $0x208] sm:$0xff]  ;;  %v2212_v63 = vcombine.high %v524_v57, %v544_v58  ;;  %v507_v4 = vld [vmem:[%s2650_s30 + $0xd8] sm:$0xff]  ;;  %v2211_v5 = vcombine.low %v524_v57, %v544_v58  ;;  %v526_v9 = vld [vmem:[%s2650_s30 + $0x170] sm:$0xff] }
  0x74   : > { %1256 = vmatprep.subr.bf16.mxu0 %v2168_v38  ;;  %1297 = vmatprep.subr.bf16.mxu1 %v2170_v39  ;;  %v2214_v0 = vcombine.high %v525_v59, %v545_v60  ;;  %v2213_v6 = vcombine.low %v525_v59, %v545_v60  ;;  %v2178_v8 = vcombine.high %v487_v3, %v507_v4  ;;  %v546_v10 = vld [vmem:[%s2650_s30 + $0x210] sm:$0xff]  ;;  %v527_v11 = vld [vmem:[%s2650_s30 + $0x178] sm:$0xff]  ;;  %v488_v17 = vld [vmem:[%s2650_s30 + $0x40] sm:$0xff] }
  0x75   : > { %v547_v12 = vld [vmem:[%s2650_s30 + $0x218] sm:$0xff]  ;;  %v2177_v14 = vcombine.low %v487_v3, %v507_v4  ;;  %v2216_v15 = vcombine.high %v526_v9, %v546_v10  ;;  %v508_v18 = vld [vmem:[%s2650_s30 + $0xe0] sm:$0xff]  ;;  %v489_v19 = vld [vmem:[%s2650_s30 + $0x48] sm:$0xff]  ;;  %v2215_v21 = vcombine.low %v526_v9, %v546_v10 }
  0x76   : > { %2243 = vmatmul.mubr.msk.bf16.vlgmr.msra.gmra.mrb[0].mxu0 %vm1170_vm0, %v2713_v44  ;;  %2244 = vmatmul.mubr.msk.bf16.vlgmr.msra.gmra.mrb[0].mxu1 %vm1170_vm0, %v2713_v44  ;;  %v2218_v16 = vcombine.high %v527_v11, %v547_v12  ;;  %v509_v20 = vld [vmem:[%s2650_s30 + $0xe8] sm:$0xff]  ;;  %v2217_v22 = vcombine.low %v527_v11, %v547_v12  ;;  %v2180_v23 = vcombine.high %v488_v17, %v508_v18  ;;  %v528_v26 = vld [vmem:[%s2650_s30 + $0x180] sm:$0xff]  ;;  %v490_v34 = vld [vmem:[%s2650_s30 + $0x50] sm:$0xff] }
  0x77   : > { %1257 = vmatpush1.bf16.msra.mxu0 %v2167_v45  ;;  %1298 = vmatpush1.bf16.msra.mxu1 %v2169_v46  ;;  %v2182_v24 = vcombine.high %v489_v19, %v509_v20  ;;  %v548_v27 = vld [vmem:[%s2650_s30 + $0x220] sm:$0xff]  ;;  %v529_v28 = vld [vmem:[%s2650_s30 + $0x188] sm:$0xff]  ;;  %v2179_v30 = vcombine.low %v488_v17, %v508_v18  ;;  %v2181_v31 = vcombine.low %v489_v19, %v509_v20  ;;  %v510_v35 = vld [vmem:[%s2650_s30 + $0xf0] sm:$0xff] }
  0x78   : > { %1258 = vmatprep.subr.bf16.mxu0 %v2208_v47  ;;  %1299 = vmatprep.subr.bf16.mxu1 %v2210_v48  ;;  %v549_v29 = vld [vmem:[%s2650_s30 + $0x228] sm:$0xff]  ;;  %v2220_v32 = vcombine.high %v528_v26, %v548_v27  ;;  %v491_v36 = vld [vmem:[%s2650_s30 + $0x58] sm:$0xff]  ;;  %v2219_v38 = vcombine.low %v528_v26, %v548_v27  ;;  %v2184_v40 = vcombine.high %v490_v34, %v510_v35  ;;  %v530_v42 = vld [vmem:[%s2650_s30 + $0x190] sm:$0xff] }
  0x79   : > { %1288 = vmatprep.mubr.bf16.mxu0 %v2386_v25  ;;  %1329 = vmatprep.mubr.bf16.mxu1 %v2386_v25  ;;  %v2222_v33 = vcombine.high %v529_v28, %v549_v29  ;;  %v511_v37 = vld [vmem:[%s2650_s30 + $0xf8] sm:$0xff]  ;;  %v2221_v39 = vcombine.low %v529_v28, %v549_v29  ;;  %v550_v43 = vld [vmem:[%s2650_s30 + $0x230] sm:$0xff]  ;;  %v2183_v47 = vcombine.low %v490_v34, %v510_v35  ;;  %v492_v51 = vld [vmem:[%s2650_s30 + $0x60] sm:$0xff] }
  0x7a   : > { %v2186_v41 = vcombine.high %v491_v36, %v511_v37  ;;  %v531_v45 = vld [vmem:[%s2650_s30 + $0x198] sm:$0xff]  ;;  %v2185_v48 = vcombine.low %v491_v36, %v511_v37  ;;  %v2224_v49 = vcombine.high %v530_v42, %v550_v43  ;;  %v512_v52 = vld [vmem:[%s2650_s30 + $0x100] sm:$0xff]  ;;  %v494_v3 = vld [vmem:[%s2650_s30 + $0x70] sm:$0xff] }
  0x7b   : > { %1259 = vmatpush1.bf16.msra.mxu0 %v2207_v53  ;;  %1300 = vmatpush1.bf16.msra.mxu1 %v2209_v54  ;;  %v551_v46 = vld [vmem:[%s2650_s30 + $0x238] sm:$0xff]  ;;  %v493_v53 = vld [vmem:[%s2650_s30 + $0x68] sm:$0xff]  ;;  %v2188_v57 = vcombine.high %v492_v51, %v512_v52  ;;  %v532_v59 = vld [vmem:[%s2650_s30 + $0x1a0] sm:$0xff] }
  0x7c   : > { %1338 = vmatprep.subr.bf16.mxu0 %v2172_v55  ;;  %1379 = vmatprep.subr.bf16.mxu1 %v2174_v56  ;;  %v2226_v50 = vcombine.high %v531_v45, %v551_v46  ;;  %v513_v54 = vld [vmem:[%s2650_s30 + $0x108] sm:$0xff]  ;;  %v2223_v55 = vcombine.low %v530_v42, %v550_v43  ;;  %v2225_v56 = vcombine.low %v531_v45, %v551_v46  ;;  %v552_v60 = vld [vmem:[%s2650_s30 + $0x240] sm:$0xff]  ;;  %v514_v4 = vld [vmem:[%s2650_s30 + $0x110] sm:$0xff] }
  0x7d   : > { %v2190_v58 = vcombine.high %v493_v53, %v513_v54  ;;  %v2228_v1 = vcombine.high %v532_v59, %v552_v60  ;;  %v2192_v9 = vcombine.high %v494_v3, %v514_v4  ;;  %v534_v11 = vld [vmem:[%s2650_s30 + $0x1b0] sm:$0xff]  ;;  %v496_v19 = vld [vmem:[%s2650_s30 + $0x80] sm:$0xff] }
  0x7e   : > { %2245 = vmatmul.mubr.msk.bf16.vlgmr.msra.gmra.mrb[4].mxu0 %vm1170_vm0, %v2713_v44  ;;  %2246 = vmatmul.mubr.msk.bf16.vlgmr.msra.gmra.mrb[4].mxu1 %vm1170_vm0, %v2713_v44  ;;  %v554_v12 = vld [vmem:[%s2650_s30 + $0x250] sm:$0xff]  ;;  %v516_v20 = vld [vmem:[%s2650_s30 + $0x120] sm:$0xff] }
  0x7f   : > { %1339 = vmatpush1.bf16.msra.mxu0 %v2171_v61  ;;  %1380 = vmatpush1.bf16.msra.mxu1 %v2173_v62  ;;  %v533_v61 = vld [vmem:[%s2650_s30 + $0x1a8] sm:$0xff]  ;;  %v2232_v17 = vcombine.high %v534_v11, %v554_v12  ;;  %v2196_v26 = vcombine.high %v496_v19, %v516_v20  ;;  %v536_v28 = vld [vmem:[%s2650_s30 + $0x1c0] sm:$0xff]  ;;  %v498_v36 = vld [vmem:[%s2650_s30 + $0x90] sm:$0xff] }
  0x80   : > { %1340 = vmatprep.subr.bf16.mxu0 %v2212_v63  ;;  %1381 = vmatprep.subr.bf16.mxu1 %v2214_v0  ;;  %v553_v62 = vld [vmem:[%s2650_s30 + $0x248] sm:$0xff]  ;;  %v2187_v63 = vcombine.low %v492_v51, %v512_v52  ;;  %v2189_v0 = vcombine.low %v493_v53, %v513_v54  ;;  %v556_v29 = vld [vmem:[%s2650_s30 + $0x260] sm:$0xff]  ;;  %v518_v37 = vld [vmem:[%s2650_s30 + $0x130] sm:$0xff] }
  0x81   : > { %1370 = vmatprep.mubr.bf16.mxu0 %v2386_v25  ;;  %1411 = vmatprep.mubr.bf16.mxu1 %v2386_v25  ;;  %v2230_v2 = vcombine.high %v533_v61, %v553_v62  ;;  %v2236_v34 = vcombine.high %v536_v28, %v556_v29  ;;  %v2200_v42 = vcombine.high %v498_v36, %v518_v37  ;;  %v538_v45 = vld [vmem:[%s2650_s30 + $0x1d0] sm:$0xff] }
  0x82   : > { %v558_v46 = vld [vmem:[%s2650_s30 + $0x270] sm:$0xff] }
  0x83   : > { %1341 = vmatpush1.bf16.msra.mxu0 %v2211_v5  ;;  %1382 = vmatpush1.bf16.msra.mxu1 %v2213_v6  ;;  %v495_v5 = vld [vmem:[%s2650_s30 + $0x78] sm:$0xff]  ;;  %v2240_v51 = vcombine.high %v538_v45, %v558_v46  ;;  %v2239_v53 = vcombine.low %v538_v45, %v558_v46 }
  0x84   : > { %1420 = vmatprep.subr.bf16.mxu0 %v2176_v7  ;;  %1461 = vmatprep.subr.bf16.mxu1 %v2178_v8  ;;  %v515_v6 = vld [vmem:[%s2650_s30 + $0x118] sm:$0xff]  ;;  %v2227_v7 = vcombine.low %v532_v59, %v552_v60  ;;  %v2229_v8 = vcombine.low %v533_v61, %v553_v62 }
  0x85   : > { %v2194_v10 = vcombine.high %v495_v5, %v515_v6 }
  0x86   : > { %2247 = vmatmul.mubr.msk.bf16.vlgmr.msra.gmra.mrb[8].mxu0 %vm1170_vm0, %v2713_v44  ;;  %2248 = vmatmul.mubr.msk.bf16.vlgmr.msra.gmra.mrb[8].mxu1 %vm1170_vm0, %v2713_v44 }
  0x87   : > { %1421 = vmatpush1.bf16.msra.mxu0 %v2175_v13  ;;  %1462 = vmatpush1.bf16.msra.mxu1 %v2177_v14  ;;  %v535_v13 = vld [vmem:[%s2650_s30 + $0x1b8] sm:$0xff] }
  0x88   : > { %1422 = vmatprep.subr.bf16.mxu0 %v2216_v15  ;;  %1463 = vmatprep.subr.bf16.mxu1 %v2218_v16  ;;  %v555_v14 = vld [vmem:[%s2650_s30 + $0x258] sm:$0xff]  ;;  %v2191_v15 = vcombine.low %v494_v3, %v514_v4  ;;  %v2193_v16 = vcombine.low %v495_v5, %v515_v6 }
  0x89   : > { %1452 = vmatprep.mubr.bf16.mxu0 %v2386_v25  ;;  %1493 = vmatprep.mubr.bf16.mxu1 %v2386_v25  ;;  %v2234_v18 = vcombine.high %v535_v13, %v555_v14 }
  0x8b   : > { %1423 = vmatpush1.bf16.msra.mxu0 %v2215_v21  ;;  %1464 = vmatpush1.bf16.msra.mxu1 %v2217_v22  ;;  %v497_v21 = vld [vmem:[%s2650_s30 + $0x88] sm:$0xff] }
  0x8c   : > { %1502 = vmatprep.subr.bf16.mxu0 %v2180_v23  ;;  %1543 = vmatprep.subr.bf16.mxu1 %v2182_v24  ;;  %v517_v22 = vld [vmem:[%s2650_s30 + $0x128] sm:$0xff]  ;;  %v2231_v23 = vcombine.low %v534_v11, %v554_v12  ;;  %v2233_v24 = vcombine.low %v535_v13, %v555_v14 }
  0x8d   : > { %v2198_v27 = vcombine.high %v497_v21, %v517_v22 }
  0x8e   : > { %2249 = vmatmul.mubr.msk.bf16.vlgmr.msra.gmra.mrb[12].mxu0 %vm1170_vm0, %v2713_v44  ;;  %2250 = vmatmul.mubr.msk.bf16.vlgmr.msra.gmra.mrb[12].mxu1 %vm1170_vm0, %v2713_v44 }
  0x8f   : > { %1503 = vmatpush1.bf16.msra.mxu0 %v2179_v30  ;;  %1544 = vmatpush1.bf16.msra.mxu1 %v2181_v31  ;;  %v537_v30 = vld [vmem:[%s2650_s30 + $0x1c8] sm:$0xff] }
  0x90   : > { %1504 = vmatprep.subr.bf16.mxu0 %v2220_v32  ;;  %1545 = vmatprep.subr.bf16.mxu1 %v2222_v33  ;;  %v557_v31 = vld [vmem:[%s2650_s30 + $0x268] sm:$0xff]  ;;  %v2195_v32 = vcombine.low %v496_v19, %v516_v20  ;;  %v2197_v33 = vcombine.low %v497_v21, %v517_v22 }
  0x91   : > { %1534 = vmatprep.mubr.bf16.mxu0 %v2386_v25  ;;  %1575 = vmatprep.mubr.bf16.mxu1 %v2386_v25  ;;  %v2238_v35 = vcombine.high %v537_v30, %v557_v31 }
  0x93   : > { %1505 = vmatpush1.bf16.msra.mxu0 %v2219_v38  ;;  %1546 = vmatpush1.bf16.msra.mxu1 %v2221_v39  ;;  %v499_v38 = vld [vmem:[%s2650_s30 + $0x98] sm:$0xff] }
  0x94   : > { %1584 = vmatprep.subr.bf16.mxu0 %v2184_v40  ;;  %1625 = vmatprep.subr.bf16.mxu1 %v2186_v41  ;;  %v519_v39 = vld [vmem:[%s2650_s30 + $0x138] sm:$0xff]  ;;  %v2235_v40 = vcombine.low %v536_v28, %v556_v29  ;;  %v2237_v41 = vcombine.low %v537_v30, %v557_v31  ;;  %v561_v29 = vld [vmem:[%s2642_s12 + $0x8] sm:$0xff] }
  0x95   : > { %v2202_v43 = vcombine.high %v499_v38, %v519_v39 }
  0x96   : > { %2251 = vmatmul.mubr.msk.bf16.vlgmr.msra.gmra.mrb[16].mxu0 %vm1170_vm0, %v2713_v44  ;;  %2252 = vmatmul.mubr.msk.bf16.vlgmr.msra.gmra.mrb[16].mxu1 %vm1170_vm0, %v2713_v44 }
  0x97   : > { %1585 = vmatpush1.bf16.msra.mxu0 %v2183_v47  ;;  %1626 = vmatpush1.bf16.msra.mxu1 %v2185_v48  ;;  %v539_v47 = vld [vmem:[%s2650_s30 + $0x1d8] sm:$0xff] }
  0x98   : > { %1586 = vmatprep.subr.bf16.mxu0 %v2224_v49  ;;  %1627 = vmatprep.subr.bf16.mxu1 %v2226_v50  ;;  %v559_v48 = vld [vmem:[%s2650_s30 + $0x278] sm:$0xff]  ;;  %v2199_v49 = vcombine.low %v498_v36, %v518_v37  ;;  %v2201_v50 = vcombine.low %v499_v38, %v519_v39 }
  0x99   : > { %1616 = vmatprep.mubr.bf16.mxu0 %v2386_v25  ;;  %1657 = vmatprep.mubr.bf16.mxu1 %v2386_v25  ;;  %v2242_v52 = vcombine.high %v539_v47, %v559_v48  ;;  %v2241_v54 = vcombine.low %v539_v47, %v559_v48 }
  0x9b   : > { %1587 = vmatpush1.bf16.msra.mxu0 %v2223_v55  ;;  %1628 = vmatpush1.bf16.msra.mxu1 %v2225_v56  ;;  %v570_v55 = vlaneseq }
  0x9c   : > { %1666 = vmatprep.subr.bf16.mxu0 %v2188_v57  ;;  %1707 = vmatprep.subr.bf16.mxu1 %v2190_v58  ;;  %v560_v58 = vld [vmem:[%s2642_s12] sm:$0xff] }
  0x9d   : > { %v571_v56 = vshrl.u32 %v570_v55, 7 }
  0x9e   : > { %2253 = vmatmul.mubr.msk.bf16.vlgmr.msra.gmra.mrb[20].mxu0 %vm1170_vm0, %v2713_v44  ;;  %2254 = vmatmul.mubr.msk.bf16.vlgmr.msra.gmra.mrb[20].mxu1 %vm1170_vm0, %v2713_v44 }
  0x9f   : > { %1667 = vmatpush1.bf16.msra.mxu0 %v2187_v63  ;;  %1708 = vmatpush1.bf16.msra.mxu1 %v2189_v0  ;;  %v2837_v57 = vsub.s32 0, %v571_v56  ;;  %v2840_v59 = vsub.s32 2, %v571_v56  ;;  %v2842_v60 = vsub.s32 1, %v571_v56  ;;  %v2844_v61 = vsub.s32 3, %v571_v56 }
  0xa0   : > { %1668 = vmatprep.subr.bf16.mxu0 %v2228_v1  ;;  %1709 = vmatprep.subr.bf16.mxu1 %v2230_v2  ;;  %v2850_v4 = vsub.s32 4, %v571_v56  ;;  %v2857_v14 = vsub.s32 7, %v571_v56 }
  0xa1   : > { %1698 = vmatprep.mubr.bf16.mxu0 %v2386_v25  ;;  %1739 = vmatprep.mubr.bf16.mxu1 %v2386_v25  ;;  %v581_v62 = vrot.slane %v560_v58, %v2840_v59  ;;  %v577_v63 = vrot.slane %v560_v58, %v2842_v60  ;;  %v609_v36 = vrot.slane %v561_v29, %v2842_v60 }
  0xa2   : > { %v601_v19 = vrot.slane %v560_v58, %v2857_v14  ;;  %v617_v37 = vrot.slane %v561_v29, %v2844_v61 }
  0xa3   : > { %1669 = vmatpush1.bf16.msra.mxu0 %v2227_v7  ;;  %1710 = vmatpush1.bf16.msra.mxu1 %v2229_v8 }
  0xa4   : > { %1748 = vmatprep.subr.bf16.mxu0 %v2192_v9  ;;  %1789 = vmatprep.subr.bf16.mxu1 %v2194_v10  ;;  %v2852_v9 = vsub.s32 6, %v571_v56  ;;  %v2854_v10 = vsub.s32 5, %v571_v56 }
  0xa6   : > { %2255 = vmatmul.mubr.msk.bf16.vlgmr.msra.gmra.mrb[24].mxu0 %vm1170_vm0, %v2713_v44  ;;  %2256 = vmatmul.mubr.msk.bf16.vlgmr.msra.gmra.mrb[24].mxu1 %vm1170_vm0, %v2713_v44 }
  0xa7   : > { %1749 = vmatpush1.bf16.msra.mxu0 %v2191_v15  ;;  %1790 = vmatpush1.bf16.msra.mxu1 %v2193_v16  ;;  %v589_v16 = vrot.slane %v560_v58, %v2850_v4 }
  0xa8   : > { %1750 = vmatprep.subr.bf16.mxu0 %v2232_v17  ;;  %1791 = vmatprep.subr.bf16.mxu1 %v2234_v18  ;;  %v597_v17 = vrot.slane %v560_v58, %v2852_v9  ;;  %v593_v18 = vrot.slane %v560_v58, %v2854_v10 }
  0xa9   : > { %1780 = vmatprep.mubr.bf16.mxu0 %v2386_v25  ;;  %1821 = vmatprep.mubr.bf16.mxu1 %v2386_v25 }
  0xab   : > { %1751 = vmatpush1.bf16.msra.mxu0 %v2231_v23  ;;  %1792 = vmatpush1.bf16.msra.mxu1 %v2233_v24 }
  0xac   : > { %1830 = vmatprep.subr.bf16.mxu0 %v2196_v26  ;;  %1871 = vmatprep.subr.bf16.mxu1 %v2198_v27 }
  0xae   : > { %2257 = vmatmul.mubr.msk.bf16.vlgmr.msra.gmra.mrb[28].mxu0 %vm1170_vm0, %v2713_v44  ;;  %2258 = vmatmul.mubr.msk.bf16.vlgmr.msra.gmra.mrb[28].mxu1 %vm1170_vm0, %v2713_v44 }
  0xaf   : > { %1831 = vmatpush1.bf16.msra.mxu0 %v2195_v32  ;;  %1872 = vmatpush1.bf16.msra.mxu1 %v2197_v33 }
  0xb0   : > { %1832 = vmatprep.subr.bf16.mxu0 %v2236_v34  ;;  %1873 = vmatprep.subr.bf16.mxu1 %v2238_v35  ;;  %v605_v34 = vrot.slane %v561_v29, %v2837_v57  ;;  %v613_v35 = vrot.slane %v561_v29, %v2840_v59 }
  0xb1   : > { %1862 = vmatprep.mubr.bf16.mxu0 %v2386_v25  ;;  %1903 = vmatprep.mubr.bf16.mxu1 %v2386_v25 }
  0xb3   : > { %1833 = vmatpush1.bf16.msra.mxu0 %v2235_v40  ;;  %1874 = vmatpush1.bf16.msra.mxu1 %v2237_v41 }
  0xb4   : > { %1912 = vmatprep.subr.bf16.mxu0 %v2200_v42  ;;  %1953 = vmatprep.subr.bf16.mxu1 %v2202_v43 }
  0xb6   : > { %2259 = vmatmul.mubr.msk.bf16.vlgmr.msra.gmra.mrb[32].mxu0 %vm1170_vm0, %v2713_v44  ;;  %2260 = vmatmul.mubr.msk.bf16.vlgmr.msra.gmra.mrb[32].mxu1 %vm1170_vm0, %v2713_v44 }
  0xb7   : > { %1913 = vmatpush1.bf16.msra.mxu0 %v2199_v49  ;;  %1954 = vmatpush1.bf16.msra.mxu1 %v2201_v50 }
  0xb8   : > { %1914 = vmatprep.subr.bf16.mxu0 %v2240_v51  ;;  %1955 = vmatprep.subr.bf16.mxu1 %v2242_v52  ;;  %v621_v51 = vrot.slane %v561_v29, %v2850_v4  ;;  %v629_v52 = vrot.slane %v561_v29, %v2852_v9 }
  0xb9   : > { %1944 = vmatprep.mubr.bf16.mxu0 %v2386_v25  ;;  %1985 = vmatprep.mubr.bf16.mxu1 %v2386_v25  ;;  %v573_v25 = vrot.slane %v560_v58, %v2837_v57 }
  0xbb   : > { %1915 = vmatpush1.bf16.msra.mxu0 %v2239_v53  ;;  %1956 = vmatpush1.bf16.msra.mxu1 %v2241_v54  ;;  %v625_v53 = vrot.slane %v561_v29, %v2854_v10  ;;  %v633_v54 = vrot.slane %v561_v29, %v2857_v14 }
  0xbe   : > { %2261 = vmatmul.mubr.msk.bf16.vlgmr.msra.gmra.mrb[36].mxu0 %vm1170_vm0, %v2713_v44  ;;  %2262 = vmatmul.mubr.msk.bf16.vlgmr.msra.gmra.mrb[36].mxu1 %vm1170_vm0, %v2713_v44  ;;  %v585_v44 = vrot.slane %v560_v58, %v2844_v61 }
 0x149   : > { %v1208_v0 = vpop.f32.mrb[0].mxu0  ;;  %v1249_v2 = vpop.f32.mrb[0].mxu1 }
 0x14a   : > { %v1209_v1 = vadd.f32 %v1208_v0, %v573_v25  ;;  %v1210_v3 = vpop.f32.mrb[1].mxu0  ;;  %v1250_v5 = vadd.f32 %v1249_v2, %v581_v62  ;;  %v1251_v7 = vpop.f32.mrb[1].mxu1 }
 0x14b   : > { %v1211_v6 = vadd.f32 %v1210_v3, %v577_v63  ;;  %v1212_v8 = vpop.f32.mrb[2].mxu0  ;;  %v1252_v11 = vadd.f32 %v1251_v7, %v585_v44  ;;  %v1253_v12 = vpop.f32.mrb[2].mxu1 }
 0x14c   : > { %1994 = vst [vmem:[%s2648_s29] sm:$0xff] %v1209_v1  ;;  %v1213_v13 = vpop.f32.mrb[3].mxu0  ;;  %1996 = vst [vmem:[%s2648_s29 + $0x10] sm:$0xff] %v1250_v5  ;;  %v1254_v15 = vpop.f32.mrb[3].mxu1  ;;  %v562_v1 = vld [vmem:[%s2642_s12 + $0x10] sm:$0xff] }
 0x14d   : > { %1995 = vst [vmem:[%s2648_s29 + $0x8] sm:$0xff] %v1211_v6  ;;  %1997 = vst [vmem:[%s2648_s29 + $0x18] sm:$0xff] %v1252_v11  ;;  %v637_v7 = vrot.slane %v562_v1, %v2837_v57  ;;  %v645_v8 = vrot.slane %v562_v1, %v2840_v59  ;;  %v641_v11 = vrot.slane %v562_v1, %v2842_v60 }
 0x14e   : > { %v649_v12 = vrot.slane %v562_v1, %v2844_v61  ;;  %v657_v29 = vrot.slane %v562_v1, %v2854_v10 }
 0x151   : > { %v1290_v20 = vpop.f32.mrb[4].mxu0  ;;  %v1331_v22 = vpop.f32.mrb[4].mxu1 }
 0x152   : > { %v1291_v21 = vadd.f32 %v1290_v20, %v589_v16  ;;  %v1292_v23 = vpop.f32.mrb[5].mxu0  ;;  %v1332_v24 = vadd.f32 %v1331_v22, %v597_v17  ;;  %v1333_v27 = vpop.f32.mrb[5].mxu1 }
 0x153   : > { %v1293_v26 = vadd.f32 %v1292_v23, %v593_v18  ;;  %v1294_v28 = vpop.f32.mrb[6].mxu0  ;;  %v1334_v30 = vadd.f32 %v1333_v27, %v601_v19  ;;  %v1335_v31 = vpop.f32.mrb[6].mxu1  ;;  %v653_v27 = vrot.slane %v562_v1, %v2850_v4 }
 0x154   : > { %1998 = vst [vmem:[%s2648_s29 + $0x20] sm:$0xff] %v1291_v21  ;;  %v1295_v32 = vpop.f32.mrb[7].mxu0  ;;  %2000 = vst [vmem:[%s2648_s29 + $0x30] sm:$0xff] %v1332_v24  ;;  %v1336_v33 = vpop.f32.mrb[7].mxu1  ;;  %v661_v28 = vrot.slane %v562_v1, %v2852_v9 }
 0x155   : > { %1999 = vst [vmem:[%s2648_s29 + $0x28] sm:$0xff] %v1293_v26  ;;  %2001 = vst [vmem:[%s2648_s29 + $0x38] sm:$0xff] %v1334_v30  ;;  %v665_v30 = vrot.slane %v562_v1, %v2857_v14 }
 0x159   : > { %v1372_v38 = vpop.f32.mrb[8].mxu0  ;;  %v1413_v40 = vpop.f32.mrb[8].mxu1 }
 0x15a   : > { %v1373_v39 = vadd.f32 %v1372_v38, %v605_v34  ;;  %v1374_v41 = vpop.f32.mrb[9].mxu0  ;;  %v1414_v42 = vadd.f32 %v1413_v40, %v613_v35  ;;  %v1415_v45 = vpop.f32.mrb[9].mxu1 }
 0x15b   : > { %v1375_v43 = vadd.f32 %v1374_v41, %v609_v36  ;;  %v1376_v46 = vpop.f32.mrb[10].mxu0  ;;  %v1416_v47 = vadd.f32 %v1415_v45, %v617_v37  ;;  %v1417_v48 = vpop.f32.mrb[10].mxu1 }
 0x15c   : > { %2002 = vst [vmem:[%s2648_s29 + $0x40] sm:$0xff] %v1373_v39  ;;  %v1377_v49 = vpop.f32.mrb[11].mxu0  ;;  %2004 = vst [vmem:[%s2648_s29 + $0x50] sm:$0xff] %v1414_v42  ;;  %v1418_v50 = vpop.f32.mrb[11].mxu1  ;;  %v563_v39 = vld [vmem:[%s2642_s12 + $0x18] sm:$0xff] }
 0x15d   : > { %2003 = vst [vmem:[%s2648_s29 + $0x48] sm:$0xff] %v1375_v43  ;;  %2005 = vst [vmem:[%s2648_s29 + $0x58] sm:$0xff] %v1416_v47  ;;  %v669_v45 = vrot.slane %v563_v39, %v2837_v57  ;;  %v677_v46 = vrot.slane %v563_v39, %v2840_v59  ;;  %v673_v47 = vrot.slane %v563_v39, %v2842_v60 }
 0x15e   : > { %v681_v48 = vrot.slane %v563_v39, %v2844_v61  ;;  %v689_v1 = vrot.slane %v563_v39, %v2854_v10 }
 0x161   : > { %v1454_v55 = vpop.f32.mrb[12].mxu0  ;;  %v1495_v58 = vpop.f32.mrb[12].mxu1 }
 0x162   : > { %v1455_v56 = vadd.f32 %v1454_v55, %v621_v51  ;;  %v1456_v25 = vpop.f32.mrb[13].mxu0  ;;  %v1496_v62 = vadd.f32 %v1495_v58, %v629_v52  ;;  %v1497_v44 = vpop.f32.mrb[13].mxu1 }
 0x163   : > { %v1457_v63 = vadd.f32 %v1456_v25, %v625_v53  ;;  %v1458_v0 = vpop.f32.mrb[14].mxu0  ;;  %v1498_v2 = vadd.f32 %v1497_v44, %v633_v54  ;;  %v1499_v3 = vpop.f32.mrb[14].mxu1  ;;  %v685_v44 = vrot.slane %v563_v39, %v2850_v4 }
 0x164   : > { %2006 = vst [vmem:[%s2648_s29 + $0x60] sm:$0xff] %v1455_v56  ;;  %v1459_v5 = vpop.f32.mrb[15].mxu0  ;;  %2008 = vst [vmem:[%s2648_s29 + $0x70] sm:$0xff] %v1496_v62  ;;  %v1500_v6 = vpop.f32.mrb[15].mxu1  ;;  %v693_v0 = vrot.slane %v563_v39, %v2852_v9 }
 0x165   : > { %2007 = vst [vmem:[%s2648_s29 + $0x68] sm:$0xff] %v1457_v63  ;;  %2009 = vst [vmem:[%s2648_s29 + $0x78] sm:$0xff] %v1498_v2  ;;  %v697_v2 = vrot.slane %v563_v39, %v2857_v14 }
 0x169   : > { %v1536_v13 = vpop.f32.mrb[16].mxu0  ;;  %v1577_v16 = vpop.f32.mrb[16].mxu1 }
 0x16a   : > { %v1537_v15 = vadd.f32 %v1536_v13, %v637_v7  ;;  %v1538_v17 = vpop.f32.mrb[17].mxu0  ;;  %v1578_v18 = vadd.f32 %v1577_v16, %v645_v8  ;;  %v1579_v20 = vpop.f32.mrb[17].mxu1 }
 0x16b   : > { %v1539_v19 = vadd.f32 %v1538_v17, %v641_v11  ;;  %v1540_v21 = vpop.f32.mrb[18].mxu0  ;;  %v1580_v22 = vadd.f32 %v1579_v20, %v649_v12  ;;  %v1581_v23 = vpop.f32.mrb[18].mxu1 }
 0x16c   : > { %2010 = vst [vmem:[%s2648_s29 + $0x80] sm:$0xff] %v1537_v15  ;;  %v1541_v24 = vpop.f32.mrb[19].mxu0  ;;  %2012 = vst [vmem:[%s2648_s29 + $0x90] sm:$0xff] %v1578_v18  ;;  %v1582_v26 = vpop.f32.mrb[19].mxu1  ;;  %v564_v15 = vld [vmem:[%s2642_s12 + $0x20] sm:$0xff] }
 0x16d   : > { %2011 = vst [vmem:[%s2648_s29 + $0x88] sm:$0xff] %v1539_v19  ;;  %2013 = vst [vmem:[%s2648_s29 + $0x98] sm:$0xff] %v1580_v22  ;;  %v701_v20 = vrot.slane %v564_v15, %v2837_v57  ;;  %v709_v21 = vrot.slane %v564_v15, %v2840_v59  ;;  %v705_v22 = vrot.slane %v564_v15, %v2842_v60 }
 0x16e   : > { %v713_v23 = vrot.slane %v564_v15, %v2844_v61  ;;  %v717_v60 = vrot.slane %v564_v15, %v2850_v4  ;;  %v725_v61 = vrot.slane %v564_v15, %v2852_v9 }
 0x171   : > { %v1618_v31 = vpop.f32.mrb[20].mxu0  ;;  %v1659_v33 = vpop.f32.mrb[20].mxu1 }
 0x172   : > { %v1619_v32 = vadd.f32 %v1618_v31, %v653_v27  ;;  %v1620_v34 = vpop.f32.mrb[21].mxu0  ;;  %v1660_v35 = vadd.f32 %v1659_v33, %v661_v28  ;;  %v1661_v37 = vpop.f32.mrb[21].mxu1 }
 0x173   : > { %v1621_v36 = vadd.f32 %v1620_v34, %v657_v29  ;;  %v1622_v38 = vpop.f32.mrb[22].mxu0  ;;  %v1662_v40 = vadd.f32 %v1661_v37, %v665_v30  ;;  %v1663_v41 = vpop.f32.mrb[22].mxu1 }
 0x174   : > { %2014 = vst [vmem:[%s2648_s29 + $0xa0] sm:$0xff] %v1619_v32  ;;  %v1623_v42 = vpop.f32.mrb[23].mxu0  ;;  %2016 = vst [vmem:[%s2648_s29 + $0xb0] sm:$0xff] %v1660_v35  ;;  %v1664_v43 = vpop.f32.mrb[23].mxu1  ;;  %v721_v35 = vrot.slane %v564_v15, %v2854_v10 }
 0x175   : > { %2015 = vst [vmem:[%s2648_s29 + $0xa8] sm:$0xff] %v1621_v36  ;;  %2017 = vst [vmem:[%s2648_s29 + $0xb8] sm:$0xff] %v1662_v40  ;;  %v729_v36 = vrot.slane %v564_v15, %v2857_v14 }
 0x179   : > { %v1700_v49 = vpop.f32.mrb[24].mxu0  ;;  %v1741_v51 = vpop.f32.mrb[24].mxu1 }
 0x17a   : > { %v1701_v50 = vadd.f32 %v1700_v49, %v669_v45  ;;  %v1702_v52 = vpop.f32.mrb[25].mxu0  ;;  %v1742_v53 = vadd.f32 %v1741_v51, %v677_v46  ;;  %v1743_v55 = vpop.f32.mrb[25].mxu1 }
 0x17b   : > { %v1703_v54 = vadd.f32 %v1702_v52, %v673_v47  ;;  %v1704_v56 = vpop.f32.mrb[26].mxu0  ;;  %v1744_v58 = vadd.f32 %v1743_v55, %v681_v48  ;;  %v1745_v25 = vpop.f32.mrb[26].mxu1 }
 0x17c   : > { %2018 = vst [vmem:[%s2648_s29 + $0xc0] sm:$0xff] %v1701_v50  ;;  %v1705_v62 = vpop.f32.mrb[27].mxu0  ;;  %2020 = vst [vmem:[%s2648_s29 + $0xd0] sm:$0xff] %v1742_v53  ;;  %v1746_v63 = vpop.f32.mrb[27].mxu1 }
 0x17d   : > { %2019 = vst [vmem:[%s2648_s29 + $0xc8] sm:$0xff] %v1703_v54  ;;  %2021 = vst [vmem:[%s2648_s29 + $0xd8] sm:$0xff] %v1744_v58 }
 0x181   : > { %v1782_v3 = vpop.f32.mrb[28].mxu0  ;;  %v1823_v6 = vpop.f32.mrb[28].mxu1 }
 0x182   : > { %v1783_v5 = vadd.f32 %v1782_v3, %v685_v44  ;;  %v1784_v7 = vpop.f32.mrb[29].mxu0  ;;  %v1824_v8 = vadd.f32 %v1823_v6, %v693_v0  ;;  %v1825_v12 = vpop.f32.mrb[29].mxu1 }
 0x183   : > { %v1785_v11 = vadd.f32 %v1784_v7, %v689_v1  ;;  %v1786_v13 = vpop.f32.mrb[30].mxu0  ;;  %v1826_v16 = vadd.f32 %v1825_v12, %v697_v2  ;;  %v1827_v17 = vpop.f32.mrb[30].mxu1 }
 0x184   : > { %2022 = vst [vmem:[%s2648_s29 + $0xe0] sm:$0xff] %v1783_v5  ;;  %v1787_v18 = vpop.f32.mrb[31].mxu0  ;;  %2024 = vst [vmem:[%s2648_s29 + $0xf0] sm:$0xff] %v1824_v8  ;;  %v1828_v19 = vpop.f32.mrb[31].mxu1 }
 0x185   : > { %2023 = vst [vmem:[%s2648_s29 + $0xe8] sm:$0xff] %v1785_v11  ;;  %2025 = vst [vmem:[%s2648_s29 + $0xf8] sm:$0xff] %v1826_v16 }
 0x189   : > { %v1864_v24 = vpop.f32.mrb[32].mxu0  ;;  %v1905_v27 = vpop.f32.mrb[32].mxu1 }
 0x18a   : > { %v1865_v26 = vadd.f32 %v1864_v24, %v701_v20  ;;  %v1866_v28 = vpop.f32.mrb[33].mxu0  ;;  %v1906_v29 = vadd.f32 %v1905_v27, %v709_v21  ;;  %v1907_v31 = vpop.f32.mrb[33].mxu1 }
 0x18b   : > { %v1867_v30 = vadd.f32 %v1866_v28, %v705_v22  ;;  %v1868_v32 = vpop.f32.mrb[34].mxu0  ;;  %v1908_v33 = vadd.f32 %v1907_v31, %v713_v23  ;;  %v1909_v57 = vpop.f32.mrb[34].mxu1 }
 0x18c   : > { %2026 = vst [vmem:[%s2648_s29 + $0x100] sm:$0xff] %v1865_v26  ;;  %v1869_v34 = vpop.f32.mrb[35].mxu0  ;;  %2028 = vst [vmem:[%s2648_s29 + $0x110] sm:$0xff] %v1906_v29  ;;  %v1910_v59 = vpop.f32.mrb[35].mxu1 }
 0x18d   : > { %2027 = vst [vmem:[%s2648_s29 + $0x108] sm:$0xff] %v1867_v30  ;;  %2029 = vst [vmem:[%s2648_s29 + $0x118] sm:$0xff] %v1908_v33 }
 0x191   : > { %v1946_v37 = vpop.f32.mrb[36].mxu0  ;;  %v1987_v39 = vpop.f32.mrb[36].mxu1 }
 0x192   : > { %v1947_v38 = vadd.f32 %v1946_v37, %v717_v60  ;;  %v1948_v40 = vpop.f32.mrb[37].mxu0  ;;  %v1988_v41 = vadd.f32 %v1987_v39, %v725_v61  ;;  %v1989_v43 = vpop.f32.mrb[37].mxu1 }
 0x193   : > { %v1949_v42 = vadd.f32 %v1948_v40, %v721_v35  ;;  %v1950_v45 = vpop.f32.mrb[38].mxu0  ;;  %v1990_v46 = vadd.f32 %v1989_v43, %v729_v36  ;;  %v1991_v4 = vpop.f32.mrb[38].mxu1 }
 0x194   : > { %2030 = vst [vmem:[%s2648_s29 + $0x120] sm:$0xff] %v1947_v38  ;;  %v1951_v47 = vpop.f32.mrb[39].mxu0  ;;  %2032 = vst [vmem:[%s2648_s29 + $0x130] sm:$0xff] %v1988_v41  ;;  %v1992_v9 = vpop.f32.mrb[39].mxu1 }
 0x195   : > { %2031 = vst [vmem:[%s2648_s29 + $0x128] sm:$0xff] %v1949_v42  ;;  %2033 = vst [vmem:[%s2648_s29 + $0x138] sm:$0xff] %v1990_v46 }
 0x196 PF: > { %s13_s18 = sadd.s32 1, %s2383_s18   ;;  %s2963_s12 = smov %s2363_s13 }
 0x197   : > { %p10_p2 = scmp.ge.s32.totalorder %s13_s18, 14   ;;  %s2964_s13 = smov %s2456_s23 }
 0x198   : > { %s2965_s14 = smov %s2375_s16  ;;  %s2966_s15 = smov %s2379_s17 }
 0x199   : > { %s2967_s16 = smov %s2970_s19  ;;  %s2968_s17 = smov %s2974_s20 }
 0x19a   :  { %12 = sbr.rel (!%p10_p2) target bundleno = 4 (0x4), region = 104 }

// kernel: s2s_forward.2
= control target key start
LH: loop header
LB: loop body
LE: loop exit
PB: predicated region body
PF: predicated region fallthrough
CT: control target
= control target key end

     0   :  { %v2850_v3 = vmov 0.0   ;;  %v2851_v4 = vmov 0   ;;  %vm81_vm0 = vcmask 261120   ;;  %v2852_v26 = vmov 0.0|0.0   ;;  %s2854_s26 = smov 32   ;;  %s2857_s27 = smov 96   ;;  %s3756_s2 = inlined_call_operand.vmem [shape: f32[32,256], index: 2, kind: input, shape index: {}]   ;;  %s3757_s3 = inlined_call_operand.vmem [shape: bf16[32,256], index: 3, kind: input, shape index: {}]   ;;  %s3758_s0 = inlined_call_operand.vmem [shape: f32[8,8,32], index: 0, kind: input, shape index: {}]   ;;  %s3759_s4 = inlined_call_operand.vmem [shape: f32[1,256], index: 4, kind: input, shape index: {}]   ;;  %s3760_s5 = inlined_call_operand.vmem [shape: f32[64,32], index: 5, kind: input, shape index: {}]   ;;  %s3761_s11 = inlined_call_operand.<no memory space> [shape: f32[1,1], index: 11, kind: input, shape index: {}]   ;;  %s3762_s10 = inlined_call_operand.vmem [shape: f32[1,64], index: 10, kind: input, shape index: {}]   ;;  %s3763_s6 = inlined_call_operand.vmem [shape: f32[1,32], index: 6, kind: input, shape index: {}]   ;;  %s3764_s9 = inlined_call_operand.vmem [shape: f32[1,32], index: 9, kind: input, shape index: {}]   ;;  %s3765_s7 = inlined_call_operand.vmem [shape: f32[64,32], index: 7, kind: input, shape index: {}]   ;;  %s3766_s12 = inlined_call_operand.vmem [shape: bf16[96,128], index: 12, kind: input, shape index: {}]   ;;  %s3767_s13 = inlined_call_operand.vmem [shape: f32[32,128], index: 13, kind: input, shape index: {}]   ;;  %s3768_s1 = inlined_call_operand.vmem [shape: f32[5,8,32], index: 1, kind: input, shape index: {}]   ;;  %s3769_s8 = inlined_call_operand.vmem [shape: f32[1,32], index: 8, kind: input, shape index: {}]   ;;  %s3770_s14 = inlined_call_operand.vmem [shape: f32[1,128], index: 14, kind: input, shape index: {}]   ;;  %s3771_s15 = inlined_call_operand.vmem [shape: bf16[5,8,32], index: 15, kind: output, shape index: {}]  }
   0x1   :  { %v62_v0 = vld [vmem:[%s3756_s2 + $0x8] sm:$0xff]  ;;  %v64_v1 = vld [vmem:[%s3756_s2 + $0x18] sm:$0xff]  ;;  %v61_v2 = vld [vmem:[%s3756_s2] sm:$0xff]  ;;  %170 = vmatprep.mubr.f32.mxu0 %v2850_v3  ;;  %377 = vmatprep.mubr.bf16.mxu1 %v2851_v4  ;;  %v71_v27 = vlaneseq  ;;  %vm2855_vm1 = vmmov 0   ;;  %vm1112_vm2 = vcmask 523264   ;;  %vm1318_vm3 = vcmask 7168  }
   0x2   :  { %v2556_v5 = vpack.c.bf16 %v64_v1, %v62_v0  ;;  %v63_v6 = vld [vmem:[%s3756_s2 + $0x10] sm:$0xff]  ;;  %v66_v7 = vld [vmem:[%s3756_s2 + $0x28] sm:$0xff]  ;;  %v68_v8 = vld [vmem:[%s3756_s2 + $0x38] sm:$0xff]  ;;  %2610 = vset.pattern.permute.xlu1 %v2851_v4  ;;  %vm1320_vm4 = vcmask 15360   ;;  %vm1322_vm5 = vcmask 23552   ;;  %vm1324_vm6 = vcmask 31744  }
   0x3   :  { %v2558_v9 = vpack.c.bf16 %v63_v6, %v61_v2  ;;  %v2560_v10 = vpack.c.bf16 %v68_v8, %v66_v7  ;;  %v65_v11 = vld [vmem:[%s3756_s2 + $0x20] sm:$0xff]  ;;  %v67_v12 = vld [vmem:[%s3756_s2 + $0x30] sm:$0xff]  ;;  %v54_v19 = vld [vmem:[%s3758_s0 + $0x8] sm:$0xff]  ;;  %v72_v28 = vshrl.u32 %v71_v27, 7  ;;  %vm1326_vm7 = vcmask 39936  }
   0x4   :  { %2557 = vmatprep.subr.bf16.mxu0 %v2556_v5  ;;  %v2974_v13 = vld [vmem:[%s3757_s3 + $0x4] ss:$8 sps:$4 sm:$0xff]   ;;  %v2562_v14 = vpack.c.bf16 %v67_v12, %v65_v11  ;;  %v2979_v15 = vld [vmem:[%s3757_s3] ss:$8 sps:$4 sm:$0xff]   ;;  %v2985_v16 = vld [vmem:[%s3757_s3 + $0x14] ss:$8 sps:$4 sm:$0xff]  }
   0x5   :  { %2559 = vmatpush1.bf16.msra.mxu0 %v2558_v9  ;;  %345 = vmatprep.subr.bf16.mxu1 %v2974_v13  ;;  %v53_v17 = vld [vmem:[%s3758_s0] sm:$0xff]  ;;  %v2994_v18 = vld [vmem:[%s3757_s3 + $0x10] ss:$8 sps:$4 sm:$0xff]   ;;  %v58_v23 = vld [vmem:[%s3758_s0 + $0x28] sm:$0xff]  ;;  %v77_v29 = vsub.s32 1, %v72_v28  ;;  %v73_v32 = vsub.s32 0, %v72_v28 }
   0x6   :  { %2561 = vmatprep.subr.bf16.mxu0 %v2560_v10  ;;  %346 = vmatpush1.bf16.msra.mxu1 %v2979_v15  ;;  %v55_v20 = vld [vmem:[%s3758_s0 + $0x10] sm:$0xff]  ;;  %v56_v21 = vld [vmem:[%s3758_s0 + $0x18] sm:$0xff]  ;;  %v57_v22 = vld [vmem:[%s3758_s0 + $0x20] sm:$0xff]  ;;  %vm1328_vm8 = vcmask 48128   ;;  %vm1330_vm9 = vcmask 56320   ;;  %vm1482_vm10 = vcmask 64512  }
   0x7   :  { %347 = vmatprep.subr.bf16.mxu1 %v2985_v16  ;;  %v59_v24 = vld [vmem:[%s3758_s0 + $0x30] sm:$0xff]  ;;  %v60_v25 = vld [vmem:[%s3758_s0 + $0x38] sm:$0xff]  ;;  %v69_v30 = vld [vmem:[%s3759_s4] sm:$0x3]  ;;  %s2853_s4 = smov 64   ;;  %vm1584_vm11 = vcmask 785408  }
   0x8   :  { %v78_v31 = vrot.slane %v69_v30, %v77_v29  ;;  %v74_v36 = vrot.slane %v69_v30, %v73_v32  ;;  %vm1663_vm12 = vcmask 257024  }
   0x9   :  { %2563 = vmatpush1.bf16.msra.mxu0 %v2562_v14 }
   0xa   :  { %247 = vmatprep.subr.bf16.mxu0 %v2974_v13  ;;  %348 = vmatpush1.bf16.msra.mxu1 %v2994_v18 }
   0xb   :  { %443 = vmatprep.subr.bf16.mxu1 %v2974_v13 }
   0xc   :  { %2276 = vmatmul.mubr.msk.f32.vlgmr.msra.gmra.mrb[0].mxu0 %vm81_vm0, %v53_v17 }
   0xd   :  { %248 = vmatpush1.bf16.msra.mxu0 %v2979_v15  ;;  %176 = vmatprep.mubr.f32.mxu0 %v2850_v3 }
   0xe   :  { %249 = vmatprep.subr.bf16.mxu0 %v2985_v16 }
  0x10   :  { %2277 = vmatmul.mubr.msk.f32.gmra.mrb[2].mxu0 %vm81_vm0, %v54_v19 }
  0x11   :  { %182 = vmatprep.mubr.f32.mxu0 %v2850_v3  ;;  %250 = vmatpush1.bf16.msra.mxu0 %v2994_v18 }
  0x12   :  { %639 = vmatprep.subr.bf16.mxu0 %v2974_v13 }
  0x14   :  { %2278 = vmatmul.mubr.msk.f32.gmra.mrb[4].mxu0 %vm81_vm0, %v55_v20 }
  0x15   :  { %188 = vmatprep.mubr.f32.mxu0 %v2850_v3 }
  0x18   :  { %2279 = vmatmul.mubr.msk.f32.gmra.mrb[6].mxu0 %vm81_vm0, %v56_v21 }
  0x19   :  { %194 = vmatprep.mubr.f32.mxu0 %v2850_v3 }
  0x1c   :  { %2280 = vmatmul.mubr.msk.f32.gmra.mrb[8].mxu0 %vm81_vm0, %v57_v22 }
  0x1d   :  { %200 = vmatprep.mubr.f32.mxu0 %v2850_v3 }
  0x20   :  { %2281 = vmatmul.mubr.msk.f32.gmra.mrb[10].mxu0 %vm81_vm0, %v58_v23 }
  0x21   :  { %206 = vmatprep.mubr.f32.mxu0 %v2850_v3 }
  0x24   :  { %2282 = vmatmul.mubr.msk.f32.gmra.mrb[12].mxu0 %vm81_vm0, %v59_v24 }
  0x25   :  { %212 = vmatprep.mubr.f32.mxu0 %v2850_v3 }
  0x28   :  { %2283 = vmatmul.mubr.msk.f32.gmra.mrb[14].mxu0 %vm81_vm0, %v60_v25 }
  0x29   :  { %279 = vmatprep.mubr.bf16.mxu0 %v2851_v4 }
  0x2c   :  { %280 = vmatmul.mubr.bf16.vlgmr.msra.gmra.mrb[16].mxu0 %v2852_v26 }
  0x2d   :  { %640 = vmatpush1.bf16.msra.mxu0 %v2979_v15  ;;  %671 = vmatprep.mubr.bf16.mxu0 %v2851_v4 }
  0x2e   :  { %641 = vmatprep.subr.bf16.mxu0 %v2985_v16 }
  0x31   :  { %642 = vmatpush1.bf16.msra.mxu0 %v2994_v18 }
  0x32   :  { %835 = vmatprep.subr.bf16.mxu0 %v2974_v13 }
  0xdf   :  { %v172_v33 = vpop.f32.mrb[0].mxu0 }
  0xe0   :  { %v174_v34 = vpop.f32.mrb[1].mxu0  ;;  %v173_v0 = vadd.f32 %v172_v33, %v74_v36 }
  0xe1   :  { %v3050_v35 = vadd.f32 %v174_v34, %v78_v31 }
  0xe3   :  { %v178_v37 = vpop.f32.mrb[2].mxu0 }
  0xe4   :  { %v3052_v38 = vadd.f32 %v178_v37, %v74_v36  ;;  %v180_v39 = vpop.f32.mrb[3].mxu0 }
  0xe5   :  { %v3054_v40 = vadd.f32 %v180_v39, %v78_v31 }
  0xe7   :  { %v184_v41 = vpop.f32.mrb[4].mxu0 }
  0xe8   :  { %v3056_v42 = vadd.f32 %v184_v41, %v74_v36  ;;  %v186_v43 = vpop.f32.mrb[5].mxu0 }
  0xe9   :  { %v3058_v44 = vadd.f32 %v186_v43, %v78_v31 }
  0xeb   :  { %v190_v45 = vpop.f32.mrb[6].mxu0 }
  0xec   :  { %v3060_v46 = vadd.f32 %v190_v45, %v74_v36  ;;  %v192_v47 = vpop.f32.mrb[7].mxu0 }
  0xed   :  { %v3062_v48 = vadd.f32 %v192_v47, %v78_v31 }
  0xef   :  { %v196_v49 = vpop.f32.mrb[8].mxu0 }
  0xf0   :  { %v3064_v50 = vadd.f32 %v196_v49, %v74_v36  ;;  %v198_v51 = vpop.f32.mrb[9].mxu0 }
  0xf1   :  { %v3066_v52 = vadd.f32 %v198_v51, %v78_v31 }
  0xf3   :  { %v202_v53 = vpop.f32.mrb[10].mxu0 }
  0xf4   :  { %v3068_v54 = vadd.f32 %v202_v53, %v74_v36  ;;  %v204_v55 = vpop.f32.mrb[11].mxu0 }
  0xf5   :  { %v3070_v56 = vadd.f32 %v204_v55, %v78_v31 }
  0xf7   :  { %v208_v57 = vpop.f32.mrb[12].mxu0 }
  0xf8   :  { %v3072_v58 = vadd.f32 %v208_v57, %v74_v36  ;;  %v210_v59 = vpop.f32.mrb[13].mxu0 }
  0xf9   :  { %v3074_v60 = vadd.f32 %v210_v59, %v78_v31 }
  0xfb   :  { %v214_v61 = vpop.f32.mrb[14].mxu0 }
  0xfc   :  { %v3076_v62 = vadd.f32 %v214_v61, %v74_v36  ;;  %v216_v63 = vpop.f32.mrb[15].mxu0 }
  0xfd   :  { %v217_v6 = vadd.f32 %v216_v63, %v78_v31 }
  0xff   :  { %v281_v1 = vpop.f32.mrb[16].mxu0 }
 0x100   :  { %v288_v2 = vadd.f32 %v281_v1, %v173_v0  ;;  %v283_v5 = vpop.f32.mrb[17].mxu0 }
 0x101   :  { %v284_v7 = vpop.f32.mrb[18].mxu0 }
 0x102   :  { %2662 = vtanh.f32 %v288_v2  ;;  %v285_v8 = vpop.f32.mrb[19].mxu0  ;;  %v2288_v12 = vmul.f32 -1.442695, %v288_v2 }
 0x103   :  { %v289_v9 = vadd.f32 %v285_v8, %v217_v6 }
 0x105   :  { %2664 = vtanh.f32 %v289_v9  ;;  %v2289_v14 = vmul.f32 -1.442695, %v289_v9 }
 0x106   :  { %2666 = vpow2.f32 %v2288_v12 }
 0x107   :  { %2668 = vpow2.f32 %v2289_v14 }
 0x10c   :  { %v2663_v10 = vpop.eup %2662 }
 0x10d   :  { %299 = vrot.lane.b32.xlu0 %v2663_v10, %s2853_s4 }
 0x10f   :  { %v2665_v11 = vpop.eup %2664 }
 0x110   :  { %v2667_v17 = vpop.eup %2666 }
 0x111   :  { %323 = vrot.lane.b32.xlu0 %v2665_v11, %s2853_s4  ;;  %v293_v19 = vadd.f32 1.0, %v2667_v17  ;;  %v2669_v20 = vpop.eup %2668 }
 0x112   :  { %v317_v21 = vadd.f32 1.0, %v2669_v20 }
 0x113   :  { %2670 = vrcp.f32 %v293_v19 }
 0x114   :  { %2672 = vrcp.f32 %v317_v21 }
 0x11d   :  { %v2671_v22 = vpop.eup %2670 }
 0x11e   :  { %v2673_v25 = vpop.eup %2672  ;;  %v297_v29 = vmul.f32 0.0, %v2671_v22 }
 0x11f   :  { %v321_v32 = vmul.f32 0.0, %v2673_v25 }
 0x17f   :  { %v300_v23 = vpop.permute.xlu0 %299 }
 0x180   :  { %v302_v24 = vmul.f32 %v2671_v22, %v300_v23 }
 0x182   :  { %304 = vrot.lane.b32.xlu1 %v302_v24, %s2854_s26 }
 0x183   :  { %v324_v27 = vpop.permute.xlu0 %323 }
 0x184   :  { %v326_v28 = vmul.f32 %v2673_v25, %v324_v27 }
 0x186   :  { %328 = vrot.lane.b32.xlu1 %v326_v28, %s2854_s26 }
 0x1f4   :  { %v305_v30 = vpop.permute.xlu1 %304 }
 0x1f5   :  { %v307_v31 = vadd.f32 %v305_v30, %v297_v29 }
 0x1f7   :  { %2674 = vtanh.f32 %v307_v31 }
 0x1f8   :  { %v329_v33 = vpop.permute.xlu1 %328 }
 0x1f9   :  { %v331_v34 = vadd.f32 %v329_v33, %v321_v32 }
 0x1fb   :  { %2676 = vtanh.f32 %v331_v34 }
 0x201   :  { %v2675_v36 = vpop.eup %2674 }
 0x202   :  { %310 = vrot.lane.b32.xlu0 %v2675_v36, %s2853_s4 }
 0x205   :  { %v2677_v37 = vpop.eup %2676 }
 0x206   :  { %334 = vrot.lane.b32.xlu1 %v2677_v37, %s2853_s4 }
 0x274   :  { %v311_v39 = vpop.permute.xlu0 %310 }
 0x275   :  { %v3084_v43 = vmul.f32 %v2671_v22, %v311_v39 }
 0x278   :  { %v335_v41 = vpop.permute.xlu1 %334 }
 0x279   :  { %v3086_v45 = vmul.f32 %v2673_v25, %v335_v41 }
 0x27b   :  { %v338_v47 = vpack.c.bf16 %v3086_v45, %v3084_v43 }
 0x27d   :  { %340 = vrot.lane.b32.xlu0 %v338_v47, %s2854_s26 }
 0x2ef   :  { %v341_v49 = vpop.permute.xlu0 %340 }
 0x2f0   :  { %2290 = vmatmul.mubr.msk.bf16.vlgmr.msra.gmra.mrb[0].mxu1 %vm81_vm0, %v341_v49 }
 0x2f1   :  { %444 = vmatpush1.bf16.msra.mxu1 %v2979_v15  ;;  %475 = vmatprep.mubr.bf16.mxu1 %v2851_v4 }
 0x2f2   :  { %445 = vmatprep.subr.bf16.mxu1 %v2985_v16 }
 0x2f5   :  { %446 = vmatpush1.bf16.msra.mxu1 %v2994_v18 }
 0x2f6   :  { %541 = vmatprep.subr.bf16.mxu1 %v2974_v13 }
 0x3c3   :  { %v379_v51 = vpop.f32.mrb[0].mxu1 }
 0x3c4   :  { %v386_v53 = vadd.f32 %v379_v51, %v3052_v38  ;;  %v381_v55 = vpop.f32.mrb[1].mxu1 }
 0x3c5   :  { %v382_v57 = vpop.f32.mrb[2].mxu1 }
 0x3c6   :  { %2678 = vtanh.f32 %v386_v53  ;;  %v383_v59 = vpop.f32.mrb[3].mxu1  ;;  %v2291_v1 = vmul.f32 -1.442695, %v386_v53 }
 0x3c7   :  { %v387_v61 = vadd.f32 %v383_v59, %v3074_v60 }
 0x3c9   :  { %2680 = vtanh.f32 %v387_v61  ;;  %v2292_v2 = vmul.f32 -1.442695, %v387_v61 }
 0x3ca   :  { %2682 = vpow2.f32 %v2291_v1 }
 0x3cb   :  { %2684 = vpow2.f32 %v2292_v2 }
 0x3d0   :  { %v2679_v63 = vpop.eup %2678 }
 0x3d1   :  { %397 = vrot.lane.b32.xlu1 %v2679_v63, %s2853_s4 }
 0x3d3   :  { %v2681_v0 = vpop.eup %2680 }
 0x3d4   :  { %421 = vrot.lane.b32.xlu0 %v2681_v0, %s2853_s4  ;;  %v2683_v5 = vpop.eup %2682 }
 0x3d5   :  { %v2685_v6 = vpop.eup %2684  ;;  %v391_v38 = vadd.f32 1.0, %v2683_v5 }
 0x3d6   :  { %v415_v7 = vadd.f32 1.0, %v2685_v6 }
 0x3d7   :  { %2686 = vrcp.f32 %v391_v38 }
 0x3d8   :  { %2688 = vrcp.f32 %v415_v7 }
 0x3e1   :  { %v2687_v8 = vpop.eup %2686 }
 0x3e2   :  { %v2689_v10 = vpop.eup %2688  ;;  %v395_v14 = vmul.f32 %v2687_v8, %v307_v31 }
 0x3e3   :  { %v419_v20 = vmul.f32 %v2689_v10, %v331_v34 }
 0x443   :  { %v398_v9 = vpop.permute.xlu1 %397 }
 0x444   :  { %v400_v60 = vmul.f32 %v2687_v8, %v398_v9 }
 0x446   :  { %402 = vrot.lane.b32.xlu1 %v400_v60, %s2854_s26  ;;  %v422_v11 = vpop.permute.xlu0 %421 }
 0x447   :  { %v424_v12 = vmul.f32 %v2689_v10, %v422_v11 }
 0x449   :  { %426 = vrot.lane.b32.xlu0 %v424_v12, %s2854_s26 }
 0x4b8   :  { %v403_v17 = vpop.permute.xlu1 %402 }
 0x4b9   :  { %v405_v19 = vadd.f32 %v403_v17, %v395_v14 }
 0x4bb   :  { %2690 = vtanh.f32 %v405_v19  ;;  %v427_v21 = vpop.permute.xlu0 %426 }
 0x4bc   :  { %v429_v22 = vadd.f32 %v427_v21, %v419_v20 }
 0x4be   :  { %2692 = vtanh.f32 %v429_v22 }
 0x4c5   :  { %v2691_v23 = vpop.eup %2690 }
 0x4c6   :  { %408 = vrot.lane.b32.xlu1 %v2691_v23, %s2853_s4 }
 0x4c8   :  { %v2693_v24 = vpop.eup %2692 }
 0x4c9   :  { %432 = vrot.lane.b32.xlu0 %v2693_v24, %s2853_s4 }
 0x538   :  { %v409_v25 = vpop.permute.xlu1 %408 }
 0x539   :  { %v3105_v28 = vmul.f32 %v2687_v8, %v409_v25 }
 0x53b   :  { %v433_v27 = vpop.permute.xlu0 %432 }
 0x53c   :  { %v3107_v29 = vmul.f32 %v2689_v10, %v433_v27 }
 0x53e   :  { %v436_v30 = vpack.c.bf16 %v3107_v29, %v3105_v28 }
 0x540   :  { %438 = vrot.lane.b32.xlu1 %v436_v30, %s2854_s26 }
 0x5b2   :  { %v439_v31 = vpop.permute.xlu1 %438 }
 0x5b3   :  { %2293 = vmatmul.mubr.msk.bf16.vlgmr.msra.gmra.mrb[4].mxu1 %vm81_vm0, %v439_v31 }
 0x5b4   :  { %542 = vmatpush1.bf16.msra.mxu1 %v2979_v15  ;;  %573 = vmatprep.mubr.bf16.mxu1 %v2851_v4 }
 0x5b5   :  { %543 = vmatprep.subr.bf16.mxu1 %v2985_v16 }
 0x5b8   :  { %544 = vmatpush1.bf16.msra.mxu1 %v2994_v18 }
 0x5b9   :  { %737 = vmatprep.subr.bf16.mxu1 %v2974_v13 }
 0x686   :  { %v477_v32 = vpop.f32.mrb[4].mxu1 }
 0x687   :  { %v484_v33 = vadd.f32 %v477_v32, %v3056_v42  ;;  %v479_v34 = vpop.f32.mrb[5].mxu1 }
 0x688   :  { %v480_v36 = vpop.f32.mrb[6].mxu1 }
 0x689   :  { %2694 = vtanh.f32 %v484_v33  ;;  %v481_v37 = vpop.f32.mrb[7].mxu1  ;;  %v2294_v49 = vmul.f32 -1.442695, %v484_v33 }
 0x68a   :  { %v485_v39 = vadd.f32 %v481_v37, %v3070_v56 }
 0x68c   :  { %2696 = vtanh.f32 %v485_v39  ;;  %v2295_v51 = vmul.f32 -1.442695, %v485_v39 }
 0x68d   :  { %2698 = vpow2.f32 %v2294_v49 }
 0x68e   :  { %2700 = vpow2.f32 %v2295_v51 }
 0x693   :  { %v2695_v41 = vpop.eup %2694 }
 0x694   :  { %495 = vrot.lane.b32.xlu0 %v2695_v41, %s2853_s4 }
 0x696   :  { %v2697_v47 = vpop.eup %2696 }
 0x697   :  { %519 = vrot.lane.b32.xlu1 %v2697_v47, %s2853_s4  ;;  %v2699_v53 = vpop.eup %2698 }
 0x698   :  { %v2701_v55 = vpop.eup %2700  ;;  %v489_v42 = vadd.f32 1.0, %v2699_v53 }
 0x699   :  { %v513_v57 = vadd.f32 1.0, %v2701_v55 }
 0x69a   :  { %2702 = vrcp.f32 %v489_v42 }
 0x69b   :  { %2704 = vrcp.f32 %v513_v57 }
 0x6a4   :  { %v2703_v59 = vpop.eup %2702 }
 0x6a5   :  { %v2705_v63 = vpop.eup %2704  ;;  %v493_v2 = vmul.f32 %v2703_v59, %v405_v19 }
 0x6a6   :  { %v517_v38 = vmul.f32 %v2705_v63, %v429_v22 }
 0x706   :  { %v496_v61 = vpop.permute.xlu0 %495 }
 0x707   :  { %v498_v56 = vmul.f32 %v2703_v59, %v496_v61 }
 0x709   :  { %500 = vrot.lane.b32.xlu0 %v498_v56, %s2854_s26  ;;  %v520_v0 = vpop.permute.xlu1 %519 }
 0x70a   :  { %v522_v1 = vmul.f32 %v2705_v63, %v520_v0 }
 0x70c   :  { %524 = vrot.lane.b32.xlu1 %v522_v1, %s2854_s26 }
 0x77b   :  { %v501_v5 = vpop.permute.xlu0 %500 }
 0x77c   :  { %v503_v6 = vadd.f32 %v501_v5, %v493_v2 }
 0x77e   :  { %2706 = vtanh.f32 %v503_v6  ;;  %v525_v7 = vpop.permute.xlu1 %524 }
 0x77f   :  { %v527_v8 = vadd.f32 %v525_v7, %v517_v38 }
 0x781   :  { %2708 = vtanh.f32 %v527_v8 }
 0x788   :  { %v2707_v9 = vpop.eup %2706 }
 0x789   :  { %506 = vrot.lane.b32.xlu0 %v2707_v9, %s2853_s4 }
 0x78b   :  { %v2709_v60 = vpop.eup %2708 }
 0x78c   :  { %530 = vrot.lane.b32.xlu1 %v2709_v60, %s2853_s4 }
 0x7fb   :  { %v507_v10 = vpop.permute.xlu0 %506 }
 0x7fc   :  { %v3126_v12 = vmul.f32 %v2703_v59, %v507_v10 }
 0x7fe   :  { %v531_v11 = vpop.permute.xlu1 %530 }
 0x7ff   :  { %v3128_v14 = vmul.f32 %v2705_v63, %v531_v11 }
 0x801   :  { %v534_v17 = vpack.c.bf16 %v3128_v14, %v3126_v12 }
 0x803   :  { %536 = vrot.lane.b32.xlu0 %v534_v17, %s2854_s26 }
 0x875   :  { %v537_v19 = vpop.permute.xlu0 %536 }
 0x876   :  { %2296 = vmatmul.mubr.msk.bf16.vlgmr.msra.gmra.mrb[8].mxu1 %vm81_vm0, %v537_v19 }
 0x877   :  { %738 = vmatpush1.bf16.msra.mxu1 %v2979_v15  ;;  %769 = vmatprep.mubr.bf16.mxu1 %v2851_v4 }
 0x878   :  { %739 = vmatprep.subr.bf16.mxu1 %v2985_v16 }
 0x87b   :  { %740 = vmatpush1.bf16.msra.mxu1 %v2994_v18 }
 0x87c   :  { %933 = vmatprep.subr.bf16.mxu1 %v2974_v13 }
 0x949   :  { %v575_v20 = vpop.f32.mrb[8].mxu1 }
 0x94a   :  { %v582_v21 = vadd.f32 %v575_v20, %v3060_v46  ;;  %v577_v22 = vpop.f32.mrb[9].mxu1 }
 0x94b   :  { %v578_v23 = vpop.f32.mrb[10].mxu1 }
 0x94c   :  { %2710 = vtanh.f32 %v582_v21  ;;  %v579_v24 = vpop.f32.mrb[11].mxu1  ;;  %v2297_v31 = vmul.f32 -1.442695, %v582_v21 }
 0x94d   :  { %v583_v25 = vadd.f32 %v579_v24, %v3066_v52 }
 0x94f   :  { %2712 = vtanh.f32 %v583_v25  ;;  %v2298_v32 = vmul.f32 -1.442695, %v583_v25 }
 0x950   :  { %2714 = vpow2.f32 %v2297_v31 }
 0x951   :  { %2716 = vpow2.f32 %v2298_v32 }
 0x956   :  { %v2711_v27 = vpop.eup %2710 }
 0x957   :  { %593 = vrot.lane.b32.xlu1 %v2711_v27, %s2853_s4 }
 0x959   :  { %v2713_v30 = vpop.eup %2712 }
 0x95a   :  { %617 = vrot.lane.b32.xlu0 %v2713_v30, %s2853_s4  ;;  %v2715_v13 = vpop.eup %2714 }
 0x95b   :  { %v2717_v33 = vpop.eup %2716  ;;  %v587_v46 = vadd.f32 1.0, %v2715_v13 }
 0x95c   :  { %v611_v34 = vadd.f32 1.0, %v2717_v33 }
 0x95d   :  { %2718 = vrcp.f32 %v587_v46 }
 0x95e   :  { %2720 = vrcp.f32 %v611_v34 }
 0x967   :  { %v2719_v36 = vpop.eup %2718 }
 0x968   :  { %v2721_v39 = vpop.eup %2720  ;;  %v591_v49 = vmul.f32 %v2719_v36, %v503_v6 }
 0x969   :  { %v615_v55 = vmul.f32 %v2721_v39, %v527_v8 }
 0x9c9   :  { %v594_v37 = vpop.permute.xlu1 %593 }
 0x9ca   :  { %v596_v52 = vmul.f32 %v2719_v36, %v594_v37 }
 0x9cc   :  { %598 = vrot.lane.b32.xlu1 %v596_v52, %s2854_s26  ;;  %v618_v41 = vpop.permute.xlu0 %617 }
 0x9cd   :  { %v620_v47 = vmul.f32 %v2721_v39, %v618_v41 }
 0x9cf   :  { %622 = vrot.lane.b32.xlu0 %v620_v47, %s2854_s26 }
 0xa3e   :  { %v599_v51 = vpop.permute.xlu1 %598 }
 0xa3f   :  { %v601_v53 = vadd.f32 %v599_v51, %v591_v49 }
 0xa41   :  { %2722 = vtanh.f32 %v601_v53  ;;  %v623_v42 = vpop.permute.xlu0 %622 }
 0xa42   :  { %v625_v57 = vadd.f32 %v623_v42, %v615_v55 }
 0xa44   :  { %2724 = vtanh.f32 %v625_v57 }
 0xa4b   :  { %v2723_v59 = vpop.eup %2722 }
 0xa4c   :  { %604 = vrot.lane.b32.xlu1 %v2723_v59, %s2853_s4 }
 0xa4e   :  { %v2725_v61 = vpop.eup %2724 }
 0xa4f   :  { %628 = vrot.lane.b32.xlu0 %v2725_v61, %s2853_s4 }
 0xabe   :  { %v605_v56 = vpop.permute.xlu1 %604 }
 0xabf   :  { %v3147_v0 = vmul.f32 %v2719_v36, %v605_v56 }
 0xac1   :  { %v629_v63 = vpop.permute.xlu0 %628 }
 0xac2   :  { %v3149_v1 = vmul.f32 %v2721_v39, %v629_v63 }
 0xac4   :  { %v632_v2 = vpack.c.bf16 %v3149_v1, %v3147_v0 }
 0xac6   :  { %634 = vrot.lane.b32.xlu1 %v632_v2, %s2854_s26 }
 0xb38   :  { %v635_v5 = vpop.permute.xlu1 %634 }
 0xb39   :  { %2299 = vmatmul.mubr.msk.bf16.vlgmr.msra.gmra.mrb[20].mxu0 %vm81_vm0, %v635_v5 }
 0xb3a   :  { %836 = vmatpush1.bf16.msra.mxu0 %v2979_v15  ;;  %867 = vmatprep.mubr.bf16.mxu0 %v2851_v4 }
 0xb3b   :  { %837 = vmatprep.subr.bf16.mxu0 %v2985_v16 }
 0xb3e   :  { %838 = vmatpush1.bf16.msra.mxu0 %v2994_v18 }
 0xb3f   :  { %2564 = vmatprep.subr.bf16.mxu0 %v2852_v26 }
 0xc0c   :  { %v673_v6 = vpop.f32.mrb[20].mxu0 }
 0xc0d   :  { %v680_v38 = vadd.f32 %v673_v6, %v3064_v50  ;;  %v675_v7 = vpop.f32.mrb[21].mxu0 }
 0xc0e   :  { %v676_v8 = vpop.f32.mrb[22].mxu0 }
 0xc0f   :  { %2726 = vtanh.f32 %v680_v38  ;;  %v677_v9 = vpop.f32.mrb[23].mxu0  ;;  %v2300_v17 = vmul.f32 -1.442695, %v680_v38 }
 0xc10   :  { %v681_v60 = vadd.f32 %v677_v9, %v3062_v48 }
 0xc12   :  { %2728 = vtanh.f32 %v681_v60  ;;  %v2301_v19 = vmul.f32 -1.442695, %v681_v60 }
 0xc13   :  { %2730 = vpow2.f32 %v2300_v17 }
 0xc14   :  { %2732 = vpow2.f32 %v2301_v19 }
 0xc19   :  { %v2727_v10 = vpop.eup %2726 }
 0xc1a   :  { %691 = vrot.lane.b32.xlu0 %v2727_v10, %s2853_s4 }
 0xc1c   :  { %v2729_v11 = vpop.eup %2728 }
 0xc1d   :  { %715 = vrot.lane.b32.xlu1 %v2729_v11, %s2853_s4  ;;  %v2731_v20 = vpop.eup %2730 }
 0xc1e   :  { %v2733_v21 = vpop.eup %2732  ;;  %v685_v50 = vadd.f32 1.0, %v2731_v20 }
 0xc1f   :  { %v709_v22 = vadd.f32 1.0, %v2733_v21 }
 0xc20   :  { %2734 = vrcp.f32 %v685_v50 }
 0xc21   :  { %2736 = vrcp.f32 %v709_v22 }
 0xc2a   :  { %v2735_v23 = vpop.eup %2734 }
 0xc2b   :  { %v2737_v25 = vpop.eup %2736  ;;  %v689_v31 = vmul.f32 %v2735_v23, %v601_v53 }
 0xc2c   :  { %v713_v33 = vmul.f32 %v2737_v25, %v625_v57 }
 0xc8c   :  { %v692_v24 = vpop.permute.xlu0 %691 }
 0xc8d   :  { %v694_v48 = vmul.f32 %v2735_v23, %v692_v24 }
 0xc8f   :  { %696 = vrot.lane.b32.xlu0 %v694_v48, %s2854_s26  ;;  %v716_v27 = vpop.permute.xlu1 %715 }
 0xc90   :  { %v718_v30 = vmul.f32 %v2737_v25, %v716_v27 }
 0xc92   :  { %720 = vrot.lane.b32.xlu1 %v718_v30, %s2854_s26 }
 0xd01   :  { %v697_v32 = vpop.permute.xlu0 %696 }
 0xd02   :  { %v699_v13 = vadd.f32 %v697_v32, %v689_v31 }
 0xd04   :  { %2738 = vtanh.f32 %v699_v13  ;;  %v721_v46 = vpop.permute.xlu1 %720 }
 0xd05   :  { %v723_v34 = vadd.f32 %v721_v46, %v713_v33 }
 0xd07   :  { %2740 = vtanh.f32 %v723_v34 }
 0xd0e   :  { %v2739_v36 = vpop.eup %2738 }
 0xd0f   :  { %702 = vrot.lane.b32.xlu0 %v2739_v36, %s2853_s4 }
 0xd11   :  { %v2741_v37 = vpop.eup %2740 }
 0xd12   :  { %726 = vrot.lane.b32.xlu1 %v2741_v37, %s2853_s4 }
 0xd81   :  { %v703_v52 = vpop.permute.xlu0 %702 }
 0xd82   :  { %v3168_v41 = vmul.f32 %v2735_v23, %v703_v52 }
 0xd84   :  { %v727_v39 = vpop.permute.xlu1 %726 }
 0xd85   :  { %v3170_v47 = vmul.f32 %v2737_v25, %v727_v39 }
 0xd87   :  { %v730_v49 = vpack.c.bf16 %v3170_v47, %v3168_v41 }
 0xd89   :  { %732 = vrot.lane.b32.xlu0 %v730_v49, %s2854_s26 }
 0xdfb   :  { %v733_v51 = vpop.permute.xlu0 %732 }
 0xdfc   :  { %2302 = vmatmul.mubr.msk.bf16.vlgmr.msra.gmra.mrb[12].mxu1 %vm81_vm0, %v733_v51 }
 0xdfd   :  { %934 = vmatpush1.bf16.msra.mxu1 %v2979_v15  ;;  %965 = vmatprep.mubr.bf16.mxu1 %v2851_v4 }
 0xdfe   :  { %935 = vmatprep.subr.bf16.mxu1 %v2985_v16 }
 0xe01   :  { %936 = vmatpush1.bf16.msra.mxu1 %v2994_v18 }
 0xe02   :  { %2576 = vmatprep.subr.bf16.mxu1 %v2852_v26 }
 0xecf   :  { %v771_v53 = vpop.f32.mrb[12].mxu1 }
 0xed0   :  { %v778_v55 = vadd.f32 %v771_v53, %v3068_v54  ;;  %v773_v42 = vpop.f32.mrb[13].mxu1 }
 0xed1   :  { %v774_v57 = vpop.f32.mrb[14].mxu1 }
 0xed2   :  { %2742 = vtanh.f32 %v778_v55  ;;  %v775_v59 = vpop.f32.mrb[15].mxu1  ;;  %v2303_v16 = vmul.f32 -1.442695, %v778_v55 }
 0xed3   :  { %v779_v61 = vadd.f32 %v775_v59, %v3058_v44 }
 0xed5   :  { %2744 = vtanh.f32 %v779_v61  ;;  %v2304_v18 = vmul.f32 -1.442695, %v779_v61 }
 0xed6   :  { %2746 = vpow2.f32 %v2303_v16 }
 0xed7   :  { %2748 = vpow2.f32 %v2304_v18 }
 0xedc   :  { %v2743_v56 = vpop.eup %2742 }
 0xedd   :  { %789 = vrot.lane.b32.xlu1 %v2743_v56, %s2853_s4 }
 0xedf   :  { %v2745_v15 = vpop.eup %2744 }
 0xee0   :  { %813 = vrot.lane.b32.xlu0 %v2745_v15, %s2853_s4  ;;  %v2747_v63 = vpop.eup %2746 }
 0xee1   :  { %v2749_v2 = vpop.eup %2748  ;;  %v783_v54 = vadd.f32 1.0, %v2747_v63 }
 0xee2   :  { %v807_v5 = vadd.f32 1.0, %v2749_v2 }
 0xee3   :  { %2750 = vrcp.f32 %v783_v54 }
 0xee4   :  { %2752 = vrcp.f32 %v807_v5 }
 0xeed   :  { %v2751_v6 = vpop.eup %2750 }
 0xeee   :  { %v2753_v7 = vpop.eup %2752  ;;  %v787_v60 = vmul.f32 %v2751_v6, %v699_v13 }
 0xeef   :  { %v811_v17 = vmul.f32 %v2753_v7, %v723_v34 }
 0xf4f   :  { %v790_v38 = vpop.permute.xlu1 %789 }
 0xf50   :  { %v792_v44 = vmul.f32 %v2751_v6, %v790_v38 }
 0xf52   :  { %794 = vrot.lane.b32.xlu1 %v792_v44, %s2854_s26  ;;  %v814_v8 = vpop.permute.xlu0 %813 }
 0xf53   :  { %v816_v9 = vmul.f32 %v2753_v7, %v814_v8 }
 0xf55   :  { %818 = vrot.lane.b32.xlu0 %v816_v9, %s2854_s26 }
 0xfc4   :  { %v795_v10 = vpop.permute.xlu1 %794 }
 0xfc5   :  { %v797_v11 = vadd.f32 %v795_v10, %v787_v60 }
 0xfc7   :  { %2754 = vtanh.f32 %v797_v11  ;;  %v819_v19 = vpop.permute.xlu0 %818 }
 0xfc8   :  { %v821_v20 = vadd.f32 %v819_v19, %v811_v17 }
 0xfca   :  { %2756 = vtanh.f32 %v821_v20 }
 0xfd1   :  { %v2755_v21 = vpop.eup %2754 }
 0xfd2   :  { %800 = vrot.lane.b32.xlu1 %v2755_v21, %s2853_s4 }
 0xfd4   :  { %v2757_v50 = vpop.eup %2756 }
 0xfd5   :  { %824 = vrot.lane.b32.xlu0 %v2757_v50, %s2853_s4 }
0x1044   :  { %v801_v22 = vpop.permute.xlu1 %800 }
0x1045   :  { %v3189_v24 = vmul.f32 %v2751_v6, %v801_v22 }
0x1047   :  { %v825_v23 = vpop.permute.xlu0 %824 }
0x1048   :  { %v3191_v48 = vmul.f32 %v2753_v7, %v825_v23 }
0x104a   :  { %v828_v25 = vpack.c.bf16 %v3191_v48, %v3189_v24 }
0x104c   :  { %830 = vrot.lane.b32.xlu1 %v828_v25, %s2854_s26 }
0x10be   :  { %v831_v27 = vpop.permute.xlu1 %830 }
0x10bf   :  { %2305 = vmatmul.mubr.msk.bf16.vlgmr.msra.gmra.mrb[24].mxu0 %vm81_vm0, %v831_v27 }
0x10c0   :  { %2431 = vmatprep.mubr.msk.f32.mxu0 %vm2855_vm1, %v2850_v3 }
0x1192   :  { %v869_v30 = vpop.f32.mrb[24].mxu0 }
0x1193   :  { %v876_v31 = vadd.f32 %v869_v30, %v3072_v58  ;;  %v871_v32 = vpop.f32.mrb[25].mxu0 }
0x1194   :  { %v872_v13 = vpop.f32.mrb[26].mxu0 }
0x1195   :  { %2758 = vtanh.f32 %v876_v31  ;;  %v873_v33 = vpop.f32.mrb[27].mxu0  ;;  %v2306_v37 = vmul.f32 -1.442695, %v876_v31 }
0x1196   :  { %v877_v46 = vadd.f32 %v873_v33, %v3054_v40 }
0x1198   :  { %2760 = vtanh.f32 %v877_v46  ;;  %v2307_v52 = vmul.f32 -1.442695, %v877_v46 }
0x1199   :  { %2762 = vpow2.f32 %v2306_v37 }
0x119a   :  { %2764 = vpow2.f32 %v2307_v52 }
0x119f   :  { %v2759_v34 = vpop.eup %2758 }
0x11a0   :  { %887 = vrot.lane.b32.xlu0 %v2759_v34, %s2853_s4 }
0x11a2   :  { %v2761_v36 = vpop.eup %2760 }
0x11a3   :  { %911 = vrot.lane.b32.xlu1 %v2761_v36, %s2853_s4  ;;  %v2763_v39 = vpop.eup %2762 }
0x11a4   :  { %v2765_v49 = vpop.eup %2764  ;;  %v881_v58 = vadd.f32 1.0, %v2763_v39 }
0x11a5   :  { %v905_v51 = vadd.f32 1.0, %v2765_v49 }
0x11a6   :  { %2766 = vrcp.f32 %v881_v58 }
0x11a7   :  { %2768 = vrcp.f32 %v905_v51  ;;  %v1097_v51 = vld [vmem:[%s3760_s5] sm:$0xff] }
0x11b0   :  { %v2767_v53 = vpop.eup %2766 }
0x11b1   :  { %v2769_v42 = vpop.eup %2768  ;;  %v885_v61 = vmul.f32 %v2767_v53, %v797_v11 }
0x11b2   :  { %v909_v16 = vmul.f32 %v2769_v42, %v821_v20 }
0x1212   :  { %v888_v55 = vpop.permute.xlu0 %887 }
0x1213   :  { %v890_v40 = vmul.f32 %v2767_v53, %v888_v55  ;;  %v1099_v55 = vld [vmem:[%s3760_s5 + $0x10] sm:$0xff] }
0x1215   :  { %892 = vrot.lane.b32.xlu0 %v890_v40, %s2854_s26  ;;  %v912_v57 = vpop.permute.xlu1 %911 }
0x1216   :  { %v914_v59 = vmul.f32 %v2769_v42, %v912_v57 }
0x1218   :  { %916 = vrot.lane.b32.xlu1 %v914_v59, %s2854_s26  ;;  %v1101_v59 = vld [vmem:[%s3760_s5 + $0x20] sm:$0xff] }
0x1287   :  { %v893_v56 = vpop.permute.xlu0 %892 }
0x1288   :  { %v895_v15 = vadd.f32 %v893_v56, %v885_v61  ;;  %v1102_v61 = vld [vmem:[%s3760_s5 + $0x28] sm:$0xff] }
0x1289   :  { %v2571_v56 = vpack.c.bf16 %v1102_v61, %v1101_v59 }
0x128a   :  { %2770 = vtanh.f32 %v895_v15  ;;  %v917_v18 = vpop.permute.xlu1 %916 }
0x128b   :  { %v919_v63 = vadd.f32 %v917_v18, %v909_v16  ;;  %v1104_v16 = vld [vmem:[%s3760_s5 + $0x38] sm:$0xff] }
0x128d   :  { %2772 = vtanh.f32 %v919_v63 }
0x1294   :  { %v2771_v2 = vpop.eup %2770 }
0x1295   :  { %898 = vrot.lane.b32.xlu0 %v2771_v2, %s2853_s4 }
0x1297   :  { %v2773_v54 = vpop.eup %2772 }
0x1298   :  { %922 = vrot.lane.b32.xlu1 %v2773_v54, %s2853_s4 }
0x1307   :  { %v899_v5 = vpop.permute.xlu0 %898 }
0x1308   :  { %v3205_v38 = vmul.f32 %v2767_v53, %v899_v5  ;;  %v1098_v53 = vld [vmem:[%s3760_s5 + $0x8] sm:$0xff] }
0x1309   :  { %v2565_v40 = vpack.c.bf16 %v1098_v53, %v1097_v51  ;;  %v2311_v53 = vld [vmem:[%s3763_s6] ss:$0 sm:$0xff] }
0x130a   :  { %v923_v6 = vpop.permute.xlu1 %922 }
0x130b   :  { %v3207_v44 = vmul.f32 %v2769_v42, %v923_v6  ;;  %v1100_v42 = vld [vmem:[%s3760_s5 + $0x18] sm:$0xff]  ;;  %2566 = vmatpush3.bf16.msra.mxu0 %v2565_v40  ;;  %v3345_v40 = vld [vmem:[%s3764_s9] ss:$0 sm:$0xff] }
0x130c   :  { %v2568_v57 = vpack.c.bf16 %v1100_v42, %v1099_v55  ;;  %2567 = vmatprep.subr.bf16.mxu0 %v2852_v26 }
0x130d   :  { %v926_v7 = vpack.c.bf16 %v3207_v44, %v3205_v38 }
0x130f   :  { %928 = vrot.lane.b32.xlu0 %v926_v7, %s2854_s26  ;;  %2569 = vmatpush3.bf16.msra.mxu0 %v2568_v57 }
0x1310   :  { %2570 = vmatprep.subr.bf16.mxu0 %v2852_v26 }
0x1313   :  { %2572 = vmatpush3.bf16.msra.mxu0 %v2571_v56 }
0x1314   :  { %2573 = vmatprep.subr.bf16.mxu0 %v2852_v26 }
0x1381   :  { %v929_v8 = vpop.permute.xlu0 %928 }
0x1382   :  { %2308 = vmatmul.mubr.msk.bf16.vlgmr.msra.gmra.mrb[16].mxu1 %vm81_vm0, %v929_v8 }
0x1383   :  { %2450 = vmatprep.mubr.msk.f32.mxu1 %vm2855_vm1, %v2850_v3 }
0x1455   :  { %v967_v9 = vpop.f32.mrb[16].mxu1 }
0x1456   :  { %v974_v60 = vadd.f32 %v967_v9, %v3076_v62  ;;  %v969_v10 = vpop.f32.mrb[17].mxu1 }
0x1457   :  { %v970_v11 = vpop.f32.mrb[18].mxu1 }
0x1458   :  { %2774 = vtanh.f32 %v974_v60  ;;  %v971_v17 = vpop.f32.mrb[19].mxu1  ;;  %v2309_v50 = vmul.f32 -1.442695, %v974_v60 }
0x1459   :  { %v975_v19 = vadd.f32 %v971_v17, %v3050_v35 }
0x145b   :  { %2776 = vtanh.f32 %v975_v19  ;;  %v2310_v22 = vmul.f32 -1.442695, %v975_v19 }
0x145c   :  { %2778 = vpow2.f32 %v2309_v50 }
0x145d   :  { %2780 = vpow2.f32 %v2310_v22 }
0x1462   :  { %v2775_v20 = vpop.eup %2774 }
0x1463   :  { %985 = vrot.lane.b32.xlu1 %v2775_v20, %s2853_s4 }
0x1465   :  { %v2777_v21 = vpop.eup %2776 }
0x1466   :  { %1009 = vrot.lane.b32.xlu0 %v2777_v21, %s2853_s4  ;;  %v2779_v23 = vpop.eup %2778 }
0x1467   :  { %v2781_v25 = vpop.eup %2780  ;;  %v979_v62 = vadd.f32 1.0, %v2779_v23 }
0x1468   :  { %v1003_v27 = vadd.f32 1.0, %v2781_v25 }
0x1469   :  { %2782 = vrcp.f32 %v979_v62 }
0x146a   :  { %2784 = vrcp.f32 %v1003_v27 }
0x1473   :  { %v2783_v30 = vpop.eup %2782 }
0x1474   :  { %v2785_v32 = vpop.eup %2784  ;;  %v983_v46 = vmul.f32 %v2783_v30, %v895_v15  ;;  %v1103_v15 = vld [vmem:[%s3760_s5 + $0x30] sm:$0xff] }
0x1475   :  { %v1007_v37 = vmul.f32 %v2785_v32, %v919_v63  ;;  %v2574_v18 = vpack.c.bf16 %v1104_v16, %v1103_v15 }
0x1477   :  { %2575 = vmatpush3.bf16.msra.mxu0 %v2574_v18 }
0x1478   :  { %2588 = vmatprep.subr.bf16.mxu0 %v2852_v26 }
0x14d5   :  { %v986_v31 = vpop.permute.xlu1 %985 }
0x14d6   :  { %v988_v35 = vmul.f32 %v2783_v30, %v986_v31 }
0x14d8   :  { %990 = vrot.lane.b32.xlu1 %v988_v35, %s2854_s26  ;;  %v1010_v13 = vpop.permute.xlu0 %1009 }
0x14d9   :  { %v1012_v33 = vmul.f32 %v2785_v32, %v1010_v13 }
0x14db   :  { %1014 = vrot.lane.b32.xlu0 %v1012_v33, %s2854_s26 }
0x154a   :  { %v991_v34 = vpop.permute.xlu1 %990 }
0x154b   :  { %v3219_v36 = vadd.f32 %v991_v34, %v983_v46 }
0x154d   :  { %2786 = vtanh.f32 %v3219_v36  ;;  %v1015_v52 = vpop.permute.xlu0 %1014 }
0x154e   :  { %v3222_v39 = vadd.f32 %v1015_v52, %v1007_v37 }
0x1550   :  { %2788 = vtanh.f32 %v3222_v39 }
0x1557   :  { %v2787_v49 = vpop.eup %2786 }
0x1558   :  { %996 = vrot.lane.b32.xlu1 %v2787_v49, %s2853_s4 }
0x155a   :  { %v2789_v58 = vpop.eup %2788 }
0x155b   :  { %1020 = vrot.lane.b32.xlu0 %v2789_v58, %s2853_s4 }
0x15ca   :  { %v997_v63 = vpop.permute.xlu1 %996 }
0x15cb   :  { %v999_v2 = vmul.f32 %v2783_v30, %v997_v63 }
0x15cd   :  { %1088 = vrot.lane.b32.xlu0 %v999_v2, %s2854_s26  ;;  %v1021_v54 = vpop.permute.xlu0 %1020 }
0x15ce   :  { %v1023_v5 = vmul.f32 %v2785_v32, %v1021_v54 }
0x15d0   :  { %1029 = vrot.lane.b32.xlu1 %v1023_v5, %s2853_s4 }
0x15d1   :  { %1034 = vrot.lane.b32.xlu0 %v3105_v28, %s2854_s26 }
0x15d4   :  { %1025 = vrot.lane.b32.xlu1 %v3084_v43, %s2854_s26  ;;  %v20_v43 = vstv %s3761_s11 }
0x15d5   :  { %1043 = vrot.lane.b32.xlu0 %v3126_v12, %s2854_s26  ;;  %21 = vst [vmem:[#allocation2] sm:$0x1] %v20_v43 }
0x15d8   :  { %1038 = vrot.lane.b32.xlu1 %v3207_v44, %s2853_s4 }
0x15d9   :  { %1052 = vrot.lane.b32.xlu0 %v3147_v0, %s2854_s26 }
0x15dc   :  { %1047 = vrot.lane.b32.xlu1 %v3191_v48, %s2853_s4  ;;  %v1332_v28 = vld [vmem:[#allocation2] sm:$0x1] }
0x15dd   :  { %1061 = vrot.lane.b32.xlu0 %v3168_v41, %s2854_s26  ;;  %2594 = vpush %v1332_v28  ;;  %v2315_v48 = vld [vmem:[%s3762_s10] ss:$0 sm:$0xff] }
0x15e0   :  { %1056 = vrot.lane.b32.xlu1 %v3170_v47, %s2853_s4 }
0x15e1   :  { %1070 = vrot.lane.b32.xlu0 %v3189_v24, %s2854_s26 }
0x15e4   :  { %1065 = vrot.lane.b32.xlu1 %v3149_v1, %s2853_s4 }
0x15e5   :  { %1079 = vrot.lane.b32.xlu0 %v3205_v38, %s2854_s26 }
0x15e8   :  { %1074 = vrot.lane.b32.xlu1 %v3128_v14, %s2853_s4 }
0x15e9   :  { %1092 = vrot.lane.b32.xlu0 %v3086_v45, %s2853_s4 }
0x15ec   :  { %1083 = vrot.lane.b32.xlu1 %v3107_v29, %s2853_s4 }
0x160e   :  { %s2595_s6 = spop %2594 }
0x163f   :  { %v1089_v12 = vpop.permute.xlu0 %1088 }
0x1642   :  { %v1030_v0 = vpop.permute.xlu1 %1029 }
0x1643   :  { %v1096_v1 = vsel %vm81_vm0, %v1089_v12, %v1030_v0  ;;  %v1035_v41 = vpop.permute.xlu0 %1034 }
0x1644   :  { %2432 = vmatmul.mubr.msk.f32.vlgmr.msra.gmra.mrb[28].mxu0 %vm1112_vm2, %v1096_v1 }
0x1645   :  { %2461 = vmatprep.mubr.msk.f32.mxu0 %vm2855_vm1, %v2850_v3 }
0x1646   :  { %v1026_v14 = vpop.permute.xlu1 %1025 }
0x1647   :  { %v1044_v47 = vpop.permute.xlu0 %1043  ;;  %v3310_v11 = vsel %vm81_vm0, %v1026_v14, %v1030_v0 }
0x1648   :  { %v1286_v22 = vmul.f32 %v2315_v48, %v3310_v11 }
0x164a   :  { %v1039_v24 = vpop.permute.xlu1 %1038  ;;  %v1287_v30 = vsel %vm1112_vm2, %v1286_v22, 0.0 }
0x164b   :  { %v3297_v45 = vsel %vm81_vm0, %v1035_v41, %v1039_v24  ;;  %v1053_v29 = vpop.permute.xlu0 %1052 }
0x164c   :  { %v1290_v6 = vmul.f32 %v2315_v48, %v3297_v45 }
0x164e   :  { %v1048_v38 = vpop.permute.xlu1 %1047  ;;  %v1291_v44 = vsel %vm1112_vm2, %v1290_v6, 0.0 }
0x164f   :  { %v3305_v7 = vsel %vm81_vm0, %v1044_v47, %v1048_v38  ;;  %1292 = vadd.xlane.f32.xlu0 %v1291_v44  ;;  %v1062_v8 = vpop.permute.xlu0 %1061  ;;  %v1334_v47 = vstv %s2595_s6 }
0x1650   :  { %v1294_v9 = vmul.f32 %v2315_v48, %v3305_v7 }
0x1652   :  { %v1057_v60 = vpop.permute.xlu1 %1056  ;;  %v1295_v10 = vsel %vm1112_vm2, %v1294_v9, 0.0 }
0x1653   :  { %v3313_v17 = vsel %vm81_vm0, %v1053_v29, %v1057_v60  ;;  %1296 = vadd.xlane.f32.xlu0 %v1295_v10  ;;  %v1071_v19 = vpop.permute.xlu0 %1070 }
0x1654   :  { %v1298_v20 = vmul.f32 %v2315_v48, %v3313_v17 }
0x1656   :  { %v1066_v21 = vpop.permute.xlu1 %1065  ;;  %v1299_v50 = vsel %vm1112_vm2, %v1298_v20, 0.0  ;;  %v1191_v20 = vld [vmem:[%s3765_s7] sm:$0xff] }
0x1657   :  { %v3319_v23 = vsel %vm81_vm0, %v1062_v8, %v1066_v21  ;;  %1300 = vadd.xlane.f32.xlu1 %v1299_v50  ;;  %v1080_v25 = vpop.permute.xlu0 %1079  ;;  %v1192_v21 = vld [vmem:[%s3765_s7 + $0x8] sm:$0xff]  ;;  %v1193_v50 = vld [vmem:[%s3765_s7 + $0x10] sm:$0xff] }
0x1658   :  { %v1302_v62 = vmul.f32 %v2315_v48, %v3319_v23  ;;  %v2577_v22 = vpack.c.bf16 %v1192_v21, %v1191_v20 }
0x165a   :  { %v1075_v27 = vpop.permute.xlu1 %1074  ;;  %v1303_v31 = vsel %vm1112_vm2, %v1302_v62, 0.0  ;;  %2578 = vmatpush3.bf16.msra.mxu1 %v2577_v22 }
0x165b   :  { %v3325_v35 = vsel %vm81_vm0, %v1071_v19, %v1075_v27  ;;  %1288 = vadd.xlane.f32.xlu1 %v1287_v30  ;;  %1304 = vadd.xlane.f32.xlu0 %v1303_v31  ;;  %v1093_v32 = vpop.permute.xlu0 %1092  ;;  %v2856_v19 = vmov 1   ;;  %v1195_v27 = vld [vmem:[%s3765_s7 + $0x20] sm:$0xff]  ;;  %v1196_v30 = vld [vmem:[%s3765_s7 + $0x28] sm:$0xff] }
0x165c   :  { %v3328_v13 = vsel %vm81_vm0, %v1089_v12, %v1093_v32  ;;  %v1306_v33 = vmul.f32 %v2315_v48, %v3325_v35  ;;  %2611 = vset.pattern.permute.xlu0 %v2856_v19  ;;  %2579 = vmatprep.subr.bf16.mxu1 %v2852_v26  ;;  %v2583_v31 = vpack.c.bf16 %v1196_v30, %v1195_v27 }
0x165d   :  { %v1314_v37 = vmul.f32 %v2315_v48, %v3328_v13 }
0x165e   :  { %v1084_v46 = vpop.permute.xlu1 %1083  ;;  %v1307_v34 = vsel %vm1112_vm2, %v1306_v33, 0.0 }
0x165f   :  { %v3334_v52 = vsel %vm81_vm0, %v1080_v25, %v1084_v46  ;;  %1308 = vadd.xlane.f32.xlu1 %v1307_v34  ;;  %v1315_v51 = vsel %vm1112_vm2, %v1314_v37, 0.0  ;;  %v1194_v25 = vld [vmem:[%s3765_s7 + $0x18] sm:$0xff]  ;;  %v1197_v34 = vld [vmem:[%s3765_s7 + $0x30] sm:$0xff] }
0x1660   :  { %v1310_v49 = vmul.f32 %v2315_v48, %v3334_v52  ;;  %v2580_v62 = vpack.c.bf16 %v1194_v25, %v1193_v50  ;;  %v1198_v37 = vld [vmem:[%s3765_s7 + $0x38] sm:$0xff] }
0x1662   :  { %v1311_v58 = vsel %vm1112_vm2, %v1310_v49, 0.0  ;;  %2581 = vmatpush3.bf16.msra.mxu1 %v2580_v62  ;;  %v2586_v49 = vpack.c.bf16 %v1198_v37, %v1197_v34  ;;  %v2313_v37 = vld [vmem:[%s3769_s8] ss:$0 sm:$0xff] }
0x1663   :  { %1312 = vadd.xlane.f32.xlu0 %v1311_v58  ;;  %1316 = vadd.xlane.f32.xlu1 %v1315_v51  ;;  %v2858_v58 = vmov 2   ;;  %v2859_v51 = vmov 3  }
0x1664   :  { %2582 = vmatprep.subr.bf16.mxu1 %v2852_v26 }
0x1666   :  { %2584 = vmatpush3.bf16.msra.mxu1 %v2583_v31 }
0x1667   :  { %2585 = vmatprep.subr.bf16.mxu1 %v2852_v26 }
0x166a   :  { %2587 = vmatpush3.bf16.msra.mxu1 %v2586_v49 }
0x166b   :  { %2476 = vmatprep.subr.bf16.mxu1 %v2850_v3 }
0x16dc   :  { %v1293_v15 = vpop.xlane.xlu0 %1292 }
0x16e0   :  { %v1297_v63 = vpop.xlane.xlu0 %1296 }
0x16e4   :  { %v1301_v56 = vpop.xlane.xlu1 %1300 }
0x16e8   :  { %v1289_v16 = vpop.xlane.xlu1 %1288  ;;  %v1305_v5 = vpop.xlane.xlu0 %1304 }
0x16e9   :  { %v1319_v18 = vsel %vm1318_vm3, %v1289_v16, %v1293_v15  ;;  %v1344_v15 = vld [vmem:[%s3767_s13 + $0x18] sm:$0xff]  ;;  %v2863_v16 = vmov 7  }
0x16ea   :  { %v1321_v2 = vsel %vm1320_vm4, %v1319_v18, %v1297_v63  ;;  %v1336_v63 = vld [vmem:[%s3768_s1] sm:$0xff] }
0x16eb   :  { %v1323_v54 = vsel %vm1322_vm5, %v1321_v2, %v1301_v56  ;;  %v1343_v56 = vld [vmem:[%s3767_s13 + $0x10] sm:$0xff]  ;;  %v3428_v2 = vld [vmem:[%s3766_s12 + $0x8] sm:$0xff]  }
0x16ec   :  { %v1309_v43 = vpop.xlane.xlu1 %1308  ;;  %v1325_v28 = vsel %vm1324_vm6, %v1323_v54, %v1305_v5  ;;  %v2592_v18 = vpack.c.bf16 %v1344_v15, %v1343_v56  ;;  %v3442_v54 = vld [vmem:[%s3766_s12 + $0x18] sm:$0xff]   ;;  %v3449_v5 = vld [vmem:[%s3766_s12 + $0x20] sm:$0xff]  }
0x16ed   :  { %v1327_v0 = vsel %vm1326_vm7, %v1325_v28, %v1309_v43  ;;  %v3456_v43 = vld [vmem:[%s3766_s12 + $0x28] sm:$0xff]  }
0x16f0   :  { %v1313_v12 = vpop.xlane.xlu0 %1312  ;;  %v1317_v1 = vpop.xlane.xlu1 %1316 }
0x16f1   :  { %v1329_v41 = vsel %vm1328_vm8, %v1327_v0, %v1313_v12 }
0x16f2   :  { %v1331_v14 = vsel %vm1330_vm9, %v1329_v41, %v1317_v1 }
0x16f3   :  { %v3352_v24 = vadd.f32 %v1334_v47, %v1331_v14 }
0x1717   :  { %v1182_v55 = vpop.f32.mrb[28].mxu0 }
0x1718   :  { %v3347_v42 = vadd.f32 %v2311_v53, %v1182_v55  ;;  %v2433_v57 = vpop.f32.mrb[29].mxu0  ;;  %v2860_v53 = vmov 4   ;;  %v2861_v55 = vmov 5  }
0x1719   :  { %v2862_v57 = vmov 6  }
0x171a   :  { %v1476_v59 = vmul.f32 %v3345_v40, %v3347_v42 }
0x171c   :  { %v1477_v61 = vsel %vm81_vm0, %v1476_v59, 0.0  ;;  %v1342_v59 = vld [vmem:[%s3767_s13 + $0x8] sm:$0xff] }
0x171d   :  { %1478 = vadd.xlane.f32.xlu0 %v1477_v61 }
0x17aa   :  { %v1479_v29 = vpop.xlane.xlu0 %1478 }
0x17ab   :  { %v1480_v48 = vadd.f32 %v1479_v29, %v3352_v24 }
0x17ad   :  { %v1481_v6 = vmax.f32 %v1480_v48, 0.0 }
0x17af   :  { %v1483_v38 = vsel %vm1482_vm10, %v1481_v6, -inf }
0x17b0   :  { %1484 = vmax.xlane.f32.xlu1 %v1483_v38 }
0x183d   :  { %v1485_v44 = vpop.xlane.xlu1 %1484 }
0x183e   :  { %v1486_v8 = vsub.f32 %v1481_v6, %v1485_v44 }
0x1840   :  { %v1487_v9 = vmul.f32 1.442695, %v1486_v8 }
0x1842   :  { %2790 = vpow2.f32 %v1487_v9 }
0x184c   :  { %v2791_v60 = vpop.eup %2790 }
0x184d   :  { %v1489_v10 = vsel %vm1482_vm10, %v2791_v60, 0.0 }
0x184e   :  { %1490 = vadd.xlane.f32.xlu0 %v1489_v10 }
0x18db   :  { %v1491_v32 = vpop.xlane.xlu0 %1490 }
0x18dc   :  { %2792 = vrcp.f32 %v1491_v32 }
0x18e6   :  { %v2793_v33 = vpop.eup %2792 }
0x18e7   :  { %v1493_v46 = vmul.f32 %v2793_v33, %v2791_v60 }
0x18e9   :  { %1501 = vperm.xlu0 %2611, %v1493_v46   ;;  %1496 = vperm.xlu1 %2610, %v1493_v46  }
0x18ed   :  { %1187 = vrot.lane.b32.xlu1 %v3219_v36, %s2857_s27  ;;  %2618 = vset.pattern.permute.xlu0 %v2851_v4  ;;  %v1341_v36 = vld [vmem:[%s3767_s13] sm:$0xff] }
0x18ee   :  { %2612 = vset.pattern.permute.xlu1 %v2858_v58  ;;  %v2589_v61 = vpack.c.bf16 %v1342_v59, %v1341_v36 }
0x18f0   :  { %2590 = vmatpush3.bf16.msra.mxu0 %v2589_v61  ;;  %v3508_v61 = vld [vmem:[%s3770_s14] ss:$0 sm:$0xff] }
0x18f1   :  { %1507 = vperm.xlu1 %2612, %v1493_v46   ;;  %2591 = vmatprep.subr.bf16.mxu0 %v2852_v26  ;;  %v3412_v26 = vld [vmem:[%s3766_s12] sm:$0xff]  }
0x18f4   :  { %2593 = vmatpush3.bf16.msra.mxu0 %v2592_v18 }
0x18f5   :  { %2613 = vset.pattern.permute.xlu1 %v2859_v51  ;;  %2492 = vmatprep.subr.bf16.mxu0 %v2850_v3 }
0x18f6   :  { %1513 = vperm.xlu1 %2613, %v1493_v46  }
0x18f7   :  { %2462 = vmatmul.mubr.msk.f32.vlgmr.msra.gmra.mrb[30].mxu0 %vm81_vm0, %v1336_v63 }
0x18f8   :  { %2493 = vmatpush3.bf16.msra.mxu0 %v3412_v26  ;;  %2464 = vmatprep.mubr.msk.f32.mxu0 %vm2855_vm1, %v2850_v3 }
0x18f9   :  { %2494 = vmatprep.subr.bf16.mxu0 %v2850_v3 }
0x18fa   :  { %2614 = vset.pattern.permute.xlu1 %v2860_v53 }
0x18fb   :  { %1519 = vperm.xlu1 %2614, %v1493_v46  }
0x18fc   :  { %2495 = vmatpush3.bf16.msra.mxu0 %v3428_v2 }
0x18fd   :  { %2496 = vmatprep.subr.bf16.mxu0 %v2850_v3 }
0x18ff   :  { %2615 = vset.pattern.permute.xlu1 %v2861_v55 }
0x1900   :  { %1525 = vperm.xlu1 %2615, %v1493_v46  }
0x1904   :  { %2616 = vset.pattern.permute.xlu1 %v2862_v57 }
0x1905   :  { %1531 = vperm.xlu1 %2616, %v1493_v46  }
0x1909   :  { %2617 = vset.pattern.permute.xlu1 %v2863_v16 }
0x190a   :  { %1537 = vperm.xlu1 %2617, %v1493_v46  }
0x190e   :  { %1543 = vrot.lane.b32.xlu1 %v3347_v42, %s2853_s4  ;;  %v3435_v42 = vld [vmem:[%s3766_s12 + $0x10] sm:$0xff]  }
0x190f   :  { %2619 = vset.pattern.permute.xlu1 %v2856_v19  ;;  %2497 = vmatpush3.bf16.msra.mxu0 %v3435_v42 }
0x1910   :  { %2498 = vmatprep.subr.bf16.mxu0 %v2850_v3 }
0x1913   :  { %2499 = vmatpush3.bf16.msra.mxu0 %v3442_v54 }
0x1914   :  { %2500 = vmatprep.subr.bf16.mxu0 %v2850_v3 }
0x1917   :  { %2501 = vmatpush3.bf16.msra.mxu0 %v3449_v5 }
0x1918   :  { %2502 = vmatprep.subr.bf16.mxu0 %v2850_v3 }
0x191b   :  { %2503 = vmatpush3.bf16.msra.mxu0 %v3456_v43 }
0x191c   :  { %2524 = vmatprep.subr.bf16.mxu0 %v2850_v3 }
0x1968   :  { %v1497_v28 = vpop.permute.xlu1 %1496 }
0x1969   :  { %v1499_v29 = vmul.f32 %v1497_v28, %v3310_v11 }
0x196c   :  { %v1188_v12 = vpop.permute.xlu1 %1187 }
0x196d   :  { %v1190_v0 = vsel %vm81_vm0, %v1188_v12, %v3222_v39  ;;  %v1502_v39 = vpop.permute.xlu0 %1501 }
0x196e   :  { %2451 = vmatmul.mubr.msk.f32.vlgmr.msra.gmra.mrb[20].mxu1 %vm1112_vm2, %v1190_v0  ;;  %v1504_v47 = vmul.f32 %v1502_v39, %v3297_v45 }
0x196f   :  { %2477 = vmatpush3.bf16.msra.mxu1 %v3412_v26  ;;  %2488 = vmatprep.mubr.msk.bf16.mxu1 %vm2855_vm1, %v2850_v3 }
0x1970   :  { %v1508_v1 = vpop.permute.xlu1 %1507  ;;  %2478 = vmatprep.subr.bf16.mxu1 %v2850_v3  ;;  %v1505_v38 = vadd.f32 %v1504_v47, %v1499_v29 }
0x1971   :  { %v1510_v48 = vmul.f32 %v1508_v1, %v3305_v7 }
0x1973   :  { %2479 = vmatpush3.bf16.msra.mxu1 %v3428_v2  ;;  %v1511_v8 = vadd.f32 %v1510_v48, %v1505_v38 }
0x1974   :  { %2480 = vmatprep.subr.bf16.mxu1 %v2850_v3 }
0x1975   :  { %v1514_v41 = vpop.permute.xlu1 %1513 }
0x1976   :  { %v1516_v44 = vmul.f32 %v1514_v41, %v3313_v17 }
0x1977   :  { %2481 = vmatpush3.bf16.msra.mxu1 %v3435_v42 }
0x1978   :  { %2482 = vmatprep.subr.bf16.mxu1 %v2850_v3  ;;  %v1517_v60 = vadd.f32 %v1516_v44, %v1511_v8 }
0x197a   :  { %v1520_v14 = vpop.permute.xlu1 %1519 }
0x197b   :  { %2483 = vmatpush3.bf16.msra.mxu1 %v3442_v54  ;;  %v1522_v9 = vmul.f32 %v1520_v14, %v3319_v23 }
0x197c   :  { %2484 = vmatprep.subr.bf16.mxu1 %v2850_v3 }
0x197d   :  { %v1523_v21 = vadd.f32 %v1522_v9, %v1517_v60 }
0x197f   :  { %v1526_v6 = vpop.permute.xlu1 %1525  ;;  %2485 = vmatpush3.bf16.msra.mxu1 %v3449_v5 }
0x1980   :  { %2486 = vmatprep.subr.bf16.mxu1 %v2850_v3  ;;  %v1528_v10 = vmul.f32 %v1526_v6, %v3325_v35 }
0x1982   :  { %v1529_v22 = vadd.f32 %v1528_v10, %v1523_v21 }
0x1983   :  { %2487 = vmatpush3.bf16.msra.mxu1 %v3456_v43 }
0x1984   :  { %v1532_v20 = vpop.permute.xlu1 %1531  ;;  %2508 = vmatprep.subr.bf16.mxu1 %v2850_v3 }
0x1985   :  { %v1534_v50 = vmul.f32 %v1532_v20, %v3334_v52 }
0x1987   :  { %v1535_v62 = vadd.f32 %v1534_v50, %v1529_v22 }
0x1989   :  { %v1538_v25 = vpop.permute.xlu1 %1537 }
0x198a   :  { %v1540_v27 = vmul.f32 %v1538_v25, %v3328_v13 }
0x198c   :  { %v1541_v30 = vadd.f32 %v1540_v27, %v1535_v62 }
0x198d   :  { %v1544_v31 = vpop.permute.xlu1 %1543 }
0x198e   :  { %v1546_v32 = vsel %vm1112_vm2, %v1541_v30, %v1544_v31 }
0x198f   :  { %v1547_v33 = vpack.c.bf16 %v1546_v32, %v1546_v32 }
0x1991   :  { %2489 = vmatmul.mubr.msk.bf16.vlgmr.msra.gmra.mrb[24].mxu1 %vm1584_vm11, %v1547_v33 }
0x1992   :  { %2509 = vmatpush3.bf16.msra.mxu1 %v3412_v26  ;;  %2520 = vmatprep.mubr.msk.bf16.mxu1 %vm2855_vm1, %v2850_v3 }
0x1993   :  { %2510 = vmatprep.subr.bf16.mxu1 %v2850_v3 }
0x1996   :  { %2511 = vmatpush3.bf16.msra.mxu1 %v3428_v2 }
0x1997   :  { %2512 = vmatprep.subr.bf16.mxu1 %v2850_v3 }
0x199a   :  { %2513 = vmatpush3.bf16.msra.mxu1 %v3435_v42 }
0x199b   :  { %2514 = vmatprep.subr.bf16.mxu1 %v2850_v3 }
0x199e   :  { %2515 = vmatpush3.bf16.msra.mxu1 %v3442_v54 }
0x199f   :  { %2516 = vmatprep.subr.bf16.mxu1 %v2850_v3 }
0x19a2   :  { %2517 = vmatpush3.bf16.msra.mxu1 %v3449_v5 }
0x19a3   :  { %2518 = vmatprep.subr.bf16.mxu1 %v2850_v3 }
0x19a6   :  { %2519 = vmatpush3.bf16.msra.mxu1 %v3456_v43 }
0x19a7   :  { %2540 = vmatprep.subr.bf16.mxu1 %v2850_v3 }
0x19ca   :  { %v1433_v46 = vpop.f32.mrb[30].mxu0 }
0x19cb   :  { %v2463_v34 = vpop.f32.mrb[31].mxu0  ;;  %v1434_v56 = vadd.f32 %v3508_v61, %v1433_v46 }
0x1a41   :  { %v1275_v49 = vpop.f32.mrb[20].mxu1 }
0x1a42   :  { %v1276_v36 = vadd.f32 %v2313_v37, %v1275_v49  ;;  %v2452_v59 = vpop.f32.mrb[21].mxu1  ;;  %v1337_v49 = vld [vmem:[%s3768_s1 + $0x8] sm:$0xff] }
0x1a43   :  { %2465 = vmatmul.mubr.msk.f32.gmra.mrb[32].mxu0 %vm81_vm0, %v1337_v49  ;;  %v1339_v59 = vld [vmem:[%s3768_s1 + $0x18] sm:$0xff] }
0x1a44   :  { %1636 = vrot.lane.b32.xlu1 %v1276_v36, %s2854_s26  ;;  %2467 = vmatprep.mubr.msk.f32.mxu0 %vm2855_vm1, %v2850_v3  ;;  %v1338_v36 = vld [vmem:[%s3768_s1 + $0x10] sm:$0xff] }
0x1a47   :  { %2468 = vmatmul.mubr.msk.f32.gmra.mrb[34].mxu0 %vm81_vm0, %v1338_v36 }
0x1a48   :  { %2470 = vmatprep.mubr.msk.f32.mxu0 %vm2855_vm1, %v2850_v3 }
0x1a4b   :  { %2471 = vmatmul.mubr.msk.f32.gmra.mrb[36].mxu0 %vm81_vm0, %v1339_v59 }
0x1a4c   :  { %2473 = vmatprep.mubr.msk.f32.mxu0 %vm2855_vm1, %v2850_v3 }
0x1a64   :  { %v1622_v15 = vpop.f32.mrb[24].mxu1 }
0x1a65   :  { %v1623_v18 = vadd.f32 %v1622_v15, %v1434_v56  ;;  %v2490_v63 = vpop.f32.mrb[25].mxu1  ;;  %v1340_v56 = vld [vmem:[%s3768_s1 + $0x20] sm:$0xff] }
0x1a66   :  { %v1625_v28 = vpop.f32.mrb[26].mxu1  ;;  %2474 = vmatmul.mubr.msk.f32.gmra.mrb[38].mxu0 %vm81_vm0, %v1340_v56 }
0x1a67   :  { %2794 = vtanh.f32 %v1623_v18  ;;  %v2491_v12 = vpop.f32.mrb[27].mxu1  ;;  %v2330_v1 = vmul.f32 -1.442695, %v1623_v18  ;;  %2504 = vmatprep.mubr.msk.bf16.mxu0 %vm2855_vm1, %v2850_v3 }
0x1a69   :  { %2796 = vpow2.f32 %v2330_v1 }
0x1a71   :  { %v2795_v0 = vpop.eup %2794 }
0x1a72   :  { %1641 = vrot.lane.b32.xlu0 %v2795_v0, %s2853_s4 }
0x1a73   :  { %v2797_v41 = vpop.eup %2796 }
0x1a74   :  { %v1631_v39 = vadd.f32 1.0, %v2797_v41 }
0x1a76   :  { %2798 = vrcp.f32 %v1631_v39 }
0x1a80   :  { %v2799_v14 = vpop.eup %2798 }
0x1ab6   :  { %v1637_v48 = vpop.permute.xlu1 %1636 }
0x1ab7   :  { %v1639_v6 = vmul.f32 %v2799_v14, %v1637_v48 }
0x1ae4   :  { %v1642_v47 = vpop.permute.xlu0 %1641 }
0x1ae5   :  { %v1644_v29 = vmul.f32 %v2799_v14, %v1642_v47 }
0x1ae7   :  { %1646 = vrot.lane.b32.xlu0 %v1644_v29, %s2854_s26 }
0x1aeb   :  { %1665 = vrot.lane.b32.xlu0 %v3345_v40, %s2857_s27 }
0x1b59   :  { %v1647_v38 = vpop.permute.xlu0 %1646 }
0x1b5a   :  { %v3515_v44 = vadd.f32 %v1647_v38, %v1639_v6 }
0x1b5c   :  { %2800 = vtanh.f32 %v3515_v44 }
0x1b5d   :  { %v3519_v60 = vpop.permute.xlu0 %1665 }
0x1b66   :  { %v2801_v8 = vpop.eup %2800 }
0x1b67   :  { %1652 = vrot.lane.b32.xlu1 %v2801_v8, %s2853_s4 }
0x1bd9   :  { %v1653_v9 = vpop.permute.xlu1 %1652 }
0x1bda   :  { %v3521_v10 = vmul.f32 %v2799_v14, %v1653_v9 }
0x1bdc   :  { %v1668_v20 = vmul.f32 %v3519_v60, %v3521_v10 }
0x1bde   :  { %1670 = vrot.lane.b32.xlu1 %v1668_v20, %s2854_s26 }
0x1c50   :  { %v1671_v40 = vpop.permute.xlu1 %1670 }
0x1c51   :  { %v1673_v21 = vsel %vm81_vm0, %v1671_v40, 0.0 }
0x1c52   :  { %1674 = vadd.xlane.f32.xlu0 %v1673_v21 }
0x1cdf   :  { %v1675_v50 = vpop.xlane.xlu0 %1674 }
0x1ce0   :  { %v1676_v22 = vadd.f32 %v1675_v50, %v3352_v24 }
0x1ce2   :  { %v1677_v25 = vmax.f32 %v1676_v22, 0.0 }
0x1ce4   :  { %v1678_v62 = vsel %vm1482_vm10, %v1677_v25, -inf }
0x1ce5   :  { %1679 = vmax.xlane.f32.xlu1 %v1678_v62 }
0x1d72   :  { %v1680_v27 = vpop.xlane.xlu1 %1679 }
0x1d73   :  { %v1681_v30 = vsub.f32 %v1677_v25, %v1680_v27 }
0x1d75   :  { %v1682_v31 = vmul.f32 1.442695, %v1681_v30 }
0x1d77   :  { %2802 = vpow2.f32 %v1682_v31  ;;  %v1438_v31 = vpop.f32.mrb[32].mxu0 }
0x1d78   :  { %v1439_v59 = vadd.f32 %v3508_v61, %v1438_v31 }
0x1d81   :  { %v2803_v32 = vpop.eup %2802 }
0x1d82   :  { %v1684_v33 = vsel %vm1482_vm10, %v2803_v32, 0.0 }
0x1d83   :  { %1685 = vadd.xlane.f32.xlu0 %v1684_v33 }
0x1e10   :  { %v1686_v46 = vpop.xlane.xlu0 %1685 }
0x1e11   :  { %2804 = vrcp.f32 %v1686_v46 }
0x1e1b   :  { %v2805_v34 = vpop.eup %2804 }
0x1e1c   :  { %v1688_v37 = vmul.f32 %v2805_v34, %v2803_v32  ;;  %v2466_v32 = vpop.f32.mrb[33].mxu0 }
0x1e1d   :  { %v3587_v33 = vpop.f32.mrb[34].mxu0 }
0x1e1e   :  { %1696 = vperm.xlu1 %2619, %v1688_v37   ;;  %1691 = vperm.xlu0 %2618, %v1688_v37   ;;  %v2469_v46 = vpop.f32.mrb[35].mxu0 }
0x1e1f   :  { %v3589_v34 = vpop.f32.mrb[36].mxu0 }
0x1e22   :  { %2620 = vset.pattern.permute.xlu1 %v2858_v58  ;;  %1738 = vrot.lane.b32.xlu0 %v3521_v10, %s2857_s27 }
0x1e23   :  { %1702 = vperm.xlu1 %2620, %v1688_v37   ;;  %2627 = vset.pattern.permute.xlu0 %v2856_v19 }
0x1e27   :  { %2621 = vset.pattern.permute.xlu1 %v2859_v51 }
0x1e28   :  { %1708 = vperm.xlu1 %2621, %v1688_v37  }
0x1e2c   :  { %2622 = vset.pattern.permute.xlu1 %v2860_v53 }
0x1e2d   :  { %1714 = vperm.xlu1 %2622, %v1688_v37  }
0x1e31   :  { %2623 = vset.pattern.permute.xlu1 %v2861_v55 }
0x1e32   :  { %1720 = vperm.xlu1 %2623, %v1688_v37  }
0x1e36   :  { %2624 = vset.pattern.permute.xlu1 %v2862_v57 }
0x1e37   :  { %1726 = vperm.xlu1 %2624, %v1688_v37  }
0x1e3b   :  { %2625 = vset.pattern.permute.xlu1 %v2863_v16 }
0x1e3c   :  { %1732 = vperm.xlu1 %2625, %v1688_v37   ;;  %v2472_v37 = vpop.f32.mrb[37].mxu0 }
0x1e3d   :  { %v3591_v49 = vpop.f32.mrb[38].mxu0 }
0x1e3e   :  { %v2475_v36 = vpop.f32.mrb[39].mxu0 }
0x1e40   :  { %2626 = vset.pattern.permute.xlu1 %v2851_v4 }
0x1e9d   :  { %v1697_v15 = vpop.permute.xlu1 %1696  ;;  %v1692_v28 = vpop.permute.xlu0 %1691 }
0x1e9e   :  { %v1699_v0 = vmul.f32 %v1697_v15, %v3297_v45  ;;  %v1694_v1 = vmul.f32 %v1692_v28, %v3310_v11 }
0x1ea0   :  { %v1700_v14 = vadd.f32 %v1699_v0, %v1694_v1 }
0x1ea1   :  { %v1739_v62 = vpop.permute.xlu0 %1738 }
0x1ea2   :  { %v1703_v18 = vpop.permute.xlu1 %1702 }
0x1ea3   :  { %v1705_v41 = vmul.f32 %v1703_v18, %v3305_v7 }
0x1ea5   :  { %v1706_v29 = vadd.f32 %v1705_v41, %v1700_v14 }
0x1ea7   :  { %v1709_v63 = vpop.permute.xlu1 %1708 }
0x1ea8   :  { %v1711_v47 = vmul.f32 %v1709_v63, %v3313_v17 }
0x1eaa   :  { %v1712_v6 = vadd.f32 %v1711_v47, %v1706_v29 }
0x1eac   :  { %v1715_v12 = vpop.permute.xlu1 %1714 }
0x1ead   :  { %v1717_v48 = vmul.f32 %v1715_v12, %v3319_v23 }
0x1eaf   :  { %v1718_v9 = vadd.f32 %v1717_v48, %v1712_v6 }
0x1eb1   :  { %v1721_v39 = vpop.permute.xlu1 %1720 }
0x1eb2   :  { %v1723_v38 = vmul.f32 %v1721_v39, %v3325_v35 }
0x1eb4   :  { %v1724_v40 = vadd.f32 %v1723_v38, %v1718_v9 }
0x1eb6   :  { %v1727_v8 = vpop.permute.xlu1 %1726 }
0x1eb7   :  { %v1729_v20 = vmul.f32 %v1727_v8, %v3334_v52 }
0x1eb9   :  { %v1730_v50 = vadd.f32 %v1729_v20, %v1724_v40 }
0x1ebb   :  { %v1733_v21 = vpop.permute.xlu1 %1732 }
0x1ebc   :  { %v1735_v22 = vmul.f32 %v1733_v21, %v3328_v13 }
0x1ebe   :  { %v1736_v25 = vadd.f32 %v1735_v22, %v1730_v50 }
0x1ec0   :  { %v1741_v27 = vsel %vm1112_vm2, %v1736_v25, %v1739_v62 }
0x1ec1   :  { %v1742_v30 = vpack.c.bf16 %v1741_v27, %v1741_v27 }
0x1ec3   :  { %2505 = vmatmul.mubr.msk.bf16.vlgmr.msra.gmra.mrb[40].mxu0 %vm1584_vm11, %v1742_v30 }
0x1ec4   :  { %2525 = vmatpush3.bf16.msra.mxu0 %v3412_v26  ;;  %2536 = vmatprep.mubr.msk.bf16.mxu0 %vm2855_vm1, %v2850_v3 }
0x1ec5   :  { %2526 = vmatprep.subr.bf16.mxu0 %v2850_v3 }
0x1ec8   :  { %2527 = vmatpush3.bf16.msra.mxu0 %v3428_v2 }
0x1ec9   :  { %2528 = vmatprep.subr.bf16.mxu0 %v2850_v3 }
0x1ecc   :  { %2529 = vmatpush3.bf16.msra.mxu0 %v3435_v42 }
0x1ecd   :  { %2530 = vmatprep.subr.bf16.mxu0 %v2850_v3 }
0x1ed0   :  { %2531 = vmatpush3.bf16.msra.mxu0 %v3442_v54 }
0x1ed1   :  { %2532 = vmatprep.subr.bf16.mxu0 %v2850_v3 }
0x1ed4   :  { %2533 = vmatpush3.bf16.msra.mxu0 %v3449_v5 }
0x1ed5   :  { %2534 = vmatprep.subr.bf16.mxu0 %v2850_v3 }
0x1ed8   :  { %2535 = vmatpush3.bf16.msra.mxu0 %v3456_v43 }
0x1f96   :  { %v1780_v56 = vpop.f32.mrb[40].mxu0 }
0x1f97   :  { %v1781_v15 = vadd.f32 %v1780_v56, %v1439_v59  ;;  %v2506_v18 = vpop.f32.mrb[41].mxu0 }
0x1f98   :  { %v1783_v63 = vpop.f32.mrb[42].mxu0 }
0x1f99   :  { %2806 = vtanh.f32 %v1781_v15  ;;  %v2507_v28 = vpop.f32.mrb[43].mxu0  ;;  %v2333_v0 = vmul.f32 -1.442695, %v1781_v15 }
0x1f9b   :  { %2808 = vpow2.f32 %v2333_v0 }
0x1fa3   :  { %v2807_v12 = vpop.eup %2806 }
0x1fa4   :  { %1795 = vrot.lane.b32.xlu1 %v2807_v12, %s2853_s4 }
0x1fa5   :  { %v2809_v1 = vpop.eup %2808 }
0x1fa6   :  { %v1789_v41 = vadd.f32 1.0, %v2809_v1 }
0x1fa8   :  { %2810 = vrcp.f32 %v1789_v41 }
0x1fb2   :  { %v2811_v39 = vpop.eup %2810 }
0x1fb3   :  { %v1793_v29 = vmul.f32 %v2811_v39, %v3515_v44 }
0x2016   :  { %v1796_v14 = vpop.permute.xlu1 %1795 }
0x2017   :  { %v1798_v47 = vmul.f32 %v2811_v39, %v1796_v14 }
0x2019   :  { %1800 = vrot.lane.b32.xlu0 %v1798_v47, %s2854_s26 }
0x208b   :  { %v1801_v48 = vpop.permute.xlu0 %1800 }
0x208c   :  { %v3597_v6 = vadd.f32 %v1801_v48, %v1793_v29 }
0x208e   :  { %2812 = vtanh.f32 %v3597_v6 }
0x2098   :  { %v2813_v38 = vpop.eup %2812 }
0x2099   :  { %1806 = vrot.lane.b32.xlu1 %v2813_v38, %s2853_s4 }
0x210b   :  { %v1807_v8 = vpop.permute.xlu1 %1806 }
0x210c   :  { %v3601_v9 = vmul.f32 %v2811_v39, %v1807_v8 }
0x210e   :  { %v1819_v20 = vmul.f32 %v3601_v9, %v3519_v60 }
0x2110   :  { %1821 = vrot.lane.b32.xlu0 %v1819_v20, %s2854_s26 }
0x2182   :  { %v1822_v40 = vpop.permute.xlu0 %1821 }
0x2183   :  { %v1824_v21 = vsel %vm81_vm0, %v1822_v40, 0.0 }
0x2184   :  { %1825 = vadd.xlane.f32.xlu1 %v1824_v21 }
0x2211   :  { %v1826_v44 = vpop.xlane.xlu1 %1825 }
0x2212   :  { %v1827_v50 = vadd.f32 %v1826_v44, %v3352_v24 }
0x2214   :  { %v1828_v22 = vmax.f32 %v1827_v50, 0.0 }
0x2216   :  { %v1829_v25 = vsel %vm1482_vm10, %v1828_v22, -inf }
0x2217   :  { %1830 = vmax.xlane.f32.xlu0 %v1829_v25 }
0x22a4   :  { %v1831_v62 = vpop.xlane.xlu0 %1830 }
0x22a5   :  { %v1832_v27 = vsub.f32 %v1828_v22, %v1831_v62 }
0x22a7   :  { %v1833_v30 = vmul.f32 1.442695, %v1832_v27 }
0x22a9   :  { %2814 = vpow2.f32 %v1833_v30 }
0x22b3   :  { %v2815_v31 = vpop.eup %2814 }
0x22b4   :  { %v1835_v32 = vsel %vm1482_vm10, %v2815_v31, 0.0 }
0x22b5   :  { %1836 = vadd.xlane.f32.xlu0 %v1835_v32 }
0x2342   :  { %v1837_v46 = vpop.xlane.xlu0 %1836 }
0x2343   :  { %2816 = vrcp.f32 %v1837_v46 }
0x234d   :  { %v2817_v37 = vpop.eup %2816 }
0x234e   :  { %v1839_v36 = vmul.f32 %v2817_v37, %v2815_v31 }
0x2350   :  { %1847 = vperm.xlu0 %2627, %v1839_v36   ;;  %1842 = vperm.xlu1 %2626, %v1839_v36  }
0x2354   :  { %2628 = vset.pattern.permute.xlu1 %v2858_v58 }
0x2355   :  { %1853 = vperm.xlu1 %2628, %v1839_v36  }
0x2359   :  { %2629 = vset.pattern.permute.xlu1 %v2859_v51 }
0x235a   :  { %1859 = vperm.xlu1 %2629, %v1839_v36  }
0x235e   :  { %2630 = vset.pattern.permute.xlu1 %v2860_v53 }
0x235f   :  { %1865 = vperm.xlu1 %2630, %v1839_v36  }
0x2363   :  { %2631 = vset.pattern.permute.xlu1 %v2861_v55 }
0x2364   :  { %1871 = vperm.xlu1 %2631, %v1839_v36  }
0x2368   :  { %2632 = vset.pattern.permute.xlu1 %v2862_v57 }
0x2369   :  { %1877 = vperm.xlu1 %2632, %v1839_v36  }
0x236d   :  { %2633 = vset.pattern.permute.xlu1 %v2863_v16 }
0x236e   :  { %1883 = vperm.xlu1 %2633, %v1839_v36  }
0x2372   :  { %1889 = vrot.lane.b32.xlu1 %v3601_v9, %s2857_s27 }
0x2373   :  { %2634 = vset.pattern.permute.xlu1 %v2851_v4 }
0x23cf   :  { %v1843_v59 = vpop.permute.xlu1 %1842  ;;  %v1848_v18 = vpop.permute.xlu0 %1847 }
0x23d0   :  { %v1850_v28 = vmul.f32 %v1848_v18, %v3297_v45  ;;  %v1845_v12 = vmul.f32 %v1843_v59, %v3310_v11 }
0x23d2   :  { %v1851_v41 = vadd.f32 %v1850_v28, %v1845_v12 }
0x23d4   :  { %v1854_v56 = vpop.permute.xlu1 %1853 }
0x23d5   :  { %v1856_v0 = vmul.f32 %v1854_v56, %v3305_v7 }
0x23d7   :  { %v1857_v14 = vadd.f32 %v1856_v0, %v1851_v41 }
0x23d9   :  { %v1860_v15 = vpop.permute.xlu1 %1859 }
0x23da   :  { %v1862_v39 = vmul.f32 %v1860_v15, %v3313_v17 }
0x23dc   :  { %v1863_v29 = vadd.f32 %v1862_v39, %v1857_v14 }
0x23de   :  { %v1866_v63 = vpop.permute.xlu1 %1865 }
0x23df   :  { %v1868_v47 = vmul.f32 %v1866_v63, %v3319_v23 }
0x23e1   :  { %v1869_v8 = vadd.f32 %v1868_v47, %v1863_v29 }
0x23e3   :  { %v1872_v1 = vpop.permute.xlu1 %1871 }
0x23e4   :  { %v1874_v48 = vmul.f32 %v1872_v1, %v3325_v35 }
0x23e6   :  { %v1875_v40 = vadd.f32 %v1874_v48, %v1869_v8 }
0x23e8   :  { %v1878_v38 = vpop.permute.xlu1 %1877 }
0x23e9   :  { %v1880_v20 = vmul.f32 %v1878_v38, %v3334_v52 }
0x23eb   :  { %v1881_v44 = vadd.f32 %v1880_v20, %v1875_v40 }
0x23ed   :  { %v1884_v21 = vpop.permute.xlu1 %1883 }
0x23ee   :  { %v1886_v50 = vmul.f32 %v1884_v21, %v3328_v13 }
0x23f0   :  { %v1887_v22 = vadd.f32 %v1886_v50, %v1881_v44 }
0x23f1   :  { %v1890_v25 = vpop.permute.xlu1 %1889 }
0x23f2   :  { %v1892_v62 = vsel %vm1112_vm2, %v1887_v22, %v1890_v25 }
0x23f3   :  { %v1893_v27 = vpack.c.bf16 %v1892_v62, %v1892_v62 }
0x23f5   :  { %2521 = vmatmul.mubr.msk.bf16.vlgmr.msra.gmra.mrb[28].mxu1 %vm1584_vm11, %v1893_v27 }
0x23f6   :  { %2541 = vmatpush3.bf16.msra.mxu1 %v3412_v26  ;;  %2552 = vmatprep.mubr.msk.bf16.mxu1 %vm2855_vm1, %v2850_v3  ;;  %v1444_v26 = vadd.f32 %v3508_v61, %v3587_v33 }
0x23f7   :  { %2542 = vmatprep.subr.bf16.mxu1 %v2850_v3 }
0x23fa   :  { %2543 = vmatpush3.bf16.msra.mxu1 %v3428_v2 }
0x23fb   :  { %2544 = vmatprep.subr.bf16.mxu1 %v2850_v3 }
0x23fe   :  { %2545 = vmatpush3.bf16.msra.mxu1 %v3435_v42 }
0x23ff   :  { %2546 = vmatprep.subr.bf16.mxu1 %v2850_v3 }
0x2402   :  { %2547 = vmatpush3.bf16.msra.mxu1 %v3442_v54 }
0x2403   :  { %2548 = vmatprep.subr.bf16.mxu1 %v2850_v3 }
0x2406   :  { %2549 = vmatpush3.bf16.msra.mxu1 %v3449_v5 }
0x2407   :  { %2550 = vmatprep.subr.bf16.mxu1 %v2850_v3 }
0x240a   :  { %2551 = vmatpush3.bf16.msra.mxu1 %v3456_v43 }
0x24c8   :  { %v1931_v2 = vpop.f32.mrb[28].mxu1 }
0x24c9   :  { %v1932_v30 = vadd.f32 %v1931_v2, %v1444_v26  ;;  %v2522_v31 = vpop.f32.mrb[29].mxu1 }
0x24ca   :  { %v1934_v32 = vpop.f32.mrb[30].mxu1 }
0x24cb   :  { %2818 = vtanh.f32 %v1932_v30  ;;  %v2523_v42 = vpop.f32.mrb[31].mxu1  ;;  %v2337_v54 = vmul.f32 -1.442695, %v1932_v30 }
0x24cd   :  { %2820 = vpow2.f32 %v2337_v54 }
0x24d5   :  { %v2819_v46 = vpop.eup %2818 }
0x24d6   :  { %1946 = vrot.lane.b32.xlu1 %v2819_v46, %s2853_s4 }
0x24d7   :  { %v2821_v37 = vpop.eup %2820 }
0x24d8   :  { %v1940_v5 = vadd.f32 1.0, %v2821_v37 }
0x24da   :  { %2822 = vrcp.f32 %v1940_v5 }
0x24e4   :  { %v2823_v3 = vpop.eup %2822 }
0x24e5   :  { %v1944_v33 = vmul.f32 %v2823_v3, %v3597_v6 }
0x2548   :  { %v1947_v36 = vpop.permute.xlu1 %1946 }
0x2549   :  { %v1949_v43 = vmul.f32 %v2823_v3, %v1947_v36 }
0x254b   :  { %1951 = vrot.lane.b32.xlu0 %v1949_v43, %s2854_s26 }
0x25bd   :  { %v1952_v59 = vpop.permute.xlu0 %1951 }
0x25be   :  { %v3647_v56 = vadd.f32 %v1952_v59, %v1944_v33 }
0x25c0   :  { %2824 = vtanh.f32 %v3647_v56 }
0x25ca   :  { %v2825_v15 = vpop.eup %2824 }
0x25cb   :  { %1957 = vrot.lane.b32.xlu1 %v2825_v15, %s2853_s4 }
0x263d   :  { %v1958_v18 = vpop.permute.xlu1 %1957 }
0x263e   :  { %v3651_v63 = vmul.f32 %v2823_v3, %v1958_v18 }
0x2640   :  { %v1970_v28 = vmul.f32 %v3651_v63, %v3519_v60 }
0x2642   :  { %1972 = vrot.lane.b32.xlu0 %v1970_v28, %s2854_s26  ;;  %v1449_v28 = vadd.f32 %v3508_v61, %v3589_v34 }
0x26b4   :  { %v1973_v12 = vpop.permute.xlu0 %1972 }
0x26b5   :  { %v1975_v0 = vsel %vm81_vm0, %v1973_v12, 0.0 }
0x26b6   :  { %1976 = vadd.xlane.f32.xlu1 %v1975_v0 }
0x2743   :  { %v1977_v6 = vpop.xlane.xlu1 %1976 }
0x2744   :  { %v1978_v1 = vadd.f32 %v1977_v6, %v3352_v24 }
0x2746   :  { %v1979_v41 = vmax.f32 %v1978_v1, 0.0 }
0x2748   :  { %v1980_v39 = vsel %vm1482_vm10, %v1979_v41, -inf }
0x2749   :  { %1981 = vmax.xlane.f32.xlu0 %v1980_v39 }
0x27d6   :  { %v1982_v14 = vpop.xlane.xlu0 %1981 }
0x27d7   :  { %v1983_v47 = vsub.f32 %v1979_v41, %v1982_v14 }
0x27d9   :  { %v1984_v29 = vmul.f32 1.442695, %v1983_v47 }
0x27db   :  { %2826 = vpow2.f32 %v1984_v29 }
0x27e5   :  { %v2827_v48 = vpop.eup %2826 }
0x27e6   :  { %v1986_v38 = vsel %vm1482_vm10, %v2827_v48, 0.0 }
0x27e7   :  { %1987 = vadd.xlane.f32.xlu0 %v1986_v38 }
0x2874   :  { %v1988_v8 = vpop.xlane.xlu0 %1987 }
0x2875   :  { %2828 = vrcp.f32 %v1988_v8 }
0x287f   :  { %v2829_v20 = vpop.eup %2828 }
0x2880   :  { %v1990_v40 = vmul.f32 %v2829_v20, %v2827_v48 }
0x2882   :  { %1998 = vperm.xlu0 %2627, %v1990_v40   ;;  %1993 = vperm.xlu1 %2634, %v1990_v40  }
0x2886   :  { %2637 = vset.pattern.permute.xlu0 %v2860_v53  ;;  %2635 = vset.pattern.permute.xlu1 %v2858_v58 }
0x2887   :  { %2016 = vperm.xlu0 %2637, %v1990_v40   ;;  %2004 = vperm.xlu1 %2635, %v1990_v40  }
0x288b   :  { %2640 = vset.pattern.permute.xlu0 %v2863_v16  ;;  %2636 = vset.pattern.permute.xlu1 %v2859_v51 }
0x288c   :  { %2034 = vperm.xlu0 %2640, %v1990_v40   ;;  %2010 = vperm.xlu1 %2636, %v1990_v40  }
0x2890   :  { %2638 = vset.pattern.permute.xlu1 %v2861_v55  ;;  %2642 = vset.pattern.permute.xlu0 %v2856_v19 }
0x2891   :  { %2022 = vperm.xlu1 %2638, %v1990_v40  }
0x2895   :  { %2639 = vset.pattern.permute.xlu1 %v2862_v57 }
0x2896   :  { %2028 = vperm.xlu1 %2639, %v1990_v40  }
0x289a   :  { %2040 = vrot.lane.b32.xlu1 %v3651_v63, %s2857_s27 }
0x289b   :  { %2641 = vset.pattern.permute.xlu1 %v2851_v4 }
0x2901   :  { %v1994_v21 = vpop.permute.xlu1 %1993  ;;  %v1999_v44 = vpop.permute.xlu0 %1998 }
0x2902   :  { %v2001_v50 = vmul.f32 %v1999_v44, %v3297_v45  ;;  %v1996_v22 = vmul.f32 %v1994_v21, %v3310_v11 }
0x2904   :  { %v2002_v27 = vadd.f32 %v2001_v50, %v1996_v22 }
0x2906   :  { %v2005_v25 = vpop.permute.xlu1 %2004  ;;  %v2017_v30 = vpop.permute.xlu0 %2016 }
0x2907   :  { %v2007_v62 = vmul.f32 %v2005_v25, %v3305_v7  ;;  %v2019_v32 = vmul.f32 %v2017_v30, %v3319_v23 }
0x2909   :  { %v2008_v26 = vadd.f32 %v2007_v62, %v2002_v27 }
0x290b   :  { %v2011_v19 = vpop.permute.xlu1 %2010  ;;  %v2035_v54 = vpop.permute.xlu0 %2034 }
0x290c   :  { %v2013_v2 = vmul.f32 %v2011_v19, %v3313_v17  ;;  %v2037_v36 = vmul.f32 %v2035_v54, %v3328_v13 }
0x290e   :  { %v2014_v31 = vadd.f32 %v2013_v2, %v2008_v26 }
0x2910   :  { %v2023_v42 = vpop.permute.xlu1 %2022  ;;  %v2020_v4 = vadd.f32 %v2019_v32, %v2014_v31 }
0x2911   :  { %v2025_v46 = vmul.f32 %v2023_v42, %v3325_v35 }
0x2913   :  { %v2026_v5 = vadd.f32 %v2025_v46, %v2020_v4 }
0x2915   :  { %v2029_v37 = vpop.permute.xlu1 %2028 }
0x2916   :  { %v2031_v3 = vmul.f32 %v2029_v37, %v3334_v52 }
0x2918   :  { %v2032_v43 = vadd.f32 %v2031_v3, %v2026_v5 }
0x2919   :  { %v2041_v59 = vpop.permute.xlu1 %2040 }
0x291a   :  { %v2038_v33 = vadd.f32 %v2037_v36, %v2032_v43 }
0x291c   :  { %v2043_v15 = vsel %vm1112_vm2, %v2038_v33, %v2041_v59 }
0x291d   :  { %v2044_v18 = vpack.c.bf16 %v2043_v15, %v2043_v15 }
0x291f   :  { %2537 = vmatmul.mubr.msk.bf16.vlgmr.msra.gmra.mrb[44].mxu0 %vm1584_vm11, %v2044_v18 }
0x29f2   :  { %v2082_v12 = vpop.f32.mrb[44].mxu0 }
0x29f3   :  { %v2083_v0 = vadd.f32 %v2082_v12, %v1449_v28  ;;  %v2538_v6 = vpop.f32.mrb[45].mxu0 }
0x29f4   :  { %v2085_v1 = vpop.f32.mrb[46].mxu0 }
0x29f5   :  { %2830 = vtanh.f32 %v2083_v0  ;;  %v2539_v41 = vpop.f32.mrb[47].mxu0  ;;  %v2341_v14 = vmul.f32 -1.442695, %v2083_v0 }
0x29f7   :  { %2832 = vpow2.f32 %v2341_v14 }
0x29ff   :  { %v2831_v39 = vpop.eup %2830 }
0x2a00   :  { %2097 = vrot.lane.b32.xlu1 %v2831_v39, %s2853_s4 }
0x2a01   :  { %v2833_v47 = vpop.eup %2832 }
0x2a02   :  { %v2091_v29 = vadd.f32 1.0, %v2833_v47 }
0x2a04   :  { %2834 = vrcp.f32 %v2091_v29 }
0x2a0e   :  { %v2835_v48 = vpop.eup %2834 }
0x2a0f   :  { %v2095_v34 = vmul.f32 %v2835_v48, %v3647_v56 }
0x2a72   :  { %v2098_v38 = vpop.permute.xlu1 %2097 }
0x2a73   :  { %v2100_v8 = vmul.f32 %v2835_v48, %v2098_v38 }
0x2a75   :  { %2102 = vrot.lane.b32.xlu0 %v2100_v8, %s2854_s26 }
0x2ae7   :  { %v2103_v20 = vpop.permute.xlu0 %2102 }
0x2ae8   :  { %v3685_v40 = vadd.f32 %v2103_v20, %v2095_v34 }
0x2aea   :  { %2836 = vtanh.f32 %v3685_v40 }
0x2af4   :  { %v2837_v21 = vpop.eup %2836 }
0x2af5   :  { %2108 = vrot.lane.b32.xlu1 %v2837_v21, %s2853_s4 }
0x2b67   :  { %v2109_v44 = vpop.permute.xlu1 %2108 }
0x2b68   :  { %v3689_v50 = vmul.f32 %v2835_v48, %v2109_v44 }
0x2b6a   :  { %v2121_v22 = vmul.f32 %v3689_v50, %v3519_v60 }
0x2b6c   :  { %2123 = vrot.lane.b32.xlu0 %v2121_v22, %s2854_s26 }
0x2bde   :  { %v2124_v25 = vpop.permute.xlu0 %2123 }
0x2bdf   :  { %v2126_v62 = vsel %vm81_vm0, %v2124_v25, 0.0  ;;  %v2351_v25 = vpack.c.bf16 %v3689_v50, %v3689_v50 }
0x2be0   :  { %2127 = vadd.xlane.f32.xlu1 %v2126_v62 }
0x2c6d   :  { %v2128_v56 = vpop.xlane.xlu1 %2127 }
0x2c6e   :  { %v2129_v27 = vadd.f32 %v2128_v56, %v3352_v24 }
0x2c70   :  { %v2130_v19 = vmax.f32 %v2129_v27, 0.0 }
0x2c72   :  { %v2131_v26 = vsel %vm1482_vm10, %v2130_v19, -inf }
0x2c73   :  { %2132 = vmax.xlane.f32.xlu0 %v2131_v26 }
0x2d00   :  { %v2133_v2 = vpop.xlane.xlu0 %2132 }
0x2d01   :  { %v2134_v30 = vsub.f32 %v2130_v19, %v2133_v2 }
0x2d03   :  { %v2135_v31 = vmul.f32 1.442695, %v2134_v30 }
0x2d05   :  { %2838 = vpow2.f32 %v2135_v31 }
0x2d0f   :  { %v2839_v32 = vpop.eup %2838 }
0x2d10   :  { %v2137_v60 = vsel %vm1482_vm10, %v2839_v32, 0.0 }
0x2d11   :  { %2138 = vadd.xlane.f32.xlu0 %v2137_v60 }
0x2d9e   :  { %v2139_v42 = vpop.xlane.xlu0 %2138 }
0x2d9f   :  { %2840 = vrcp.f32 %v2139_v42 }
0x2da9   :  { %v2841_v4 = vpop.eup %2840 }
0x2daa   :  { %v2141_v46 = vmul.f32 %v2841_v4, %v2839_v32 }
0x2dac   :  { %2149 = vperm.xlu0 %2642, %v2141_v46   ;;  %2144 = vperm.xlu1 %2641, %v2141_v46  }
0x2db0   :  { %2643 = vset.pattern.permute.xlu1 %v2858_v58  ;;  %2649 = vset.pattern.permute.xlu0 %v2863_v16 }
0x2db1   :  { %2155 = vperm.xlu1 %2643, %v2141_v46  }
0x2db5   :  { %2644 = vset.pattern.permute.xlu1 %v2859_v51 }
0x2db6   :  { %2161 = vperm.xlu1 %2644, %v2141_v46  }
0x2dba   :  { %2645 = vset.pattern.permute.xlu1 %v2860_v53 }
0x2dbb   :  { %2167 = vperm.xlu1 %2645, %v2141_v46  }
0x2dbf   :  { %2646 = vset.pattern.permute.xlu1 %v2861_v55 }
0x2dc0   :  { %2173 = vperm.xlu1 %2646, %v2141_v46  }
0x2dc4   :  { %2647 = vset.pattern.permute.xlu1 %v2862_v57 }
0x2dc5   :  { %2179 = vperm.xlu1 %2647, %v2141_v46  }
0x2dc9   :  { %2648 = vset.pattern.permute.xlu1 %v2863_v16 }
0x2dca   :  { %2185 = vperm.xlu1 %2648, %v2141_v46  }
0x2dce   :  { %2191 = vrot.lane.b32.xlu1 %v3689_v50, %s2857_s27 }
0x2e2b   :  { %v2145_v24 = vpop.permute.xlu1 %2144  ;;  %v2150_v51 = vpop.permute.xlu0 %2149 }
0x2e2c   :  { %v2152_v53 = vmul.f32 %v2150_v51, %v3297_v45  ;;  %v2147_v5 = vmul.f32 %v2145_v24, %v3310_v11 }
0x2e2e   :  { %v2153_v57 = vadd.f32 %v2152_v53, %v2147_v5 }
0x2e30   :  { %v2156_v58 = vpop.permute.xlu1 %2155 }
0x2e31   :  { %v2158_v55 = vmul.f32 %v2156_v58, %v3305_v7 }
0x2e33   :  { %v2159_v16 = vadd.f32 %v2158_v55, %v2153_v57 }
0x2e35   :  { %v2162_v54 = vpop.permute.xlu1 %2161 }
0x2e36   :  { %v2164_v36 = vmul.f32 %v2162_v54, %v3313_v17 }
0x2e38   :  { %v2165_v33 = vadd.f32 %v2164_v36, %v2159_v16 }
0x2e3a   :  { %v2168_v37 = vpop.permute.xlu1 %2167 }
0x2e3b   :  { %v2170_v43 = vmul.f32 %v2168_v37, %v3319_v23  ;;  %v1454_v23 = vadd.f32 %v3508_v61, %v3591_v49  ;;  %v2348_v61 = vpack.c.bf16 %v3521_v10, %v3521_v10  ;;  %v2350_v49 = vpack.c.bf16 %v3651_v63, %v3651_v63 }
0x2e3d   :  { %v2171_v18 = vadd.f32 %v2170_v43, %v2165_v33 }
0x2e3f   :  { %v2174_v3 = vpop.permute.xlu1 %2173 }
0x2e40   :  { %v2176_v59 = vmul.f32 %v2174_v3, %v3325_v35 }
0x2e42   :  { %v2177_v12 = vadd.f32 %v2176_v59, %v2171_v18 }
0x2e44   :  { %v2180_v15 = vpop.permute.xlu1 %2179 }
0x2e45   :  { %v2182_v28 = vmul.f32 %v2180_v15, %v3334_v52 }
0x2e47   :  { %v2183_v0 = vadd.f32 %v2182_v28, %v2177_v12 }
0x2e49   :  { %v2186_v45 = vpop.permute.xlu1 %2185 }
0x2e4a   :  { %v2188_v11 = vmul.f32 %v2186_v45, %v3328_v13 }
0x2e4c   :  { %v2189_v7 = vadd.f32 %v2188_v11, %v2183_v0 }
0x2e4d   :  { %v2192_v6 = vpop.permute.xlu1 %2191 }
0x2e4e   :  { %v2194_v1 = vsel %vm1112_vm2, %v2189_v7, %v2192_v6 }
0x2e4f   :  { %v2195_v17 = vpack.c.bf16 %v2194_v1, %v2194_v1 }
0x2e51   :  { %2553 = vmatmul.mubr.msk.bf16.vlgmr.msra.gmra.mrb[32].mxu1 %vm1584_vm11, %v2195_v17 }
0x2f24   :  { %v2233_v35 = vpop.f32.mrb[32].mxu1 }
0x2f25   :  { %v2234_v41 = vadd.f32 %v2233_v35, %v1454_v23  ;;  %v2554_v39 = vpop.f32.mrb[33].mxu1 }
0x2f26   :  { %v2236_v14 = vpop.f32.mrb[34].mxu1 }
0x2f27   :  { %2842 = vtanh.f32 %v2234_v41  ;;  %v2555_v52 = vpop.f32.mrb[35].mxu1  ;;  %v2345_v13 = vmul.f32 -1.442695, %v2234_v41 }
0x2f29   :  { %2844 = vpow2.f32 %v2345_v13 }
0x2f31   :  { %v2843_v47 = vpop.eup %2842 }
0x2f32   :  { %2248 = vrot.lane.b32.xlu0 %v2843_v47, %s2853_s4 }
0x2f33   :  { %v2845_v29 = vpop.eup %2844 }
0x2f34   :  { %v2242_v48 = vadd.f32 1.0, %v2845_v29 }
0x2f36   :  { %2846 = vrcp.f32 %v2242_v48 }
0x2f40   :  { %v2847_v38 = vpop.eup %2846 }
0x2f41   :  { %v2246_v20 = vmul.f32 %v2847_v38, %v3685_v40  ;;  %v2349_v40 = vpack.c.bf16 %v3601_v9, %v3601_v9 }
0x2fa4   :  { %v2249_v8 = vpop.permute.xlu0 %2248 }
0x2fa5   :  { %v2251_v34 = vmul.f32 %v2847_v38, %v2249_v8 }
0x2fa7   :  { %2253 = vrot.lane.b32.xlu1 %v2251_v34, %s2854_s26 }
0x2fab   :  { %1660 = vrot.lane.b32.xlu1 %v2348_v61, %s2854_s26 }
0x2faf   :  { %1965 = vrot.lane.b32.xlu1 %v2350_v49, %s2854_s26 }
0x3019   :  { %v2254_v21 = vpop.permute.xlu1 %2253 }
0x301a   :  { %v2256_v44 = vadd.f32 %v2254_v21, %v2246_v20 }
0x301c   :  { %2848 = vtanh.f32 %v2256_v44 }
0x301d   :  { %v1661_v22 = vpop.permute.xlu1 %1660 }
0x301e   :  { %1664 = vst.msk [vmem:[%s3771_s15] sm:$0xf] %vm1663_vm12, %v1661_v22 }
0x3021   :  { %v1966_v10 = vpop.permute.xlu1 %1965 }
0x3022   :  { %2339 = vst.msk [vmem:[%s3771_s15 + $0x8] sm:$0xf] %vm1663_vm12, %v1966_v10 }
0x3026   :  { %v2849_v63 = vpop.eup %2848 }
0x3027   :  { %2259 = vrot.lane.b32.xlu0 %v2849_v63, %s2853_s4 }
0x302b   :  { %1814 = vrot.lane.b32.xlu0 %v2349_v40, %s2854_s26 }
0x302f   :  { %2116 = vrot.lane.b32.xlu0 %v2351_v25, %s2854_s26 }
0x3099   :  { %v2260_v62 = vpop.permute.xlu0 %2259 }
0x309a   :  { %v2262_v56 = vmul.f32 %v2847_v38, %v2260_v62 }
0x309c   :  { %v2352_v27 = vpack.c.bf16 %v2262_v56, %v2262_v56 }
0x309d   :  { %v1815_v19 = vpop.permute.xlu0 %1814 }
0x309e   :  { %2335 = vst.msk [vmem:[%s3771_s15 + $0x4] sm:$0xf] %vm1663_vm12, %v1815_v19  ;;  %2267 = vrot.lane.b32.xlu1 %v2352_v27, %s2854_s26 }
0x30a1   :  { %v2117_v26 = vpop.permute.xlu0 %2116 }
0x30a2   :  { %2343 = vst.msk [vmem:[%s3771_s15 + $0xc] sm:$0xf] %vm1663_vm12, %v2117_v26 }
0x3110   :  { %v2268_v9 = vpop.permute.xlu1 %2267 }
0x3111   :  { %2347 = vst.msk [vmem:[%s3771_s15 + $0x10] sm:$0xf] %vm1663_vm12, %v2268_v9 }

</bundles_post_ra>
